<compile_context>
chip_gen: v6e
topology: v6e:2x2x1
jax: 0.10.0
libtpu: 0.0.40
codegen_flags: <defaults>
</compile_context>

<pallas_src>
import jax
import jax.numpy as jnp
from jax import lax
from jax.experimental import pallas as pl
from jax.experimental.pallas import tpu as pltpu


def _bottleneck_kernel(
    x_hbm,      # (B, H+6, Wb, C)  HBM (pl.ANY)  host-padded input
    w_dw_ref,   # (27, C)          VMEM  depthwise taps, BN scale folded in
    w_pw_ref,   # (3, C, C)        VMEM  pointwise weights (Cin, Cout), bf16
    b_ref,      # (3, 1, C)        VMEM  folded BN bias (bias @ w_pw), f32
    out_ref,    # (1, T, W, C)     VMEM  output strip
    buf0,       # (T+6, Wb, C)     VMEM scratch: input strip  (+3-row halo)
    buf1,       # (T+4, Wb, C)     VMEM scratch: block-1 out  (+2-row halo)
    buf2,       # (T+2, Wb, C)     VMEM scratch: block-2 out  (+1-row halo)
    sem,        # DMA semaphore
):
    b = pl.program_id(0)
    t = pl.program_id(1)
    nt = pl.num_programs(1)
    _, T, W, C = out_ref.shape
    Wb = buf0.shape[1]

    # Fetch this strip's padded input rows [t*T, t*T + T + 6): one contiguous DMA.
    cp = pltpu.make_async_copy(x_hbm.at[b, pl.ds(t * T, T + 6)], buf0, sem)
    cp.start()

    # Zero the pad columns of the intermediate buffers while the DMA is in
    # flight.  The interiors [:, 0:W) are fully overwritten below; the zero pad
    # columns are what make the rolled windows correct at the W boundaries.
    buf1[:, W:, :] = jnp.zeros((T + 4, Wb - W, C), jnp.float32)
    buf2[:, W:, :] = jnp.zeros((T + 2, Wb - W, C), jnp.float32)

    cp.wait()

    def conv_block(src, n_src, blk):
        """depthwise 3x3 (BN-scaled) -> pointwise 1x1 (+folded bias) -> ReLU6."""
        n_out = n_src - 2
        dw = jnp.zeros((n_out, Wb, C), jnp.float32)
        for kh in range(3):
            # One aligned slab load per kh; the three kw taps reuse it via
            # sublane rolls (XLU) instead of unaligned window loads.
            flat = src[kh:kh + n_out, :, :].reshape(n_out * Wb, C)
            for kw in range(3):
                if kw == 0:                               # input column j-1
                    win = pltpu.roll(flat, 1, axis=0)
                elif kw == 1:                             # input column j
                    win = flat
                else:                                     # input column j+1
                    win = pltpu.roll(flat, n_out * Wb - 1, axis=0)
                tap = w_dw_ref[blk * 9 + kh * 3 + kw]     # (C,)
                dw = dw + win.reshape(n_out, Wb, C) * tap
        # Pointwise 1x1 conv on the MXU: bf16 inputs, f32 accumulation.
        pw = jnp.dot(dw[:, :W, :].reshape(n_out * W, C).astype(jnp.bfloat16),
                     w_pw_ref[blk],
                     preferred_element_type=jnp.float32)
        pw = pw + b_ref[blk]                              # (n_out*W, C) + (1, C)
        return jnp.clip(pw, 0.0, 6.0).reshape(n_out, W, C)

    # ---- block 1: buf0 -> buf1 interior ----
    buf1[:, :W, :] = conv_block(buf0, T + 6, 0)

    # Halo rows that fall outside the image must be zero (conv zero padding),
    # not "block applied to zeros" (which would be clip(folded_bias, 0, 6)).
    @pl.when(t == 0)
    def _():
        buf1[0:2, :W, :] = jnp.zeros((2, W, C), jnp.float32)

    @pl.when(t == nt - 1)
    def _():
        buf1[T + 2:T + 4, :W, :] = jnp.zeros((2, W, C), jnp.float32)

    # ---- block 2: buf1 -> buf2 interior ----
    buf2[:, :W, :] = conv_block(buf1, T + 4, 1)

    @pl.when(t == 0)
    def _():
        buf2[0:1, :W, :] = jnp.zeros((1, W, C), jnp.float32)

    @pl.when(t == nt - 1)
    def _():
        buf2[T + 1:T + 2, :W, :] = jnp.zeros((1, W, C), jnp.float32)

    # ---- block 3: buf2 -> output strip ----
    out_ref[0] = conv_block(buf2, T + 2, 2).astype(out_ref.dtype)


def _fold_params(p):
    """Fold inference-mode BatchNorm into the conv weights (host side)."""
    scale = p["gamma"] / jnp.sqrt(p["var"] + p["eps"])             # (3, C)
    bias = p["beta"] - p["mean"] * scale                           # (3, C)
    w_dw_f = (p["w_dw"] * scale[:, None, :]).reshape(27, -1)       # (27, C)
    b_f = jnp.einsum("bc,bcd->bd", bias, p["w_pw"])[:, None, :]    # (3, 1, C)
    return w_dw_f, p["w_pw"], b_f


def bottleneck_forward(x, params, *, tile_rows=8, interpret=False):
    """x: (B, H, W, C) float32, NHWC."""
    B, H, W, C = x.shape
    T = tile_rows if H % tile_rows == 0 else H        # output rows per grid step
    NT = H // T
    Wb = ((W + 1 + 7) // 8) * 8                       # >= W+1, sublane aligned

    w_dw_f, w_pw, b_f = _fold_params(params)
    w_pw_bf16 = w_pw.astype(jnp.bfloat16)             # MXU-native operand

    # Host-side zero padding: 3 halo rows top/bottom (3 chained 3x3 convs) and
    # the W axis padded to Wb so the roll-based column halo wraps onto zeros.
    xp = jnp.pad(x.astype(jnp.float32), ((0, 0), (3, 3), (0, Wb - W), (0, 0)))

    flops = B * 3 * (2 * H * W * C * C + 9 * 2 * H * W * C)
    bytes_accessed = ((xp.size + B * H * W * C + w_dw_f.size + b_f.size) * 4
                      + w_pw_bf16.size * 2)

    return pl.pallas_call(
        _bottleneck_kernel,
        out_shape=jax.ShapeDtypeStruct((B, H, W, C), x.dtype),
        grid=(B, NT),
        in_specs=[
            pl.BlockSpec(memory_space=pl.ANY),                   # padded input (HBM)
            pl.BlockSpec((27, C), lambda b, t: (0, 0)),          # folded dw taps
            pl.BlockSpec((3, C, C), lambda b, t: (0, 0, 0)),     # pw weights (bf16)
            pl.BlockSpec((3, 1, C), lambda b, t: (0, 0, 0)),     # folded bias
        ],
        out_specs=pl.BlockSpec((1, T, W, C), lambda b, t: (b, t, 0, 0)),
        scratch_shapes=[
            pltpu.VMEM((T + 6, Wb, C), jnp.float32),
            pltpu.VMEM((T + 4, Wb, C), jnp.float32),
            pltpu.VMEM((T + 2, Wb, C), jnp.float32),
            pltpu.SemaphoreType.DMA,
        ],
        compiler_params=pltpu.CompilerParams(
            dimension_semantics=("parallel", "parallel"),
            vmem_limit_bytes=64 * 1024 * 1024),
        cost_estimate=pl.CostEstimate(
            flops=flops, transcendentals=0, bytes_accessed=bytes_accessed),
        interpret=interpret,
    )(xp, w_dw_f, w_pw_bf16, b_f)


# -------------------- deterministic parameter init --------------------
def init_params(key, C=128, eps=1e-5):
    ks = jax.random.split(key, 6)
    w_dw = jax.random.normal(ks[0], (3, 9, C), jnp.float32) / 3.0            # fan_in=9
    w_pw = jax.random.normal(ks[1], (3, C, C), jnp.float32) / jnp.sqrt(float(C))
    gamma = 1.0 + 0.1 * jax.random.normal(ks[2], (3, C), jnp.float32)
    beta = 0.1 * jax.random.normal(ks[3], (3, C), jnp.float32)
    mean = 0.1 * jax.random.normal(ks[4], (3, C), jnp.float32)
    var = jax.random.uniform(ks[5], (3, C), jnp.float32, minval=0.5, maxval=1.5)
    return dict(w_dw=w_dw, w_pw=w_pw, gamma=gamma, beta=beta, mean=mean,
                var=var, eps=eps)


# -------------------- plain-JAX reference (for self-check) --------------------
def ref_forward(x, p):
    B, H, W, C = x.shape
    eps = p["eps"]
    y = x
    for blk in range(3):
        wdw = p["w_dw"][blk].reshape(3, 3, C)[:, :, None, :]   # HWIO, groups=C
        y = lax.conv_general_dilated(
            y, wdw, (1, 1), "SAME",
            dimension_numbers=("NHWC", "HWIO", "NHWC"),
            feature_group_count=C)
        scale = p["gamma"][blk] / jnp.sqrt(p["var"][blk] + eps)
        bias = p["beta"][blk] - p["mean"][blk] * scale
        y = y * scale + bias
        y = jnp.einsum("bhwc,cd->bhwd", y, p["w_pw"][blk])
        y = jnp.clip(y, 0.0, 6.0)
    return y


if __name__ == "__main__":
    B, H, W, C = 2, 16, 16, 128   # inplanes == planes == 128 (lane-dense)
    key = jax.random.PRNGKey(0)
    kx, kp = jax.random.split(key)
    x = jax.random.normal(kx, (B, H, W, C), jnp.float32)
    params = init_params(kp, C=C)

    out = jax.block_until_ready(bottleneck_forward(x, params))

    ref = ref_forward(x, params)
    assert out.shape == (B, H, W, C)
    assert bool(jnp.all(jnp.isfinite(out)))
    # Tolerance accounts for bf16 MXU inputs in the pointwise convs (f32 accum).
    if not jnp.allclose(out, ref, atol=5e-2, rtol=5e-2):
        raise AssertionError(
            "kernel/reference mismatch, max abs err="
            f"{float(jnp.max(jnp.abs(out - ref)))}")
    print("KERNEL_OK")
</pallas_src>

<mosaic_0001>
module attributes {stable_mosaic.version = 11 : i64} {
  func.func @_bottleneck_kernel(%arg0: i32, %arg1: i32, %arg2: memref<2x22x24x128xf32, #tpu.memory_space<any>>, %arg3: memref<27x128xf32, #tpu.memory_space<vmem>>, %arg4: memref<3x128x128xbf16, #tpu.memory_space<vmem>>, %arg5: memref<3x1x128xf32, #tpu.memory_space<vmem>>, %arg6: memref<1x8x16x128xf32, #tpu.memory_space<vmem>>, %arg7: memref<14x24x128xf32, #tpu.memory_space<vmem>>, %arg8: memref<12x24x128xf32, #tpu.memory_space<vmem>>, %arg9: memref<10x24x128xf32, #tpu.memory_space<vmem>>, %arg10: memref<!tpu.dma_semaphore, #tpu.memory_space<semaphore_mem>>) attributes {dimension_semantics = [#tpu.dimension_semantics<parallel>, #tpu.dimension_semantics<parallel>], iteration_bounds = array<i64: 2, 2>, scalar_prefetch = 0 : i64, scratch_operands = 4 : i64, tpu.core_type = #tpu.core_type<tc>, window_params = [{}, {pipeline_mode = #tpu.pipeline_mode<synchronous>, transform_indices = @transform_1, window_bounds = array<i64: 27, 128>}, {pipeline_mode = #tpu.pipeline_mode<synchronous>, transform_indices = @transform_2, window_bounds = array<i64: 3, 128, 128>}, {pipeline_mode = #tpu.pipeline_mode<synchronous>, transform_indices = @transform_3, window_bounds = array<i64: 3, 1, 128>}, {transform_indices = @transform_4, window_bounds = array<i64: 1, 8, 16, 128>}]} {
    %c8_i32 = arith.constant 8 : i32
    %0 = arith.muli %arg1, %c8_i32 : i32
    %c0_i32 = arith.constant 0 : i32
    %c0_i32_0 = arith.constant 0 : i32
    %1 = tpu.memref_slice %arg2[%arg0, %0, %c0_i32, %c0_i32_0] : memref<2x22x24x128xf32, #tpu.memory_space<any>> -> memref<1x14x24x128xf32, #tpu.memory_space<any>>
    %2 = tpu.memref_squeeze %1 : memref<1x14x24x128xf32, #tpu.memory_space<any>> -> memref<14x24x128xf32, #tpu.memory_space<any>>
    tpu.enqueue_dma source(%2 : memref<14x24x128xf32, #tpu.memory_space<any>>) target(%arg7 : memref<14x24x128xf32, #tpu.memory_space<vmem>>) target_semaphore(%arg10 : memref<!tpu.dma_semaphore, #tpu.memory_space<semaphore_mem>>)
    %cst = arith.constant 0.000000e+00 : f32
    %3 = vector.broadcast %cst : f32 to vector<12x8x128xf32>
    %c0 = arith.constant 0 : index
    %c16 = arith.constant 16 : index
    %c0_1 = arith.constant 0 : index
    %4 = vector.load %arg8[%c0, %c16, %c0_1] : memref<12x24x128xf32, #tpu.memory_space<vmem>>, vector<12x8x128xf32>
    tpu.vector_store %arg8[%c0, %c16, %c0_1], %3 {strides = array<i32>} : memref<12x24x128xf32, #tpu.memory_space<vmem>>, vector<12x8x128xf32>,
    %cst_2 = arith.constant 0.000000e+00 : f32
    %5 = vector.broadcast %cst_2 : f32 to vector<10x8x128xf32>
    %c0_3 = arith.constant 0 : index
    %c16_4 = arith.constant 16 : index
    %c0_5 = arith.constant 0 : index
    %6 = vector.load %arg9[%c0_3, %c16_4, %c0_5] : memref<10x24x128xf32, #tpu.memory_space<vmem>>, vector<10x8x128xf32>
    tpu.vector_store %arg9[%c0_3, %c16_4, %c0_5], %5 {strides = array<i32>} : memref<10x24x128xf32, #tpu.memory_space<vmem>>, vector<10x8x128xf32>,
    %c0_i32_6 = arith.constant 0 : i32
    %c0_i32_7 = arith.constant 0 : i32
    %7 = tpu.memref_slice %arg2[%arg0, %0, %c0_i32_6, %c0_i32_7] : memref<2x22x24x128xf32, #tpu.memory_space<any>> -> memref<1x14x24x128xf32, #tpu.memory_space<any>>
    %8 = tpu.memref_squeeze %7 : memref<1x14x24x128xf32, #tpu.memory_space<any>> -> memref<14x24x128xf32, #tpu.memory_space<any>>
    tpu.wait_dma2 semaphore(%arg10 : memref<!tpu.dma_semaphore, #tpu.memory_space<semaphore_mem>>) src(%8 : memref<14x24x128xf32, #tpu.memory_space<any>>) dst(%arg7 : memref<14x24x128xf32, #tpu.memory_space<vmem>>)
    %cst_8 = arith.constant 0.000000e+00 : f32
    %9 = vector.broadcast %cst_8 : f32 to vector<12x24x128xf32>
    %c0_9 = arith.constant 0 : index
    %c0_10 = arith.constant 0 : index
    %c0_11 = arith.constant 0 : index
    %10 = vector.load %arg7[%c0_9, %c0_10, %c0_11] : memref<14x24x128xf32, #tpu.memory_space<vmem>>, vector<12x24x128xf32>
    %11 = vector.shape_cast %10 : vector<12x24x128xf32> to vector<288x128xf32>
    %c1_i32 = arith.constant 1 : i32
    %12 = tpu.dynamic_rotate %11 by %c1_i32 dim 0 : vector<288x128xf32>, i32 -> vector<288x128xf32>
    %c0_12 = arith.constant 0 : index
    %c0_13 = arith.constant 0 : index
    %13 = vector.load %arg3[%c0_12, %c0_13] : memref<27x128xf32, #tpu.memory_space<vmem>>, vector<1x128xf32>
    %14 = vector.shape_cast %13 : vector<1x128xf32> to vector<128xf32>
    %15 = vector.shape_cast %12 : vector<288x128xf32> to vector<12x24x128xf32>
    %16 = vector.shape_cast %14 : vector<128xf32> to vector<1x1x128xf32>
    %17 = vector.broadcast %16 : vector<1x1x128xf32> to vector<12x24x128xf32>
    %18 = arith.mulf %15, %17 : vector<12x24x128xf32>
    %19 = arith.addf %9, %18 : vector<12x24x128xf32>
    %c1 = arith.constant 1 : index
    %c0_14 = arith.constant 0 : index
    %20 = vector.load %arg3[%c1, %c0_14] : memref<27x128xf32, #tpu.memory_space<vmem>>, vector<1x128xf32>
    %21 = vector.shape_cast %20 : vector<1x128xf32> to vector<128xf32>
    %22 = vector.shape_cast %11 : vector<288x128xf32> to vector<12x24x128xf32>
    %23 = vector.shape_cast %21 : vector<128xf32> to vector<1x1x128xf32>
    %24 = vector.broadcast %23 : vector<1x1x128xf32> to vector<12x24x128xf32>
    %25 = arith.mulf %22, %24 : vector<12x24x128xf32>
    %26 = arith.addf %19, %25 : vector<12x24x128xf32>
    %c287_i32 = arith.constant 287 : i32
    %27 = tpu.dynamic_rotate %11 by %c287_i32 dim 0 : vector<288x128xf32>, i32 -> vector<288x128xf32>
    %c2 = arith.constant 2 : index
    %c0_15 = arith.constant 0 : index
    %28 = vector.load %arg3[%c2, %c0_15] : memref<27x128xf32, #tpu.memory_space<vmem>>, vector<1x128xf32>
    %29 = vector.shape_cast %28 : vector<1x128xf32> to vector<128xf32>
    %30 = vector.shape_cast %27 : vector<288x128xf32> to vector<12x24x128xf32>
    %31 = vector.shape_cast %29 : vector<128xf32> to vector<1x1x128xf32>
    %32 = vector.broadcast %31 : vector<1x1x128xf32> to vector<12x24x128xf32>
    %33 = arith.mulf %30, %32 : vector<12x24x128xf32>
    %34 = arith.addf %26, %33 : vector<12x24x128xf32>
    %c1_16 = arith.constant 1 : index
    %c0_17 = arith.constant 0 : index
    %c0_18 = arith.constant 0 : index
    %35 = vector.load %arg7[%c1_16, %c0_17, %c0_18] : memref<14x24x128xf32, #tpu.memory_space<vmem>>, vector<12x24x128xf32>
    %36 = vector.shape_cast %35 : vector<12x24x128xf32> to vector<288x128xf32>
    %c1_i32_19 = arith.constant 1 : i32
    %37 = tpu.dynamic_rotate %36 by %c1_i32_19 dim 0 : vector<288x128xf32>, i32 -> vector<288x128xf32>
    %c3 = arith.constant 3 : index
    %c0_20 = arith.constant 0 : index
    %38 = vector.load %arg3[%c3, %c0_20] : memref<27x128xf32, #tpu.memory_space<vmem>>, vector<1x128xf32>
    %39 = vector.shape_cast %38 : vector<1x128xf32> to vector<128xf32>
    %40 = vector.shape_cast %37 : vector<288x128xf32> to vector<12x24x128xf32>
    %41 = vector.shape_cast %39 : vector<128xf32> to vector<1x1x128xf32>
    %42 = vector.broadcast %41 : vector<1x1x128xf32> to vector<12x24x128xf32>
    %43 = arith.mulf %40, %42 : vector<12x24x128xf32>
    %44 = arith.addf %34, %43 : vector<12x24x128xf32>
    %c4 = arith.constant 4 : index
    %c0_21 = arith.constant 0 : index
    %45 = vector.load %arg3[%c4, %c0_21] : memref<27x128xf32, #tpu.memory_space<vmem>>, vector<1x128xf32>
    %46 = vector.shape_cast %45 : vector<1x128xf32> to vector<128xf32>
    %47 = vector.shape_cast %36 : vector<288x128xf32> to vector<12x24x128xf32>
    %48 = vector.shape_cast %46 : vector<128xf32> to vector<1x1x128xf32>
    %49 = vector.broadcast %48 : vector<1x1x128xf32> to vector<12x24x128xf32>
    %50 = arith.mulf %47, %49 : vector<12x24x128xf32>
    %51 = arith.addf %44, %50 : vector<12x24x128xf32>
    %c287_i32_22 = arith.constant 287 : i32
    %52 = tpu.dynamic_rotate %36 by %c287_i32_22 dim 0 : vector<288x128xf32>, i32 -> vector<288x128xf32>
    %c5 = arith.constant 5 : index
    %c0_23 = arith.constant 0 : index
    %53 = vector.load %arg3[%c5, %c0_23] : memref<27x128xf32, #tpu.memory_space<vmem>>, vector<1x128xf32>
    %54 = vector.shape_cast %53 : vector<1x128xf32> to vector<128xf32>
    %55 = vector.shape_cast %52 : vector<288x128xf32> to vector<12x24x128xf32>
    %56 = vector.shape_cast %54 : vector<128xf32> to vector<1x1x128xf32>
    %57 = vector.broadcast %56 : vector<1x1x128xf32> to vector<12x24x128xf32>
    %58 = arith.mulf %55, %57 : vector<12x24x128xf32>
    %59 = arith.addf %51, %58 : vector<12x24x128xf32>
    %c2_24 = arith.constant 2 : index
    %c0_25 = arith.constant 0 : index
    %c0_26 = arith.constant 0 : index
    %60 = vector.load %arg7[%c2_24, %c0_25, %c0_26] : memref<14x24x128xf32, #tpu.memory_space<vmem>>, vector<12x24x128xf32>
    %61 = vector.shape_cast %60 : vector<12x24x128xf32> to vector<288x128xf32>
    %c1_i32_27 = arith.constant 1 : i32
    %62 = tpu.dynamic_rotate %61 by %c1_i32_27 dim 0 : vector<288x128xf32>, i32 -> vector<288x128xf32>
    %c6 = arith.constant 6 : index
    %c0_28 = arith.constant 0 : index
    %63 = vector.load %arg3[%c6, %c0_28] : memref<27x128xf32, #tpu.memory_space<vmem>>, vector<1x128xf32>
    %64 = vector.shape_cast %63 : vector<1x128xf32> to vector<128xf32>
    %65 = vector.shape_cast %62 : vector<288x128xf32> to vector<12x24x128xf32>
    %66 = vector.shape_cast %64 : vector<128xf32> to vector<1x1x128xf32>
    %67 = vector.broadcast %66 : vector<1x1x128xf32> to vector<12x24x128xf32>
    %68 = arith.mulf %65, %67 : vector<12x24x128xf32>
    %69 = arith.addf %59, %68 : vector<12x24x128xf32>
    %c7 = arith.constant 7 : index
    %c0_29 = arith.constant 0 : index
    %70 = vector.load %arg3[%c7, %c0_29] : memref<27x128xf32, #tpu.memory_space<vmem>>, vector<1x128xf32>
    %71 = vector.shape_cast %70 : vector<1x128xf32> to vector<128xf32>
    %72 = vector.shape_cast %61 : vector<288x128xf32> to vector<12x24x128xf32>
    %73 = vector.shape_cast %71 : vector<128xf32> to vector<1x1x128xf32>
    %74 = vector.broadcast %73 : vector<1x1x128xf32> to vector<12x24x128xf32>
    %75 = arith.mulf %72, %74 : vector<12x24x128xf32>
    %76 = arith.addf %69, %75 : vector<12x24x128xf32>
    %c287_i32_30 = arith.constant 287 : i32
    %77 = tpu.dynamic_rotate %61 by %c287_i32_30 dim 0 : vector<288x128xf32>, i32 -> vector<288x128xf32>
    %c8 = arith.constant 8 : index
    %c0_31 = arith.constant 0 : index
    %78 = vector.load %arg3[%c8, %c0_31] : memref<27x128xf32, #tpu.memory_space<vmem>>, vector<1x128xf32>
    %79 = vector.shape_cast %78 : vector<1x128xf32> to vector<128xf32>
    %80 = vector.shape_cast %77 : vector<288x128xf32> to vector<12x24x128xf32>
    %81 = vector.shape_cast %79 : vector<128xf32> to vector<1x1x128xf32>
    %82 = vector.broadcast %81 : vector<1x1x128xf32> to vector<12x24x128xf32>
    %83 = arith.mulf %80, %82 : vector<12x24x128xf32>
    %84 = arith.addf %76, %83 : vector<12x24x128xf32>
    %85 = vector.extract_strided_slice %84 {offsets = [0, 0, 0], sizes = [12, 16, 128], strides = [1, 1, 1]} : vector<12x24x128xf32> to vector<12x16x128xf32>
    %86 = vector.shape_cast %85 : vector<12x16x128xf32> to vector<192x128xf32>
    %87 = arith.truncf %86 : vector<192x128xf32> to vector<192x128xbf16>
    %c0_32 = arith.constant 0 : index
    %c0_33 = arith.constant 0 : index
    %c0_34 = arith.constant 0 : index
    %88 = vector.load %arg4[%c0_32, %c0_33, %c0_34] : memref<3x128x128xbf16, #tpu.memory_space<vmem>>, vector<1x128x128xbf16>
    %89 = vector.shape_cast %88 : vector<1x128x128xbf16> to vector<128x128xbf16>
    %cst_35 = arith.constant dense<0.000000e+00> : vector<192x128xf32>
    %90 = tpu.matmul %87, %89, %cst_35 {dimension_numbers = #tpu.dot_dimension_numbers<[1], [0], [0], [1], [0, 0, 1, 1], [], []>} : vector<192x128xbf16>, vector<128x128xbf16>, vector<192x128xf32> -> vector<192x128xf32>
    %c0_36 = arith.constant 0 : index
    %c0_37 = arith.constant 0 : index
    %c0_38 = arith.constant 0 : index
    %91 = vector.load %arg5[%c0_36, %c0_37, %c0_38] : memref<3x1x128xf32, #tpu.memory_space<vmem>>, vector<1x1x128xf32>
    %92 = vector.shape_cast %91 : vector<1x1x128xf32> to vector<1x128xf32>
    %93 = vector.broadcast %92 : vector<1x128xf32> to vector<192x128xf32>
    %94 = arith.addf %90, %93 : vector<192x128xf32>
    %cst_39 = arith.constant 0.000000e+00 : f32
    %cst_40 = arith.constant 6.000000e+00 : f32
    %95 = vector.broadcast %cst_39 : f32 to vector<192x128xf32>
    %96 = arith.maximumf %95, %94 : vector<192x128xf32>
    %97 = vector.broadcast %cst_40 : f32 to vector<192x128xf32>
    %98 = arith.minimumf %97, %96 : vector<192x128xf32>
    %99 = vector.shape_cast %98 : vector<192x128xf32> to vector<12x16x128xf32>
    %c0_41 = arith.constant 0 : index
    %c0_42 = arith.constant 0 : index
    %c0_43 = arith.constant 0 : index
    %100 = vector.load %arg8[%c0_41, %c0_42, %c0_43] : memref<12x24x128xf32, #tpu.memory_space<vmem>>, vector<12x16x128xf32>
    tpu.vector_store %arg8[%c0_41, %c0_42, %c0_43], %99 {strides = array<i32>} : memref<12x24x128xf32, #tpu.memory_space<vmem>>, vector<12x16x128xf32>,
    %c0_i32_44 = arith.constant 0 : i32
    %101 = arith.cmpi eq, %arg1, %c0_i32_44 : i32
    %102 = arith.extui %101 : i1 to i32
    %c0_i32_45 = arith.constant 0 : i32
    %103 = arith.cmpi ne, %102, %c0_i32_45 : i32
    scf.if %103 {
      %cst_126 = arith.constant 0.000000e+00 : f32
      %299 = vector.broadcast %cst_126 : f32 to vector<2x16x128xf32>
      %c0_127 = arith.constant 0 : index
      %c0_128 = arith.constant 0 : index
      %c0_129 = arith.constant 0 : index
      %300 = vector.load %arg8[%c0_127, %c0_128, %c0_129] : memref<12x24x128xf32, #tpu.memory_space<vmem>>, vector<2x16x128xf32>
      tpu.vector_store %arg8[%c0_127, %c0_128, %c0_129], %299 {strides = array<i32>} : memref<12x24x128xf32, #tpu.memory_space<vmem>>, vector<2x16x128xf32>,
    } else {
    }
    %c1_i32_46 = arith.constant 1 : i32
    %104 = arith.cmpi eq, %arg1, %c1_i32_46 : i32
    %105 = arith.extui %104 : i1 to i32
    %c0_i32_47 = arith.constant 0 : i32
    %106 = arith.cmpi ne, %105, %c0_i32_47 : i32
    scf.if %106 {
      %cst_126 = arith.constant 0.000000e+00 : f32
      %299 = vector.broadcast %cst_126 : f32 to vector<2x16x128xf32>
      %c10_127 = arith.constant 10 : index
      %c0_128 = arith.constant 0 : index
      %c0_129 = arith.constant 0 : index
      %300 = vector.load %arg8[%c10_127, %c0_128, %c0_129] : memref<12x24x128xf32, #tpu.memory_space<vmem>>, vector<2x16x128xf32>
      tpu.vector_store %arg8[%c10_127, %c0_128, %c0_129], %299 {strides = array<i32>} : memref<12x24x128xf32, #tpu.memory_space<vmem>>, vector<2x16x128xf32>,
    } else {
    }
    %cst_48 = arith.constant 0.000000e+00 : f32
    %107 = vector.broadcast %cst_48 : f32 to vector<10x24x128xf32>
    %c0_49 = arith.constant 0 : index
    %c0_50 = arith.constant 0 : index
    %c0_51 = arith.constant 0 : index
    %108 = vector.load %arg8[%c0_49, %c0_50, %c0_51] : memref<12x24x128xf32, #tpu.memory_space<vmem>>, vector<10x24x128xf32>
    %109 = vector.shape_cast %108 : vector<10x24x128xf32> to vector<240x128xf32>
    %c1_i32_52 = arith.constant 1 : i32
    %110 = tpu.dynamic_rotate %109 by %c1_i32_52 dim 0 : vector<240x128xf32>, i32 -> vector<240x128xf32>
    %c9 = arith.constant 9 : index
    %c0_53 = arith.constant 0 : index
    %111 = vector.load %arg3[%c9, %c0_53] : memref<27x128xf32, #tpu.memory_space<vmem>>, vector<1x128xf32>
    %112 = vector.shape_cast %111 : vector<1x128xf32> to vector<128xf32>
    %113 = vector.shape_cast %110 : vector<240x128xf32> to vector<10x24x128xf32>
    %114 = vector.shape_cast %112 : vector<128xf32> to vector<1x1x128xf32>
    %115 = vector.broadcast %114 : vector<1x1x128xf32> to vector<10x24x128xf32>
    %116 = arith.mulf %113, %115 : vector<10x24x128xf32>
    %117 = arith.addf %107, %116 : vector<10x24x128xf32>
    %c10 = arith.constant 10 : index
    %c0_54 = arith.constant 0 : index
    %118 = vector.load %arg3[%c10, %c0_54] : memref<27x128xf32, #tpu.memory_space<vmem>>, vector<1x128xf32>
    %119 = vector.shape_cast %118 : vector<1x128xf32> to vector<128xf32>
    %120 = vector.shape_cast %109 : vector<240x128xf32> to vector<10x24x128xf32>
    %121 = vector.shape_cast %119 : vector<128xf32> to vector<1x1x128xf32>
    %122 = vector.broadcast %121 : vector<1x1x128xf32> to vector<10x24x128xf32>
    %123 = arith.mulf %120, %122 : vector<10x24x128xf32>
    %124 = arith.addf %117, %123 : vector<10x24x128xf32>
    %c239_i32 = arith.constant 239 : i32
    %125 = tpu.dynamic_rotate %109 by %c239_i32 dim 0 : vector<240x128xf32>, i32 -> vector<240x128xf32>
    %c11 = arith.constant 11 : index
    %c0_55 = arith.constant 0 : index
    %126 = vector.load %arg3[%c11, %c0_55] : memref<27x128xf32, #tpu.memory_space<vmem>>, vector<1x128xf32>
    %127 = vector.shape_cast %126 : vector<1x128xf32> to vector<128xf32>
    %128 = vector.shape_cast %125 : vector<240x128xf32> to vector<10x24x128xf32>
    %129 = vector.shape_cast %127 : vector<128xf32> to vector<1x1x128xf32>
    %130 = vector.broadcast %129 : vector<1x1x128xf32> to vector<10x24x128xf32>
    %131 = arith.mulf %128, %130 : vector<10x24x128xf32>
    %132 = arith.addf %124, %131 : vector<10x24x128xf32>
    %c1_56 = arith.constant 1 : index
    %c0_57 = arith.constant 0 : index
    %c0_58 = arith.constant 0 : index
    %133 = vector.load %arg8[%c1_56, %c0_57, %c0_58] : memref<12x24x128xf32, #tpu.memory_space<vmem>>, vector<10x24x128xf32>
    %134 = vector.shape_cast %133 : vector<10x24x128xf32> to vector<240x128xf32>
    %c1_i32_59 = arith.constant 1 : i32
    %135 = tpu.dynamic_rotate %134 by %c1_i32_59 dim 0 : vector<240x128xf32>, i32 -> vector<240x128xf32>
    %c12 = arith.constant 12 : index
    %c0_60 = arith.constant 0 : index
    %136 = vector.load %arg3[%c12, %c0_60] : memref<27x128xf32, #tpu.memory_space<vmem>>, vector<1x128xf32>
    %137 = vector.shape_cast %136 : vector<1x128xf32> to vector<128xf32>
    %138 = vector.shape_cast %135 : vector<240x128xf32> to vector<10x24x128xf32>
    %139 = vector.shape_cast %137 : vector<128xf32> to vector<1x1x128xf32>
    %140 = vector.broadcast %139 : vector<1x1x128xf32> to vector<10x24x128xf32>
    %141 = arith.mulf %138, %140 : vector<10x24x128xf32>
    %142 = arith.addf %132, %141 : vector<10x24x128xf32>
    %c13 = arith.constant 13 : index
    %c0_61 = arith.constant 0 : index
    %143 = vector.load %arg3[%c13, %c0_61] : memref<27x128xf32, #tpu.memory_space<vmem>>, vector<1x128xf32>
    %144 = vector.shape_cast %143 : vector<1x128xf32> to vector<128xf32>
    %145 = vector.shape_cast %134 : vector<240x128xf32> to vector<10x24x128xf32>
    %146 = vector.shape_cast %144 : vector<128xf32> to vector<1x1x128xf32>
    %147 = vector.broadcast %146 : vector<1x1x128xf32> to vector<10x24x128xf32>
    %148 = arith.mulf %145, %147 : vector<10x24x128xf32>
    %149 = arith.addf %142, %148 : vector<10x24x128xf32>
    %c239_i32_62 = arith.constant 239 : i32
    %150 = tpu.dynamic_rotate %134 by %c239_i32_62 dim 0 : vector<240x128xf32>, i32 -> vector<240x128xf32>
    %c14 = arith.constant 14 : index
    %c0_63 = arith.constant 0 : index
    %151 = vector.load %arg3[%c14, %c0_63] : memref<27x128xf32, #tpu.memory_space<vmem>>, vector<1x128xf32>
    %152 = vector.shape_cast %151 : vector<1x128xf32> to vector<128xf32>
    %153 = vector.shape_cast %150 : vector<240x128xf32> to vector<10x24x128xf32>
    %154 = vector.shape_cast %152 : vector<128xf32> to vector<1x1x128xf32>
    %155 = vector.broadcast %154 : vector<1x1x128xf32> to vector<10x24x128xf32>
    %156 = arith.mulf %153, %155 : vector<10x24x128xf32>
    %157 = arith.addf %149, %156 : vector<10x24x128xf32>
    %c2_64 = arith.constant 2 : index
    %c0_65 = arith.constant 0 : index
    %c0_66 = arith.constant 0 : index
    %158 = vector.load %arg8[%c2_64, %c0_65, %c0_66] : memref<12x24x128xf32, #tpu.memory_space<vmem>>, vector<10x24x128xf32>
    %159 = vector.shape_cast %158 : vector<10x24x128xf32> to vector<240x128xf32>
    %c1_i32_67 = arith.constant 1 : i32
    %160 = tpu.dynamic_rotate %159 by %c1_i32_67 dim 0 : vector<240x128xf32>, i32 -> vector<240x128xf32>
    %c15 = arith.constant 15 : index
    %c0_68 = arith.constant 0 : index
    %161 = vector.load %arg3[%c15, %c0_68] : memref<27x128xf32, #tpu.memory_space<vmem>>, vector<1x128xf32>
    %162 = vector.shape_cast %161 : vector<1x128xf32> to vector<128xf32>
    %163 = vector.shape_cast %160 : vector<240x128xf32> to vector<10x24x128xf32>
    %164 = vector.shape_cast %162 : vector<128xf32> to vector<1x1x128xf32>
    %165 = vector.broadcast %164 : vector<1x1x128xf32> to vector<10x24x128xf32>
    %166 = arith.mulf %163, %165 : vector<10x24x128xf32>
    %167 = arith.addf %157, %166 : vector<10x24x128xf32>
    %c16_69 = arith.constant 16 : index
    %c0_70 = arith.constant 0 : index
    %168 = vector.load %arg3[%c16_69, %c0_70] : memref<27x128xf32, #tpu.memory_space<vmem>>, vector<1x128xf32>
    %169 = vector.shape_cast %168 : vector<1x128xf32> to vector<128xf32>
    %170 = vector.shape_cast %159 : vector<240x128xf32> to vector<10x24x128xf32>
    %171 = vector.shape_cast %169 : vector<128xf32> to vector<1x1x128xf32>
    %172 = vector.broadcast %171 : vector<1x1x128xf32> to vector<10x24x128xf32>
    %173 = arith.mulf %170, %172 : vector<10x24x128xf32>
    %174 = arith.addf %167, %173 : vector<10x24x128xf32>
    %c239_i32_71 = arith.constant 239 : i32
    %175 = tpu.dynamic_rotate %159 by %c239_i32_71 dim 0 : vector<240x128xf32>, i32 -> vector<240x128xf32>
    %c17 = arith.constant 17 : index
    %c0_72 = arith.constant 0 : index
    %176 = vector.load %arg3[%c17, %c0_72] : memref<27x128xf32, #tpu.memory_space<vmem>>, vector<1x128xf32>
    %177 = vector.shape_cast %176 : vector<1x128xf32> to vector<128xf32>
    %178 = vector.shape_cast %175 : vector<240x128xf32> to vector<10x24x128xf32>
    %179 = vector.shape_cast %177 : vector<128xf32> to vector<1x1x128xf32>
    %180 = vector.broadcast %179 : vector<1x1x128xf32> to vector<10x24x128xf32>
    %181 = arith.mulf %178, %180 : vector<10x24x128xf32>
    %182 = arith.addf %174, %181 : vector<10x24x128xf32>
    %183 = vector.extract_strided_slice %182 {offsets = [0, 0, 0], sizes = [10, 16, 128], strides = [1, 1, 1]} : vector<10x24x128xf32> to vector<10x16x128xf32>
    %184 = vector.shape_cast %183 : vector<10x16x128xf32> to vector<160x128xf32>
    %185 = arith.truncf %184 : vector<160x128xf32> to vector<160x128xbf16>
    %c1_73 = arith.constant 1 : index
    %c0_74 = arith.constant 0 : index
    %c0_75 = arith.constant 0 : index
    %186 = vector.load %arg4[%c1_73, %c0_74, %c0_75] : memref<3x128x128xbf16, #tpu.memory_space<vmem>>, vector<1x128x128xbf16>
    %187 = vector.shape_cast %186 : vector<1x128x128xbf16> to vector<128x128xbf16>
    %cst_76 = arith.constant dense<0.000000e+00> : vector<160x128xf32>
    %188 = tpu.matmul %185, %187, %cst_76 {dimension_numbers = #tpu.dot_dimension_numbers<[1], [0], [0], [1], [0, 0, 1, 1], [], []>} : vector<160x128xbf16>, vector<128x128xbf16>, vector<160x128xf32> -> vector<160x128xf32>
    %c1_77 = arith.constant 1 : index
    %c0_78 = arith.constant 0 : index
    %c0_79 = arith.constant 0 : index
    %189 = vector.load %arg5[%c1_77, %c0_78, %c0_79] : memref<3x1x128xf32, #tpu.memory_space<vmem>>, vector<1x1x128xf32>
    %190 = vector.shape_cast %189 : vector<1x1x128xf32> to vector<1x128xf32>
    %191 = vector.broadcast %190 : vector<1x128xf32> to vector<160x128xf32>
    %192 = arith.addf %188, %191 : vector<160x128xf32>
    %cst_80 = arith.constant 0.000000e+00 : f32
    %cst_81 = arith.constant 6.000000e+00 : f32
    %193 = vector.broadcast %cst_80 : f32 to vector<160x128xf32>
    %194 = arith.maximumf %193, %192 : vector<160x128xf32>
    %195 = vector.broadcast %cst_81 : f32 to vector<160x128xf32>
    %196 = arith.minimumf %195, %194 : vector<160x128xf32>
    %197 = vector.shape_cast %196 : vector<160x128xf32> to vector<10x16x128xf32>
    %c0_82 = arith.constant 0 : index
    %c0_83 = arith.constant 0 : index
    %c0_84 = arith.constant 0 : index
    %198 = vector.load %arg9[%c0_82, %c0_83, %c0_84] : memref<10x24x128xf32, #tpu.memory_space<vmem>>, vector<10x16x128xf32>
    tpu.vector_store %arg9[%c0_82, %c0_83, %c0_84], %197 {strides = array<i32>} : memref<10x24x128xf32, #tpu.memory_space<vmem>>, vector<10x16x128xf32>,
    %c0_i32_85 = arith.constant 0 : i32
    %199 = arith.cmpi eq, %arg1, %c0_i32_85 : i32
    %200 = arith.extui %199 : i1 to i32
    %c0_i32_86 = arith.constant 0 : i32
    %201 = arith.cmpi ne, %200, %c0_i32_86 : i32
    scf.if %201 {
      %cst_126 = arith.constant 0.000000e+00 : f32
      %299 = vector.broadcast %cst_126 : f32 to vector<1x16x128xf32>
      %c0_127 = arith.constant 0 : index
      %c0_128 = arith.constant 0 : index
      %c0_129 = arith.constant 0 : index
      %300 = vector.load %arg9[%c0_127, %c0_128, %c0_129] : memref<10x24x128xf32, #tpu.memory_space<vmem>>, vector<1x16x128xf32>
      tpu.vector_store %arg9[%c0_127, %c0_128, %c0_129], %299 {strides = array<i32>} : memref<10x24x128xf32, #tpu.memory_space<vmem>>, vector<1x16x128xf32>,
    } else {
    }
    %c1_i32_87 = arith.constant 1 : i32
    %202 = arith.cmpi eq, %arg1, %c1_i32_87 : i32
    %203 = arith.extui %202 : i1 to i32
    %c0_i32_88 = arith.constant 0 : i32
    %204 = arith.cmpi ne, %203, %c0_i32_88 : i32
    scf.if %204 {
      %cst_126 = arith.constant 0.000000e+00 : f32
      %299 = vector.broadcast %cst_126 : f32 to vector<1x16x128xf32>
      %c9_127 = arith.constant 9 : index
      %c0_128 = arith.constant 0 : index
      %c0_129 = arith.constant 0 : index
      %300 = vector.load %arg9[%c9_127, %c0_128, %c0_129] : memref<10x24x128xf32, #tpu.memory_space<vmem>>, vector<1x16x128xf32>
      tpu.vector_store %arg9[%c9_127, %c0_128, %c0_129], %299 {strides = array<i32>} : memref<10x24x128xf32, #tpu.memory_space<vmem>>, vector<1x16x128xf32>,
    } else {
    }
    %cst_89 = arith.constant 0.000000e+00 : f32
    %205 = vector.broadcast %cst_89 : f32 to vector<8x24x128xf32>
    %c0_90 = arith.constant 0 : index
    %c0_91 = arith.constant 0 : index
    %c0_92 = arith.constant 0 : index
    %206 = vector.load %arg9[%c0_90, %c0_91, %c0_92] : memref<10x24x128xf32, #tpu.memory_space<vmem>>, vector<8x24x128xf32>
    %207 = vector.shape_cast %206 : vector<8x24x128xf32> to vector<192x128xf32>
    %c1_i32_93 = arith.constant 1 : i32
    %208 = tpu.dynamic_rotate %207 by %c1_i32_93 dim 0 : vector<192x128xf32>, i32 -> vector<192x128xf32>
    %c18 = arith.constant 18 : index
    %c0_94 = arith.constant 0 : index
    %209 = vector.load %arg3[%c18, %c0_94] : memref<27x128xf32, #tpu.memory_space<vmem>>, vector<1x128xf32>
    %210 = vector.shape_cast %209 : vector<1x128xf32> to vector<128xf32>
    %211 = vector.shape_cast %208 : vector<192x128xf32> to vector<8x24x128xf32>
    %212 = vector.shape_cast %210 : vector<128xf32> to vector<1x1x128xf32>
    %213 = vector.broadcast %212 : vector<1x1x128xf32> to vector<8x24x128xf32>
    %214 = arith.mulf %211, %213 : vector<8x24x128xf32>
    %215 = arith.addf %205, %214 : vector<8x24x128xf32>
    %c19 = arith.constant 19 : index
    %c0_95 = arith.constant 0 : index
    %216 = vector.load %arg3[%c19, %c0_95] : memref<27x128xf32, #tpu.memory_space<vmem>>, vector<1x128xf32>
    %217 = vector.shape_cast %216 : vector<1x128xf32> to vector<128xf32>
    %218 = vector.shape_cast %207 : vector<192x128xf32> to vector<8x24x128xf32>
    %219 = vector.shape_cast %217 : vector<128xf32> to vector<1x1x128xf32>
    %220 = vector.broadcast %219 : vector<1x1x128xf32> to vector<8x24x128xf32>
    %221 = arith.mulf %218, %220 : vector<8x24x128xf32>
    %222 = arith.addf %215, %221 : vector<8x24x128xf32>
    %c191_i32 = arith.constant 191 : i32
    %223 = tpu.dynamic_rotate %207 by %c191_i32 dim 0 : vector<192x128xf32>, i32 -> vector<192x128xf32>
    %c20 = arith.constant 20 : index
    %c0_96 = arith.constant 0 : index
    %224 = vector.load %arg3[%c20, %c0_96] : memref<27x128xf32, #tpu.memory_space<vmem>>, vector<1x128xf32>
    %225 = vector.shape_cast %224 : vector<1x128xf32> to vector<128xf32>
    %226 = vector.shape_cast %223 : vector<192x128xf32> to vector<8x24x128xf32>
    %227 = vector.shape_cast %225 : vector<128xf32> to vector<1x1x128xf32>
    %228 = vector.broadcast %227 : vector<1x1x128xf32> to vector<8x24x128xf32>
    %229 = arith.mulf %226, %228 : vector<8x24x128xf32>
    %230 = arith.addf %222, %229 : vector<8x24x128xf32>
    %c1_97 = arith.constant 1 : index
    %c0_98 = arith.constant 0 : index
    %c0_99 = arith.constant 0 : index
    %231 = vector.load %arg9[%c1_97, %c0_98, %c0_99] : memref<10x24x128xf32, #tpu.memory_space<vmem>>, vector<8x24x128xf32>
    %232 = vector.shape_cast %231 : vector<8x24x128xf32> to vector<192x128xf32>
    %c1_i32_100 = arith.constant 1 : i32
    %233 = tpu.dynamic_rotate %232 by %c1_i32_100 dim 0 : vector<192x128xf32>, i32 -> vector<192x128xf32>
    %c21 = arith.constant 21 : index
    %c0_101 = arith.constant 0 : index
    %234 = vector.load %arg3[%c21, %c0_101] : memref<27x128xf32, #tpu.memory_space<vmem>>, vector<1x128xf32>
    %235 = vector.shape_cast %234 : vector<1x128xf32> to vector<128xf32>
    %236 = vector.shape_cast %233 : vector<192x128xf32> to vector<8x24x128xf32>
    %237 = vector.shape_cast %235 : vector<128xf32> to vector<1x1x128xf32>
    %238 = vector.broadcast %237 : vector<1x1x128xf32> to vector<8x24x128xf32>
    %239 = arith.mulf %236, %238 : vector<8x24x128xf32>
    %240 = arith.addf %230, %239 : vector<8x24x128xf32>
    %c22 = arith.constant 22 : index
    %c0_102 = arith.constant 0 : index
    %241 = vector.load %arg3[%c22, %c0_102] : memref<27x128xf32, #tpu.memory_space<vmem>>, vector<1x128xf32>
    %242 = vector.shape_cast %241 : vector<1x128xf32> to vector<128xf32>
    %243 = vector.shape_cast %232 : vector<192x128xf32> to vector<8x24x128xf32>
    %244 = vector.shape_cast %242 : vector<128xf32> to vector<1x1x128xf32>
    %245 = vector.broadcast %244 : vector<1x1x128xf32> to vector<8x24x128xf32>
    %246 = arith.mulf %243, %245 : vector<8x24x128xf32>
    %247 = arith.addf %240, %246 : vector<8x24x128xf32>
    %c191_i32_103 = arith.constant 191 : i32
    %248 = tpu.dynamic_rotate %232 by %c191_i32_103 dim 0 : vector<192x128xf32>, i32 -> vector<192x128xf32>
    %c23 = arith.constant 23 : index
    %c0_104 = arith.constant 0 : index
    %249 = vector.load %arg3[%c23, %c0_104] : memref<27x128xf32, #tpu.memory_space<vmem>>, vector<1x128xf32>
    %250 = vector.shape_cast %249 : vector<1x128xf32> to vector<128xf32>
    %251 = vector.shape_cast %248 : vector<192x128xf32> to vector<8x24x128xf32>
    %252 = vector.shape_cast %250 : vector<128xf32> to vector<1x1x128xf32>
    %253 = vector.broadcast %252 : vector<1x1x128xf32> to vector<8x24x128xf32>
    %254 = arith.mulf %251, %253 : vector<8x24x128xf32>
    %255 = arith.addf %247, %254 : vector<8x24x128xf32>
    %c2_105 = arith.constant 2 : index
    %c0_106 = arith.constant 0 : index
    %c0_107 = arith.constant 0 : index
    %256 = vector.load %arg9[%c2_105, %c0_106, %c0_107] : memref<10x24x128xf32, #tpu.memory_space<vmem>>, vector<8x24x128xf32>
    %257 = vector.shape_cast %256 : vector<8x24x128xf32> to vector<192x128xf32>
    %c1_i32_108 = arith.constant 1 : i32
    %258 = tpu.dynamic_rotate %257 by %c1_i32_108 dim 0 : vector<192x128xf32>, i32 -> vector<192x128xf32>
    %c24 = arith.constant 24 : index
    %c0_109 = arith.constant 0 : index
    %259 = vector.load %arg3[%c24, %c0_109] : memref<27x128xf32, #tpu.memory_space<vmem>>, vector<1x128xf32>
    %260 = vector.shape_cast %259 : vector<1x128xf32> to vector<128xf32>
    %261 = vector.shape_cast %258 : vector<192x128xf32> to vector<8x24x128xf32>
    %262 = vector.shape_cast %260 : vector<128xf32> to vector<1x1x128xf32>
    %263 = vector.broadcast %262 : vector<1x1x128xf32> to vector<8x24x128xf32>
    %264 = arith.mulf %261, %263 : vector<8x24x128xf32>
    %265 = arith.addf %255, %264 : vector<8x24x128xf32>
    %c25 = arith.constant 25 : index
    %c0_110 = arith.constant 0 : index
    %266 = vector.load %arg3[%c25, %c0_110] : memref<27x128xf32, #tpu.memory_space<vmem>>, vector<1x128xf32>
    %267 = vector.shape_cast %266 : vector<1x128xf32> to vector<128xf32>
    %268 = vector.shape_cast %257 : vector<192x128xf32> to vector<8x24x128xf32>
    %269 = vector.shape_cast %267 : vector<128xf32> to vector<1x1x128xf32>
    %270 = vector.broadcast %269 : vector<1x1x128xf32> to vector<8x24x128xf32>
    %271 = arith.mulf %268, %270 : vector<8x24x128xf32>
    %272 = arith.addf %265, %271 : vector<8x24x128xf32>
    %c191_i32_111 = arith.constant 191 : i32
    %273 = tpu.dynamic_rotate %257 by %c191_i32_111 dim 0 : vector<192x128xf32>, i32 -> vector<192x128xf32>
    %c26 = arith.constant 26 : index
    %c0_112 = arith.constant 0 : index
    %274 = vector.load %arg3[%c26, %c0_112] : memref<27x128xf32, #tpu.memory_space<vmem>>, vector<1x128xf32>
    %275 = vector.shape_cast %274 : vector<1x128xf32> to vector<128xf32>
    %276 = vector.shape_cast %273 : vector<192x128xf32> to vector<8x24x128xf32>
    %277 = vector.shape_cast %275 : vector<128xf32> to vector<1x1x128xf32>
    %278 = vector.broadcast %277 : vector<1x1x128xf32> to vector<8x24x128xf32>
    %279 = arith.mulf %276, %278 : vector<8x24x128xf32>
    %280 = arith.addf %272, %279 : vector<8x24x128xf32>
    %281 = vector.extract_strided_slice %280 {offsets = [0, 0, 0], sizes = [8, 16, 128], strides = [1, 1, 1]} : vector<8x24x128xf32> to vector<8x16x128xf32>
    %282 = vector.shape_cast %281 : vector<8x16x128xf32> to vector<128x128xf32>
    %283 = arith.truncf %282 : vector<128x128xf32> to vector<128x128xbf16>
    %c2_113 = arith.constant 2 : index
    %c0_114 = arith.constant 0 : index
    %c0_115 = arith.constant 0 : index
    %284 = vector.load %arg4[%c2_113, %c0_114, %c0_115] : memref<3x128x128xbf16, #tpu.memory_space<vmem>>, vector<1x128x128xbf16>
    %285 = vector.shape_cast %284 : vector<1x128x128xbf16> to vector<128x128xbf16>
    %cst_116 = arith.constant dense<0.000000e+00> : vector<128x128xf32>
    %286 = tpu.matmul %283, %285, %cst_116 {dimension_numbers = #tpu.dot_dimension_numbers<[1], [0], [0], [1], [0, 0, 1, 1], [], []>} : vector<128x128xbf16>, vector<128x128xbf16>, vector<128x128xf32> -> vector<128x128xf32>
    %c2_117 = arith.constant 2 : index
    %c0_118 = arith.constant 0 : index
    %c0_119 = arith.constant 0 : index
    %287 = vector.load %arg5[%c2_117, %c0_118, %c0_119] : memref<3x1x128xf32, #tpu.memory_space<vmem>>, vector<1x1x128xf32>
    %288 = vector.shape_cast %287 : vector<1x1x128xf32> to vector<1x128xf32>
    %289 = vector.broadcast %288 : vector<1x128xf32> to vector<128x128xf32>
    %290 = arith.addf %286, %289 : vector<128x128xf32>
    %cst_120 = arith.constant 0.000000e+00 : f32
    %cst_121 = arith.constant 6.000000e+00 : f32
    %291 = vector.broadcast %cst_120 : f32 to vector<128x128xf32>
    %292 = arith.maximumf %291, %290 : vector<128x128xf32>
    %293 = vector.broadcast %cst_121 : f32 to vector<128x128xf32>
    %294 = arith.minimumf %293, %292 : vector<128x128xf32>
    %295 = vector.shape_cast %294 : vector<128x128xf32> to vector<8x16x128xf32>
    %c0_122 = arith.constant 0 : index
    %c0_123 = arith.constant 0 : index
    %c0_124 = arith.constant 0 : index
    %c0_125 = arith.constant 0 : index
    %296 = vector.load %arg6[%c0_122, %c0_123, %c0_124, %c0_125] : memref<1x8x16x128xf32, #tpu.memory_space<vmem>>, vector<1x8x16x128xf32>
    %297 = vector.shape_cast %296 : vector<1x8x16x128xf32> to vector<8x16x128xf32>
    %298 = vector.shape_cast %295 : vector<8x16x128xf32> to vector<1x8x16x128xf32>
    tpu.vector_store %arg6[%c0_122, %c0_123, %c0_124, %c0_125], %298 {strides = array<i32>} : memref<1x8x16x128xf32, #tpu.memory_space<vmem>>, vector<1x8x16x128xf32>,
    return
  }
  func.func @transform_1(%arg0: i32, %arg1: i32) -> (i32, i32) {
    %c0_i32 = arith.constant 0 : i32
    %c0_i32_0 = arith.constant 0 : i32
    %c0_i32_1 = arith.constant 0 : i32
    return %c0_i32, %c0_i32_0 : i32, i32
  }
  func.func @transform_2(%arg0: i32, %arg1: i32) -> (i32, i32, i32) {
    %c0_i32 = arith.constant 0 : i32
    %c0_i32_0 = arith.constant 0 : i32
    %c0_i32_1 = arith.constant 0 : i32
    %c0_i32_2 = arith.constant 0 : i32
    return %c0_i32, %c0_i32_0, %c0_i32_1 : i32, i32, i32
  }
  func.func @transform_3(%arg0: i32, %arg1: i32) -> (i32, i32, i32) {
    %c0_i32 = arith.constant 0 : i32
    %c0_i32_0 = arith.constant 0 : i32
    %c0_i32_1 = arith.constant 0 : i32
    %c0_i32_2 = arith.constant 0 : i32
    return %c0_i32, %c0_i32_0, %c0_i32_1 : i32, i32, i32
  }
  func.func @transform_4(%arg0: i32, %arg1: i32) -> (i32, i32, i32, i32) {
    %c0_i32 = arith.constant 0 : i32
    %c0_i32_0 = arith.constant 0 : i32
    %c0_i32_1 = arith.constant 0 : i32
    return %arg0, %arg1, %c0_i32, %c0_i32_0 : i32, i32, i32, i32
  }
}

</mosaic_0001>

<bundles_post_ra>
// kernel: tpu_custom_call.1
= control target key start
LH: loop header
LB: loop body
LE: loop exit
PB: predicated region body
PF: predicated region fallthrough
CT: control target
= control target key end

     0   :  { %s6022_s0 = inlined_call_operand.hbm [shape: f32[2,22,24,128], index: 0, kind: input, shape index: {}]   ;;  %s6023_s1 = inlined_call_operand.hbm [shape: f32[27,128], index: 1, kind: input, shape index: {}]   ;;  %s6024_s2 = inlined_call_operand.hbm [shape: bf16[3,128,128], index: 2, kind: input, shape index: {}]   ;;  %s6025_s3 = inlined_call_operand.vmem [shape: f32[3,1,128], index: 3, kind: input, shape index: {}]   ;;  %s6026_s4 = inlined_call_operand.hbm [shape: f32[2,16,16,128], index: 4, kind: output, shape index: {}]  }
   0x1   :  { %6038 = sst [smem:[#allocation23_spill]] %s6023_s1 }
   0x2   :  { %6039 = sst [smem:[#allocation24_spill]] %s6024_s2 }
   0x3   :  { %9 = vsyncpa [#allocation7], 0 }
   0x4   :  { %10 = vsyncpa [#allocation10], 0 }
   0x5   :  { %11 = vsyncpa [#allocation8], 0 }
   0x6   :  { %13 = vsyncpa [#allocation8 + $0x1], 0  ;;  %s4161_s15 = smov 0   ;;  %s4163_s16 = smov 0  }
   0x7   :  { %s4165_s17 = smov 0   ;;  %s4167_s18 = smov 0  }
   0x8   :  { %s4169_s19 = smov 0   ;;  %s4171_s20 = smov 0  }
   0x9   :  { %s4173_s21 = smov 0   ;;  %s4175_s22 = smov 0  }
   0xa LB: > { %s3542_s23 = sadd.s32 4294967295, %s4119_s22   ;;  %s3543_s24 = sadd.s32 4294967294, %s4119_s22   ;;  %s4119_s22 = sphi %s4175_s22, %s19_s22   ;;  %s4115_s21 = sphi %s4173_s21, %s6067_s21   ;;  %s4111_s20 = sphi %s4171_s20, %s6066_s20   ;;  %s4107_s19 = sphi %s4169_s19, %s6065_s19   ;;  %s4103_s18 = sphi %s4167_s18, %s6064_s18   ;;  %s4099_s17 = sphi %s4165_s17, %s6063_s17   ;;  %s4095_s16 = sphi %s4163_s16, %s6062_s16   ;;  %s4091_s15 = sphi %s4161_s15, %s6061_s15  }
   0xb   : > { %s28_s25 = sadd.s32 1, %s4111_s20  ;;  %s31_s26 = sadd.s32 1, %s4115_s21 }
   0xc   : > { %p29_p0 = scmp.ge.s32.totalorder %s28_s25, 2  ;;  %s103_s27 = sadd.s32 1, %s4099_s17 }
   0xd   : > { %p113_p1 = scmp.ne.s32.totalorder %s4099_s17, %s4095_s16  ;;  %p114_p2 = scmp.eq.s32.totalorder %s3542_s23, 3 }
   0xe   : > { %s6069_s25 = smov (%p29_p0, %s28_s25), 0  ;;  %s6071_s26 = smov (!%p29_p0, %s31_s26), %s4115_s21 }
   0xf   : > { %s99_s28 = ssub.s32 %s4111_s20, %s6069_s25  ;;  %p4213_p3 = por %p114_p2, %p113_p1 }
  0x10   : > { %p33_p4 = scmp.ge.s32.totalorder %s6071_s26, 2  ;;  %p119_p5 = scmp.ne.s32.totalorder %s4095_s16, %s4091_s15 }
  0x11   : > { %p120_p6 = scmp.eq.s32.totalorder %s3543_s24, 3  ;;  %p3544_p7 = scmp.ge.s32.totalorder %s4119_s22, 1 }
  0x12   : > { %s6073_s26 = smov (%p33_p4, %s6071_s26), 0  ;;  %p127_p9 = scmp.lt.s32.totalorder %s4119_s22, 5 }
  0x13   : > { %6041 = sst [smem:[#allocation20_spill]] %s6073_s26  ;;  %p4222_p8 = por %p120_p6, %p119_p5 }
  0x14   : > { %s98_s5 = ssub.s32 %s4115_s21, %s6073_s26  ;;  %p4229_p10 = pnand %p3544_p7, %p127_p9 }
  0x15   : > { %s100_s6 = sor.u32 %s99_s28, %s98_s5  ;;  %p4233_p12 = scmp.eq.s32.totalorder %s3542_s23, 0 }
  0x16   : > { %p101_p11 = scmp.eq.s32.totalorder %s100_s6, 0  ;;  %p3811_p13 = pneg %p4229_p10 }
  0x17   : > { %s4121_s10 = smov [#allocation6]  }
  0x18   : > { %s4240_s9 = scalar_select %p101_p11, %s4099_s17, %s103_s27  }
  0x19   : > { %s139_s11 = sshll.u32 %s4121_s10, 4  ;;  %p4244_p0 = pnand %p4233_p12, %p3811_p13  ;;  %s140_s11 = int_to_ptr.vmem [resolvable:$true] %s139_s11 }
  0x1a   : > { %s3954_s13 = scalar_lea.vmem %s140_s11, 512  ;;  %p3962_p6 = scmp.lt.s32.totalorder %s140_s11, %s140_s11 }
  0x1b   : > { %p3945_p1 = pneg %p4244_p0  ;;  %p3955_p2 = scmp.ne.s32.totalorder %s140_s11, %s3954_s13 }
  0x1c   : > { %p3963_p7 = scmp.lt.s32.totalorder %s3954_s13, %s3954_s13 }
  0x1d   : > { %p3957_p4 = pnand %p3955_p2, %p3945_p1 }
  0x1e   : > { %p3964_p9 = por %p3963_p7, %p3962_p6 }
  0x1f   : > { %p3958_p5 = pneg %p3957_p4 }
  0x21   : > { %p3965_p11 = pnand %p3964_p9, %p3958_p5 }
  0x23   : > { %3968 = shalt.err (!%p3965_p11)
}
  0x24   : > { %s4122_s14 = smov 128   ;;  %s4123_s23 = smov 8  }
  0x25   : > { %s6046_s1 = sld [smem:[#allocation23_spill]]  ;;  %s4124_s28 = smov [#allocation9]  }
  0x26   : > { %s152_s5 = sshll.u32 %s4124_s28, 4  ;;  %s153_s5 = int_to_ptr.vmem [resolvable:$true] %s152_s5 }
  0x27   : > { %s3980_s6 = scalar_lea.vmem %s153_s5, 3072  ;;  %p3988_p5 = scmp.lt.s32.totalorder %s153_s5, %s153_s5 }
  0x28   : > { %p3981_p13 = scmp.ne.s32.totalorder %s153_s5, %s3980_s6  ;;  %p3989_p6 = scmp.lt.s32.totalorder %s3980_s6, %s3980_s6 }
  0x2a   : > { %p3983_p2 = pnand %p3981_p13, %p3945_p1  ;;  %p3990_p7 = por %p3989_p6, %p3988_p5 }
  0x2b   : > { %3814 = dma.hbm_to_vmem [thread:$0]  (!%p4244_p0), %s6046_s1, 512, %s140_s11, [#allocation7], %s4122_s14, %s4122_s14, %s4123_s23  }
  0x2c   : > { %p3984_p4 = pneg %p3983_p2 }
  0x2e   : > { %p3991_p9 = pnand %p3990_p7, %p3984_p4 }
  0x30   : > { %3994 = shalt.err (!%p3991_p9)
}
  0x31   : > { %s4125_s10 = smov 64   ;;  %s4126_s13 = smov 4  }
  0x32   : > { %s6047_s2 = sld [smem:[#allocation24_spill]] }
  0x34   : > { %171 = sbr.rel (%p4229_p10) target bundleno = 1129 (0x469), region = 32 }
  0x38   : > { %3817 = dma.hbm_to_vmem [thread:$0]  (!%p4244_p0), %s6047_s2, 3072, %s153_s5, [#allocation10], %s4125_s10, %s4125_s10, %s4126_s13  }
  0x39   : > { %4076 = dma.done.wait (%p4233_p12), [#allocation7], 512  }
  0x3a   : > { %4078 = vsyncadd (%p4233_p12), [#allocation7], 4294966784 }
  0x3b   : > { %4080 = dma.done.wait (%p4233_p12), [#allocation10], 3072  }
  0x3c   : > { %4082 = vsyncadd (%p4233_p12), [#allocation10], 4294964224  ;;  %s6027_s12 = sand.u32 1, %s4095_s16   ;;  %s3552_s14 = smul.u32 192, %s4103_s18  ;;  %v4127_v0 = vmov 0.0  }
  0x3d   : > { %s4280_s7 = sshll.u32 %s6027_s12, 7  ;;  %s198_s23 = smul.u32 528, %s4107_s19  ;;  %213 = vst [vmem:[#allocation3 + $0x78] sm:$0xff] %v4127_v0  ;;  %214 = vst [vmem:[#allocation3 + $0xa8] sm:$0xff] %v4127_v0 }
  0x3e   : > { %215 = vst [vmem:[#allocation3 + $0x40] sm:$0xff] %v4127_v0  ;;  %216 = vst [vmem:[#allocation3 + $0xe8] sm:$0xff] %v4127_v0  ;;  %s4128_s27 = smov [#allocation2]   ;;  %s3997_s1 = scalar_lea.hbm %s6022_s0, 16896 }
  0x3f   : > { %217 = vst [vmem:[#allocation3 + $0xf8] sm:$0xff] %v4127_v0  ;;  %218 = vst [vmem:[#allocation3 + $0x8] sm:$0xff] %v4127_v0  ;;  %s199_s8 = sadd.s32 %s3552_s14, %s198_s23  ;;  %s209_s28 = sshll.u32 %s4128_s27, 4  ;;  %s210_s28 = int_to_ptr.vmem [resolvable:$true] %s209_s28 }
  0x40   : > { %219 = vst [vmem:[#allocation3 + $0xa0] sm:$0xff] %v4127_v0  ;;  %220 = vst [vmem:[#allocation3 + $0x58] sm:$0xff] %v4127_v0  ;;  %s3553_s5 = sshll.u32 %s199_s8, 4 }
  0x41   : > { %221 = vst [vmem:[#allocation3 + $0x30] sm:$0xff] %v4127_v0  ;;  %222 = vst [vmem:[#allocation3 + $0x108] sm:$0xff] %v4127_v0  ;;  %s201_s13 = scalar_lea.hbm %s6022_s0, %s3553_s5 }
  0x42   : > { %223 = vst [vmem:[#allocation3 + $0x110] sm:$0xff] %v4127_v0  ;;  %224 = vst [vmem:[#allocation3 + $0x50] sm:$0xff] %v4127_v0  ;;  %s3995_s24 = scalar_lea.hbm %s201_s13, 5376  ;;  %p3998_p12 = scmp.lt.s32.totalorder %s201_s13, %s6022_s0 }
  0x43   : > { %225 = vst [vmem:[#allocation4 + $0x48] sm:$0xff] %v4127_v0  ;;  %226 = vst [vmem:[#allocation4 + $0xb0] sm:$0xff] %v4127_v0  ;;  %p3996_p10 = scmp.ne.s32.totalorder %s201_s13, %s3995_s24  ;;  %p3999_p0 = scmp.lt.s32.totalorder %s3997_s1, %s3995_s24 }
  0x44   : > { %227 = vst [vmem:[#allocation4 + $0xe0] sm:$0xff] %v4127_v0  ;;  %228 = vst [vmem:[#allocation4 + $0x38] sm:$0xff] %v4127_v0 }
  0x45   : > { %229 = vst [vmem:[#allocation4 + $0x28] sm:$0xff] %v4127_v0  ;;  %230 = vst [vmem:[#allocation4 + $0x60] sm:$0xff] %v4127_v0  ;;  %p4000_p1 = por %p3999_p0, %p3998_p12 }
  0x46   : > { %231 = vst [vmem:[#allocation4 + $0x8] sm:$0xff] %v4127_v0  ;;  %232 = vst [vmem:[#allocation4 + $0x80] sm:$0xff] %v4127_v0 }
  0x47   : > { %233 = vst [vmem:[#allocation4 + $0xc0] sm:$0xff] %v4127_v0  ;;  %234 = vst [vmem:[#allocation4 + $0x90] sm:$0xff] %v4127_v0  ;;  %p4001_p11 = pnand %p4000_p1, %p3996_p10 }
  0x49   : > { %4004 = shalt.err (!%p4001_p11)  }
  0x4a   : > { %s4005_s14 = scalar_lea.vmem %s210_s28, 5376  ;;  %p4010_p2 = scmp.lt.s32.totalorder %s210_s28, %s210_s28 }
  0x4b   : > { %p4006_p13 = scmp.ne.s32.totalorder %s210_s28, %s4005_s14  ;;  %p4011_p4 = scmp.lt.s32.totalorder %s4005_s14, %s4005_s14 }
  0x4d   : > { %p4012_p5 = por %p4011_p4, %p4010_p2 }
  0x4f   : > { %p4013_p6 = pnand %p4012_p5, %p4006_p13 }
  0x51   : > { %4016 = shalt.err (!%p4013_p6)  }
  0x52   : > { %212 = dma.hbm_to_vmem [thread:$0]  %s201_s13, 5376, %s210_s28, [#allocation5] }
  0x53   : > { %s4293_s23 = scalar_lea.vmem [#allocation11], %s4280_s7 }
  0x54   : > { %4083 = dma.done.wait [#allocation5], 5376 }
  0x55   : > { %4084 = vsyncadd [#allocation5], 4294961920  ;;  %v3905_v1 = vld [vmem:[#allocation9 + $0x38] sm:$0xff]   ;;  %v311_v2 = vlaneseq  ;;  %v3906_v3 = vld [vmem:[#allocation9 + $0x30] sm:$0xff]   ;;  %p3572_p7 = scmp.ne.s32.totalorder %s4103_s18, 0 }
  0x56   : > { %3677 = vmatprep.subr.bf16.mxu0 %v3905_v1  ;;  %v3907_v4 = vld [vmem:[#allocation9 + $0x28] sm:$0xff]   ;;  %v3908_v6 = vld [vmem:[#allocation9 + $0x20] sm:$0xff]   ;;  %v4297_v9 = vld [vmem:[#allocation2 + $0x10] sm:$0xff] }
  0x57   : > { %3678 = vmatpush3.bf16.msra.mxu0 %v3905_v1  ;;  %v4295_v5 = vshrl.u32 %v311_v2, 7  ;;  %v239_v7 = vld [vmem:[#allocation2] sm:$0xff]  ;;  %v240_v8 = vld [vmem:[#allocation2 + $0x8] sm:$0xff]  ;;  %v4301_v10 = vld [vmem:[#allocation2 + $0x118] sm:$0xff]  ;;  %v277_v13 = vrot.slane %v4297_v9, 7  ;;  %v446_v19 = vrot.slane %v4297_v9, 1 }
  0x58   : > { %3679 = vmatprep.subr.bf16.mxu0 %v3906_v3  ;;  %v275_v11 = vrot.slane %v239_v7, 7  ;;  %v276_v12 = vrot.slane %v240_v8, 7  ;;  %v4304_v14 = vld [vmem:[#allocation6] ss:$0 sm:$0xff]  ;;  %v310_v15 = vrot.slane %v4301_v10, 7  ;;  %v444_v17 = vrot.slane %v239_v7, 1 }
  0x59   : > { %vm313_vm0 = vcmp.lt.s32.totalorder %v4295_v5, 1  ;;  %vm480_vm1 = vcmp.lt.s32.totalorder %v4295_v5, 7  ;;  %v4307_v16 = vld [vmem:[#allocation6 + $0x1] ss:$0 sm:$0xff]  ;;  %v445_v18 = vrot.slane %v240_v8, 1  ;;  %v4316_v24 = vld [vmem:[#allocation2 + $0x18] sm:$0xff] }
  0x5a   : > { %v336_v20 = vsel %vm313_vm0, %v275_v11, %v276_v12  ;;  %v396_v21 = vmul.f32 %v4307_v16, %v239_v7  ;;  %v397_v22 = vmul.f32 %v4307_v16, %v240_v8  ;;  %v4314_v23 = vld [vmem:[#allocation6 + $0x2] ss:$0 sm:$0xff]  ;;  %v479_v26 = vrot.slane %v4301_v10, 1  ;;  %v3909_v27 = vld [vmem:[#allocation9 + $0x18] sm:$0xff]   ;;  %v594_v32 = vld [vmem:[#allocation2 + $0x130] sm:$0xff] }
  0x5b   : > { %3680 = vmatpush3.bf16.msra.mxu0 %v3906_v3  ;;  %v4318_v25 = vld [vmem:[#allocation2 + $0x20] sm:$0xff]  ;;  %v337_v28 = vsel %vm313_vm0, %v310_v15, %v275_v11  ;;  %v344_v29 = vmul.f32 %v4304_v14, %v336_v20  ;;  %v503_v30 = vsel %vm480_vm1, %v445_v18, %v446_v19  ;;  %v504_v31 = vsel %vm480_vm1, %v444_v17, %v445_v18  ;;  %v4331_v36 = vld [vmem:[#allocation2 + $0x28] sm:$0xff]  ;;  %v4345_v48 = vld [vmem:[#allocation2 + $0x30] sm:$0xff] }
  0x5c   : > { %3681 = vmatprep.subr.bf16.mxu0 %v3907_v4  ;;  %v343_v33 = vmul.f32 %v4304_v14, %v337_v28  ;;  %v510_v34 = vmul.f32 %v4314_v23, %v504_v31  ;;  %v511_v35 = vmul.f32 %v4314_v23, %v503_v30  ;;  %v595_v37 = vrot.slane %v4316_v24, 7  ;;  %v4334_v38 = vld [vmem:[#allocation6 + $0x4] ss:$0 sm:$0xff]  ;;  %v4338_v43 = vld [vmem:[#allocation6 + $0x3] ss:$0 sm:$0xff]  ;;  %v4347_v49 = vld [vmem:[#allocation2 + $0x38] sm:$0xff] }
  0x5d   : > { %v421_v39 = vadd.f32 %v397_v22, %v344_v29  ;;  %v596_v40 = vrot.slane %v4318_v25, 7  ;;  %v597_v41 = vrot.slane %v4331_v36, 7  ;;  %v630_v42 = vrot.slane %v594_v32, 7  ;;  %v4349_v50 = vld [vmem:[#allocation2 + $0x40] sm:$0xff]  ;;  %v3910_v51 = vld [vmem:[#allocation9 + $0x10] sm:$0xff]   ;;  %v910_v61 = vld [vmem:[#allocation2 + $0x148] sm:$0xff] }
  0x5e   : > { %v420_v44 = vadd.f32 %v396_v21, %v343_v33  ;;  %v713_v45 = vmul.f32 %v4334_v38, %v4316_v24  ;;  %v714_v46 = vmul.f32 %v4334_v38, %v4318_v25  ;;  %v761_v47 = vrot.slane %v4316_v24, 1  ;;  %v4356_v56 = vld [vmem:[#allocation6 + $0x5] ss:$0 sm:$0xff]  ;;  %v4361_v62 = vld [vmem:[#allocation6 + $0x7] ss:$0 sm:$0xff]  ;;  %v3911_v11 = vld [vmem:[#allocation9 + $0x8] sm:$0xff]  }
  0x5f   : > { %3682 = vmatpush3.bf16.msra.mxu0 %v3907_v4  ;;  %v535_v52 = vadd.f32 %v511_v35, %v421_v39  ;;  %v653_v53 = vsel %vm313_vm0, %v595_v37, %v596_v40  ;;  %v654_v54 = vsel %vm313_vm0, %v630_v42, %v595_v37  ;;  %v762_v55 = vrot.slane %v4318_v25, 1  ;;  %v4368_v3 = vld [vmem:[#allocation6 + $0x6] ss:$0 sm:$0xff]  ;;  %v4389_v31 = vld [vmem:[#allocation6 + $0x8] ss:$0 sm:$0xff]  ;;  %v3921_v10 = vld [vmem:[#allocation2 + $0x130] sm:$0xff] }
  0x60   : > { %3683 = vmatprep.subr.bf16.mxu0 %v3908_v6  ;;  %v534_v57 = vadd.f32 %v510_v34, %v420_v44  ;;  %v660_v58 = vmul.f32 %v4338_v43, %v654_v54  ;;  %v661_v59 = vmul.f32 %v4338_v43, %v653_v53  ;;  %v763_v60 = vrot.slane %v4331_v36, 1  ;;  %v3912_v39 = vld [vmem:[#allocation9] sm:$0xff]  }
  0x61   : > { %v820_v63 = vsel %vm480_vm1, %v761_v47, %v762_v55  ;;  %v911_v0 = vrot.slane %v4345_v48, 7  ;;  %v912_v1 = vrot.slane %v4347_v49, 7  ;;  %v913_v2 = vrot.slane %v4349_v50, 7 }
  0x62   : > { %v684_v4 = vadd.f32 %v660_v58, %v534_v57  ;;  %v819_v7 = vsel %vm480_vm1, %v762_v55, %v763_v60  ;;  %v826_v8 = vmul.f32 %v4356_v56, %v820_v63  ;;  %v946_v15 = vrot.slane %v910_v61, 7 }
  0x63   : > { %3684 = vmatpush3.bf16.msra.mxu0 %v3908_v6  ;;  %v685_v6 = vadd.f32 %v661_v59, %v535_v52  ;;  %v827_v12 = vmul.f32 %v4356_v56, %v819_v7  ;;  %v4376_v17 = vsel %vm313_vm0, %v911_v0, %v912_v1  ;;  %v1029_v18 = vmul.f32 %v4361_v62, %v4345_v48  ;;  %v4419_v59 = vld [vmem:[#allocation2 + $0x48] sm:$0xff] }
  0x64   : > { %3685 = vmatprep.subr.bf16.mxu0 %v3909_v27  ;;  %v737_v19 = vadd.f32 %v713_v45, %v684_v4  ;;  %v977_v21 = vmul.f32 %v4368_v3, %v4376_v17  ;;  %v1030_v22 = vmul.f32 %v4361_v62, %v4347_v49  ;;  %v1077_v28 = vrot.slane %v4345_v48, 1 }
  0x65   : > { %v738_v20 = vadd.f32 %v714_v46, %v685_v6  ;;  %v1078_v29 = vrot.slane %v4347_v49, 1  ;;  %v1079_v30 = vrot.slane %v4349_v50, 1  ;;  %v335_v35 = vsel %vm313_vm0, %v277_v13, %v595_v37 }
  0x66   : > { %v850_v32 = vadd.f32 %v826_v8, %v737_v19  ;;  %v345_v44 = vmul.f32 %v4304_v14, %v335_v35  ;;  %v346_v45 = vmul.f32 %v4304_v14, %v653_v53  ;;  %v398_v37 = vmul.f32 %v4307_v16, %v4316_v24  ;;  %v880_v8 = vld [vmem:[#allocation2 + $0x58] sm:$0xff] }
  0x67   : > { %3686 = vmatpush3.bf16.msra.mxu0 %v3909_v27  ;;  %v970_v27 = vsel %vm313_vm0, %v946_v15, %v911_v0  ;;  %v851_v33 = vadd.f32 %v827_v12, %v738_v20  ;;  %v4398_v40 = vsel %vm480_vm1, %v1078_v29, %v1079_v30  ;;  %v1136_v42 = vsel %vm480_vm1, %v1077_v28, %v1078_v29 }
  0x68   : > { %3687 = vmatprep.subr.bf16.mxu0 %v3910_v51  ;;  %v976_v34 = vmul.f32 %v4368_v3, %v970_v27  ;;  %v1142_v9 = vmul.f32 %v4389_v31, %v1136_v42  ;;  %v1143_v13 = vmul.f32 %v4389_v31, %v4398_v40  ;;  %v512_v52 = vmul.f32 %v4314_v23, %v820_v63  ;;  %v4424_v63 = vld [vmem:[#allocation2 + $0x50] sm:$0xff] }
  0x69   : > { %v1001_v47 = vadd.f32 %v977_v21, %v851_v33  ;;  %v513_v54 = vmul.f32 %v4314_v23, %v819_v7  ;;  %v652_v57 = vsel %vm313_vm0, %v597_v41, %v911_v0  ;;  %v663_v58 = vmul.f32 %v4338_v43, %v4376_v17 }
  0x6a   : > { %v1000_v46 = vadd.f32 %v976_v34, %v850_v32  ;;  %v422_v24 = vadd.f32 %v398_v37, %v345_v44  ;;  %v662_v60 = vmul.f32 %v4338_v43, %v652_v57  ;;  %v715_v61 = vmul.f32 %v4334_v38, %v4345_v48 }
  0x6b   : > { %3688 = vmatpush3.bf16.msra.mxu0 %v3910_v51  ;;  %v399_v51 = vmul.f32 %v4307_v16, %v4318_v25  ;;  %v1054_v53 = vadd.f32 %v1030_v22, %v1001_v47  ;;  %v716_v41 = vmul.f32 %v4334_v38, %v4347_v49  ;;  %v828_v0 = vmul.f32 %v4356_v56, %v1136_v42 }
  0x6c   : > { %3689 = vmatprep.subr.bf16.mxu0 %v3911_v11  ;;  %v1053_v55 = vadd.f32 %v1029_v18, %v1000_v46  ;;  %v536_v4 = vadd.f32 %v512_v52, %v422_v24  ;;  %v829_v7 = vmul.f32 %v4356_v56, %v4398_v40  ;;  %v915_v15 = vrot.slane %v4424_v63, 7 }
  0x6d   : > { %v423_v25 = vadd.f32 %v399_v51, %v346_v45  ;;  %v1167_v36 = vadd.f32 %v1143_v13, %v1054_v53  ;;  %v916_v18 = vrot.slane %v880_v8, 7  ;;  %v1031_v19 = vmul.f32 %v4361_v62, %v4419_v59 }
  0x6e   : > { %v1166_v1 = vadd.f32 %v1142_v9, %v1053_v55  ;;  %v686_v20 = vadd.f32 %v662_v60, %v536_v4  ;;  %v1032_v27 = vmul.f32 %v4361_v62, %v4424_v63  ;;  %v1080_v30 = vrot.slane %v4419_v59, 1 }
  0x6f   : > { %3690 = vmatpush3.bf16.msra.mxu0 %v3911_v11  ;;  %v537_v6 = vadd.f32 %v513_v54, %v423_v25  ;;  %v914_v11 = vrot.slane %v4419_v59, 7  ;;  %v1081_v32 = vrot.slane %v4424_v63, 1  ;;  %v1082_v35 = vrot.slane %v880_v8, 1 }
  0x70   : > { %3691 = vmatprep.subr.bf16.mxu0 %v3912_v39  ;;  %v1190_v12 = vpack.c.bf16 %v1167_v36, %v1166_v1  ;;  %v739_v33 = vadd.f32 %v715_v61, %v686_v20  ;;  %v348_v44 = vmul.f32 %v4304_v14, %v4376_v17  ;;  %v400_v45 = vmul.f32 %v4307_v16, %v4345_v48  ;;  %v4471_v61 = vld [vmem:[#allocation2 + $0x70] sm:$0xff] }
  0x71   : > { %v687_v21 = vadd.f32 %v663_v58, %v537_v6  ;;  %v968_v22 = vsel %vm313_vm0, %v913_v2, %v914_v11  ;;  %v967_v28 = vsel %vm313_vm0, %v914_v11, %v915_v15  ;;  %v1134_v2 = vsel %vm480_vm1, %v1080_v30, %v1081_v32 }
  0x72   : > { %3693 = vmatprep.mubr.bf16.mxu0 %v1190_v12  ;;  %v978_v29 = vmul.f32 %v4368_v3, %v968_v22  ;;  %v979_v50 = vmul.f32 %v4368_v3, %v967_v28  ;;  %v852_v46 = vadd.f32 %v828_v0, %v739_v33  ;;  %v1133_v9 = vsel %vm480_vm1, %v1081_v32, %v1082_v35 }
  0x73   : > { %3692 = vmatpush3.bf16.msra.mxu0 %v3912_v39  ;;  %v740_v34 = vadd.f32 %v716_v41, %v687_v21  ;;  %v347_v39 = vmul.f32 %v4304_v14, %v652_v57  ;;  %v1144_v13 = vmul.f32 %v4389_v31, %v1134_v2  ;;  %v1145_v37 = vmul.f32 %v4389_v31, %v1133_v9  ;;  %v4464_v57 = vld [vmem:[#allocation2 + $0x60] sm:$0xff] }
  0x74   : > { %v401_v51 = vmul.f32 %v4307_v16, %v4347_v49  ;;  %v514_v54 = vmul.f32 %v4314_v23, %v1136_v42  ;;  %v1002_v55 = vadd.f32 %v978_v29, %v852_v46  ;;  %v515_v48 = vmul.f32 %v4314_v23, %v4398_v40  ;;  %v4469_v49 = vld [vmem:[#allocation2 + $0x68] sm:$0xff] }
  0x75   : > { %v853_v47 = vadd.f32 %v829_v7, %v740_v34  ;;  %v424_v52 = vadd.f32 %v400_v45, %v347_v39  ;;  %v664_v53 = vmul.f32 %v4338_v43, %v968_v22  ;;  %v665_v25 = vmul.f32 %v4338_v43, %v967_v28 }
  0x76   : > { %v425_v58 = vadd.f32 %v401_v51, %v348_v44  ;;  %v717_v60 = vmul.f32 %v4334_v38, %v4419_v59  ;;  %v1055_v42 = vadd.f32 %v1031_v19, %v1002_v55  ;;  %v718_v40 = vmul.f32 %v4334_v38, %v4424_v63 }
  0x77   : > { %v1003_v17 = vadd.f32 %v979_v50, %v853_v47  ;;  %v538_v24 = vadd.f32 %v514_v54, %v424_v52  ;;  %v830_v36 = vmul.f32 %v4356_v56, %v1134_v2  ;;  %v831_v4 = vmul.f32 %v4356_v56, %v1133_v9 }
  0x78   : > { %v539_v41 = vadd.f32 %v515_v48, %v425_v58  ;;  %v917_v6 = vrot.slane %v4464_v57, 7  ;;  %v1168_v7 = vadd.f32 %v1144_v13, %v1055_v42  ;;  %v918_v11 = vrot.slane %v4469_v49, 7 }
  0x79   : > { %v1056_v1 = vadd.f32 %v1032_v27, %v1003_v17  ;;  %v688_v0 = vadd.f32 %v664_v53, %v538_v24  ;;  %v919_v12 = vrot.slane %v4471_v61, 7  ;;  %v1033_v21 = vmul.f32 %v4361_v62, %v4464_v57  ;;  %v4509_v24 = vld [vmem:[#allocation2 + $0x78] sm:$0xff] }
  0x7a   : > { %v689_v15 = vadd.f32 %v665_v25, %v539_v41  ;;  %v966_v20 = vsel %vm313_vm0, %v916_v18, %v917_v6  ;;  %v965_v29 = vsel %vm313_vm0, %v917_v6, %v918_v11  ;;  %v1034_v32 = vmul.f32 %v4361_v62, %v4469_v49  ;;  %v4511_v25 = vld [vmem:[#allocation2 + $0x80] sm:$0xff]  ;;  %v886_v41 = vld [vmem:[#allocation2 + $0x88] sm:$0xff] }
  0x7b   : > { %v1169_v8 = vadd.f32 %v1145_v37, %v1056_v1  ;;  %v741_v19 = vadd.f32 %v717_v60, %v688_v0  ;;  %v980_v30 = vmul.f32 %v4368_v3, %v966_v20  ;;  %v981_v50 = vmul.f32 %v4368_v3, %v965_v29 }
  0x7c   : > { %v742_v33 = vadd.f32 %v718_v40, %v689_v15  ;;  %v1083_v35 = vrot.slane %v4464_v57, 1  ;;  %v1084_v18 = vrot.slane %v4469_v49, 1  ;;  %v1085_v39 = vrot.slane %v4471_v61, 1 }
  0x7d   : > { %v1191_v27 = vpack.c.bf16 %v1169_v8, %v1168_v7  ;;  %v854_v34 = vadd.f32 %v830_v36, %v741_v19  ;;  %v349_v44 = vmul.f32 %v4304_v14, %v968_v22  ;;  %v350_v45 = vmul.f32 %v4304_v14, %v967_v28 }
  0x7e   : > { %v855_v46 = vadd.f32 %v831_v4, %v742_v33  ;;  %v402_v13 = vmul.f32 %v4307_v16, %v4419_v59  ;;  %v403_v37 = vmul.f32 %v4307_v16, %v4424_v63  ;;  %v1131_v51 = vsel %vm480_vm1, %v1084_v18, %v1085_v39 }
  0x7f   : > { %3694 = vmatmul.mubr.bf16.vlgmr.msra.gmra.mxu0 %v1191_v27  ;;  %v1004_v47 = vadd.f32 %v980_v30, %v854_v34  ;;  %v1132_v52 = vsel %vm480_vm1, %v1083_v35, %v1084_v18  ;;  %v516_v54 = vmul.f32 %v4314_v23, %v1134_v2  ;;  %v517_v22 = vmul.f32 %v4314_v23, %v1133_v9 }
  0x80   : > { %v1005_v55 = vadd.f32 %v981_v50, %v855_v46  ;;  %v1146_v17 = vmul.f32 %v4389_v31, %v1132_v52  ;;  %v1147_v48 = vmul.f32 %v4389_v31, %v1131_v51  ;;  %v426_v59 = vadd.f32 %v402_v13, %v349_v44 }
  0x81   : > { %v1057_v28 = vadd.f32 %v1033_v21, %v1004_v47  ;;  %v427_v53 = vadd.f32 %v403_v37, %v350_v45  ;;  %v666_v63 = vmul.f32 %v4338_v43, %v966_v20  ;;  %v667_v58 = vmul.f32 %v4338_v43, %v965_v29 }
  0x82   : > { %v1058_v60 = vadd.f32 %v1034_v32, %v1005_v55  ;;  %v719_v9 = vmul.f32 %v4334_v38, %v4464_v57  ;;  %v720_v61 = vmul.f32 %v4334_v38, %v4469_v49  ;;  %v540_v42 = vadd.f32 %v516_v54, %v426_v59 }
  0x83   : > { %v1170_v2 = vadd.f32 %v1146_v17, %v1057_v28  ;;  %v541_v1 = vadd.f32 %v517_v22, %v427_v53  ;;  %v832_v40 = vmul.f32 %v4356_v56, %v1132_v52  ;;  %v833_v36 = vmul.f32 %v4356_v56, %v1131_v51  ;;  %v4549_v53 = vld [vmem:[#allocation2 + $0x90] sm:$0xff] }
  0x84   : > { %v1171_v0 = vadd.f32 %v1147_v48, %v1058_v60  ;;  %v920_v4 = vrot.slane %v4509_v24, 7  ;;  %v921_v6 = vrot.slane %v4511_v25, 7  ;;  %v922_v7 = vrot.slane %v886_v41, 7 }
  0x85   : > { %v690_v8 = vadd.f32 %v666_v63, %v540_v42  ;;  %v691_v11 = vadd.f32 %v667_v58, %v541_v1  ;;  %v1035_v15 = vmul.f32 %v4361_v62, %v4509_v24  ;;  %v1036_v19 = vmul.f32 %v4361_v62, %v4511_v25  ;;  %v4551_v63 = vld [vmem:[#allocation2 + $0x98] sm:$0xff] }
  0x86   : > { %v1192_v21 = vpack.c.bf16 %v1171_v0, %v1170_v2  ;;  %v963_v27 = vsel %vm313_vm0, %v920_v4, %v921_v6  ;;  %v964_v30 = vsel %vm313_vm0, %v919_v12, %v920_v4  ;;  %v1086_v32 = vrot.slane %v4509_v24, 1  ;;  %v4557_v2 = vld [vmem:[#allocation2 + $0xa0] sm:$0xff] }
  0x87   : > { %v743_v33 = vadd.f32 %v719_v9, %v690_v8  ;;  %v744_v34 = vadd.f32 %v720_v61, %v691_v11  ;;  %v982_v50 = vmul.f32 %v4368_v3, %v964_v30  ;;  %v983_v35 = vmul.f32 %v4368_v3, %v963_v27 }
  0x88   : > { %3697 = vmatprep.mubr.bf16.mxu0 %v1192_v21  ;;  %v1087_v18 = vrot.slane %v4511_v25, 1  ;;  %v1088_v39 = vrot.slane %v886_v41, 1  ;;  %v351_v44 = vmul.f32 %v4304_v14, %v966_v20  ;;  %v352_v45 = vmul.f32 %v4304_v14, %v965_v29 }
  0x89   : > { %v856_v46 = vadd.f32 %v832_v40, %v743_v33  ;;  %v857_v47 = vadd.f32 %v833_v36, %v744_v34  ;;  %v404_v12 = vmul.f32 %v4307_v16, %v4464_v57  ;;  %v405_v13 = vmul.f32 %v4307_v16, %v4469_v49 }
  0x8a   : > { %v1129_v37 = vsel %vm480_vm1, %v1087_v18, %v1088_v39  ;;  %v1130_v54 = vsel %vm480_vm1, %v1086_v32, %v1087_v18  ;;  %v518_v22 = vmul.f32 %v4314_v23, %v1132_v52  ;;  %v519_v20 = vmul.f32 %v4314_v23, %v1131_v51 }
  0x8b   : > { %v1006_v55 = vadd.f32 %v982_v50, %v856_v46  ;;  %v1007_v29 = vadd.f32 %v983_v35, %v857_v47  ;;  %v1148_v28 = vmul.f32 %v4389_v31, %v1130_v54  ;;  %v1149_v17 = vmul.f32 %v4389_v31, %v1129_v37 }
  0x8c   : > { %v428_v57 = vadd.f32 %v404_v12, %v351_v44  ;;  %v429_v48 = vadd.f32 %v405_v13, %v352_v45  ;;  %v668_v49 = vmul.f32 %v4338_v43, %v964_v30  ;;  %v669_v59 = vmul.f32 %v4338_v43, %v963_v27 }
  0x8d   : > { %v1059_v58 = vadd.f32 %v1035_v15, %v1006_v55  ;;  %v1060_v52 = vadd.f32 %v1036_v19, %v1007_v29  ;;  %v721_v51 = vmul.f32 %v4334_v38, %v4509_v24  ;;  %v722_v60 = vmul.f32 %v4334_v38, %v4511_v25 }
  0x8e   : > { %v542_v9 = vadd.f32 %v518_v22, %v428_v57  ;;  %v543_v61 = vadd.f32 %v519_v20, %v429_v48  ;;  %v834_v42 = vmul.f32 %v4356_v56, %v1130_v54  ;;  %v835_v1 = vmul.f32 %v4356_v56, %v1129_v37 }
  0x8f   : > { %v1172_v40 = vadd.f32 %v1148_v28, %v1059_v58  ;;  %v1173_v36 = vadd.f32 %v1149_v17, %v1060_v52  ;;  %v923_v41 = vrot.slane %v4549_v53, 7  ;;  %v924_v0 = vrot.slane %v4551_v63, 7  ;;  %v4601_v52 = vld [vmem:[#allocation2 + $0xb0] sm:$0xff] }
  0x90   : > { %v692_v4 = vadd.f32 %v668_v49, %v542_v9  ;;  %v693_v6 = vadd.f32 %v669_v59, %v543_v61  ;;  %v925_v8 = vrot.slane %v4557_v2, 7  ;;  %v1037_v11 = vmul.f32 %v4361_v62, %v4549_v53  ;;  %v4595_v49 = vld [vmem:[#allocation2 + $0xa8] sm:$0xff] }
  0x91   : > { %v1193_v15 = vpack.c.bf16 %v1173_v36, %v1172_v40  ;;  %v4568_v19 = vsel %vm313_vm0, %v923_v41, %v924_v0  ;;  %v962_v21 = vsel %vm313_vm0, %v922_v7, %v923_v41  ;;  %v1038_v32 = vmul.f32 %v4361_v62, %v4551_v63 }
  0x92   : > { %v745_v33 = vadd.f32 %v721_v51, %v692_v4  ;;  %v746_v34 = vadd.f32 %v722_v60, %v693_v6  ;;  %v984_v50 = vmul.f32 %v4368_v3, %v962_v21  ;;  %v985_v35 = vmul.f32 %v4368_v3, %v4568_v19 }
  0x93   : > { %3698 = vmatmul.mubr.bf16.gmra.mxu0 %v1193_v15  ;;  %v1089_v18 = vrot.slane %v4549_v53, 1  ;;  %v1090_v39 = vrot.slane %v4551_v63, 1  ;;  %v1091_v44 = vrot.slane %v4557_v2, 1  ;;  %v353_v45 = vmul.f32 %v4304_v14, %v964_v30 }
  0x94   : > { %v858_v7 = vadd.f32 %v834_v42, %v745_v33  ;;  %v859_v46 = vadd.f32 %v835_v1, %v746_v34  ;;  %v354_v47 = vmul.f32 %v4304_v14, %v963_v27  ;;  %v406_v12 = vmul.f32 %v4307_v16, %v4509_v24  ;;  %v4607_v1 = vld [vmem:[#allocation2 + $0xb8] sm:$0xff] }
  0x95   : > { %v1127_v13 = vsel %vm480_vm1, %v1090_v39, %v1091_v44  ;;  %v1128_v22 = vsel %vm480_vm1, %v1089_v18, %v1090_v39  ;;  %v407_v20 = vmul.f32 %v4307_v16, %v4511_v25  ;;  %v520_v55 = vmul.f32 %v4314_v23, %v1130_v54 }
  0x96   : > { %v1008_v29 = vadd.f32 %v984_v50, %v858_v7  ;;  %v1009_v30 = vadd.f32 %v985_v35, %v859_v46  ;;  %v1150_v28 = vmul.f32 %v4389_v31, %v1128_v22  ;;  %v1151_v27 = vmul.f32 %v4389_v31, %v1127_v13 }
  0x97   : > { %v430_v17 = vadd.f32 %v406_v12, %v353_v45  ;;  %v431_v57 = vadd.f32 %v407_v20, %v354_v47  ;;  %v521_v24 = vmul.f32 %v4314_v23, %v1129_v37  ;;  %v670_v48 = vmul.f32 %v4338_v43, %v962_v21 }
  0x98   : > { %v1061_v59 = vadd.f32 %v1037_v11, %v1008_v29  ;;  %v1062_v58 = vadd.f32 %v1038_v32, %v1009_v30  ;;  %v671_v25 = vmul.f32 %v4338_v43, %v4568_v19  ;;  %v723_v54 = vmul.f32 %v4334_v38, %v4549_v53 }
  0x99   : > { %v544_v51 = vadd.f32 %v520_v55, %v430_v17  ;;  %v545_v60 = vadd.f32 %v521_v24, %v431_v57  ;;  %v724_v2 = vmul.f32 %v4334_v38, %v4551_v63  ;;  %v836_v37 = vmul.f32 %v4356_v56, %v1128_v22 }
  0x9a   : > { %v1174_v9 = vadd.f32 %v1150_v28, %v1061_v59  ;;  %v1175_v61 = vadd.f32 %v1151_v27, %v1062_v58  ;;  %v837_v42 = vmul.f32 %v4356_v56, %v1127_v13  ;;  %v926_v40 = vrot.slane %v4595_v49, 7 }
  0x9b   : > { %v694_v36 = vadd.f32 %v670_v48, %v544_v51  ;;  %v695_v41 = vadd.f32 %v671_v25, %v545_v60  ;;  %v927_v0 = vrot.slane %v4601_v52, 7  ;;  %v928_v4 = vrot.slane %v4607_v1, 7  ;;  %v4648_v25 = vld [vmem:[#allocation2 + $0xc8] sm:$0xff] }
  0x9c   : > { %v1194_v6 = vpack.c.bf16 %v1175_v61, %v1174_v9  ;;  %v4614_v11 = vsel %vm313_vm0, %v925_v8, %v926_v40  ;;  %v1039_v15 = vmul.f32 %v4361_v62, %v4595_v49  ;;  %v1040_v32 = vmul.f32 %v4361_v62, %v4601_v52 }
  0x9d   : > { %v747_v33 = vadd.f32 %v723_v54, %v694_v36  ;;  %v748_v34 = vadd.f32 %v724_v2, %v695_v41  ;;  %v959_v50 = vsel %vm313_vm0, %v926_v40, %v927_v0  ;;  %v986_v35 = vmul.f32 %v4368_v3, %v4614_v11 }
  0x9e   : > { %3701 = vmatprep.mubr.bf16.mxu0 %v1194_v6  ;;  %v987_v18 = vmul.f32 %v4368_v3, %v959_v50  ;;  %v1092_v8 = vrot.slane %v4595_v49, 1  ;;  %v1093_v39 = vrot.slane %v4601_v52, 1  ;;  %v1094_v44 = vrot.slane %v4607_v1, 1 }
  0x9f   : > { %v860_v45 = vadd.f32 %v836_v37, %v747_v33  ;;  %v861_v7 = vadd.f32 %v837_v42, %v748_v34  ;;  %v355_v46 = vmul.f32 %v4304_v14, %v962_v21  ;;  %v356_v47 = vmul.f32 %v4304_v14, %v4568_v19 }
  0xa0   : > { %v1125_v12 = vsel %vm480_vm1, %v1093_v39, %v1094_v44  ;;  %v1126_v20 = vsel %vm480_vm1, %v1092_v8, %v1093_v39  ;;  %v408_v55 = vmul.f32 %v4307_v16, %v4549_v53  ;;  %v409_v29 = vmul.f32 %v4307_v16, %v4551_v63  ;;  %v4646_v63 = vld [vmem:[#allocation2 + $0xc0] sm:$0xff] }
  0xa1   : > { %v1010_v30 = vadd.f32 %v986_v35, %v860_v45  ;;  %v1011_v28 = vadd.f32 %v987_v18, %v861_v7  ;;  %v1152_v27 = vmul.f32 %v4389_v31, %v1126_v20  ;;  %v1153_v21 = vmul.f32 %v4389_v31, %v1125_v12 }
  0xa2   : > { %v432_v17 = vadd.f32 %v408_v55, %v355_v46  ;;  %v433_v19 = vadd.f32 %v409_v29, %v356_v47  ;;  %v522_v57 = vmul.f32 %v4314_v23, %v1128_v22  ;;  %v523_v24 = vmul.f32 %v4314_v23, %v1127_v13  ;;  %v4654_v13 = vld [vmem:[#allocation2 + $0xd0] sm:$0xff] }
  0xa3   : > { %v1063_v48 = vadd.f32 %v1039_v15, %v1010_v30  ;;  %v1064_v59 = vadd.f32 %v1040_v32, %v1011_v28  ;;  %v672_v53 = vmul.f32 %v4338_v43, %v4614_v11  ;;  %v673_v58 = vmul.f32 %v4338_v43, %v959_v50 }
  0xa4   : > { %v546_v54 = vadd.f32 %v522_v57, %v432_v17  ;;  %v547_v51 = vadd.f32 %v523_v24, %v433_v19  ;;  %v725_v60 = vmul.f32 %v4334_v38, %v4595_v49  ;;  %v726_v22 = vmul.f32 %v4334_v38, %v4601_v52 }
  0xa5   : > { %v1176_v2 = vadd.f32 %v1152_v27, %v1063_v48  ;;  %v1177_v37 = vadd.f32 %v1153_v21, %v1064_v59  ;;  %v838_v9 = vmul.f32 %v4356_v56, %v1126_v20  ;;  %v839_v61 = vmul.f32 %v4356_v56, %v1125_v12 }
  0xa6   : > { %v696_v42 = vadd.f32 %v672_v53, %v546_v54  ;;  %v697_v1 = vadd.f32 %v673_v58, %v547_v51  ;;  %v929_v40 = vrot.slane %v4646_v63, 7  ;;  %v930_v36 = vrot.slane %v4648_v25, 7  ;;  %v4692_v53 = vld [vmem:[#allocation2 + $0xe0] sm:$0xff] }
  0xa7   : > { %v1195_v41 = vpack.c.bf16 %v1177_v37, %v1176_v2  ;;  %v931_v0 = vrot.slane %v4654_v13, 7  ;;  %v1041_v6 = vmul.f32 %v4361_v62, %v4646_v63  ;;  %v1042_v15 = vmul.f32 %v4361_v62, %v4648_v25 }
  0xa8   : > { %v749_v32 = vadd.f32 %v725_v60, %v696_v42  ;;  %v750_v33 = vadd.f32 %v726_v22, %v697_v1  ;;  %v957_v34 = vsel %vm313_vm0, %v929_v40, %v930_v36  ;;  %v958_v35 = vsel %vm313_vm0, %v928_v4, %v929_v40 }
  0xa9   : > { %3702 = vmatmul.mubr.bf16.gmra.mxu0 %v1195_v41  ;;  %v988_v18 = vmul.f32 %v4368_v3, %v958_v35  ;;  %v989_v8 = vmul.f32 %v4368_v3, %v957_v34  ;;  %v1095_v39 = vrot.slane %v4646_v63, 1  ;;  %v1096_v44 = vrot.slane %v4648_v25, 1 }
  0xaa   : > { %v862_v45 = vadd.f32 %v838_v9, %v749_v32  ;;  %v863_v7 = vadd.f32 %v839_v61, %v750_v33  ;;  %v1097_v46 = vrot.slane %v4654_v13, 1  ;;  %v357_v47 = vmul.f32 %v4304_v14, %v4614_v11  ;;  %v898_v9 = vld [vmem:[#allocation2 + $0xe8] sm:$0xff] }
  0xab   : > { %v1124_v55 = vsel %vm480_vm1, %v1095_v39, %v1096_v44  ;;  %v358_v4 = vmul.f32 %v4304_v14, %v959_v50  ;;  %v410_v29 = vmul.f32 %v4307_v16, %v4595_v49  ;;  %v411_v30 = vmul.f32 %v4307_v16, %v4601_v52  ;;  %v4690_v52 = vld [vmem:[#allocation2 + $0xd8] sm:$0xff] }
  0xac   : > { %v1012_v28 = vadd.f32 %v988_v18, %v862_v45  ;;  %v1013_v27 = vadd.f32 %v989_v8, %v863_v7  ;;  %v1123_v21 = vsel %vm480_vm1, %v1096_v44, %v1097_v46  ;;  %v1154_v17 = vmul.f32 %v4389_v31, %v1124_v55 }
  0xad   : > { %v1155_v11 = vmul.f32 %v4389_v31, %v1123_v21  ;;  %v434_v19 = vadd.f32 %v410_v29, %v357_v47  ;;  %v435_v57 = vadd.f32 %v411_v30, %v358_v4  ;;  %v524_v24 = vmul.f32 %v4314_v23, %v1126_v20 }
  0xae   : > { %v1065_v50 = vadd.f32 %v1041_v6, %v1012_v28  ;;  %v1066_v48 = vadd.f32 %v1042_v15, %v1013_v27  ;;  %v525_v49 = vmul.f32 %v4314_v23, %v1125_v12  ;;  %v674_v59 = vmul.f32 %v4338_v43, %v958_v35 }
  0xaf   : > { %v548_v58 = vadd.f32 %v524_v24, %v434_v19  ;;  %v675_v54 = vmul.f32 %v4338_v43, %v957_v34  ;;  %v727_v51 = vmul.f32 %v4334_v38, %v4646_v63  ;;  %v728_v60 = vmul.f32 %v4334_v38, %v4648_v25 }
  0xb0   : > { %v1178_v20 = vadd.f32 %v1154_v17, %v1065_v50  ;;  %v1179_v22 = vadd.f32 %v1155_v11, %v1066_v48  ;;  %v549_v13 = vadd.f32 %v525_v49, %v435_v57  ;;  %v840_v12 = vmul.f32 %v4356_v56, %v1124_v55  ;;  %v4730_v48 = vld [vmem:[#allocation2 + $0xf0] sm:$0xff] }
  0xb1   : > { %v698_v2 = vadd.f32 %v674_v59, %v548_v58  ;;  %v841_v37 = vmul.f32 %v4356_v56, %v1123_v21  ;;  %v932_v61 = vrot.slane %v4690_v52, 7  ;;  %v933_v42 = vrot.slane %v4692_v53, 7 }
  0xb2   : > { %v1196_v1 = vpack.c.bf16 %v1179_v22, %v1178_v20  ;;  %v699_v40 = vadd.f32 %v675_v54, %v549_v13  ;;  %v934_v36 = vrot.slane %v898_v9, 7  ;;  %v1043_v41 = vmul.f32 %v4361_v62, %v4690_v52  ;;  %v4735_v54 = vld [vmem:[#allocation2 + $0xf8] sm:$0xff] }
  0xb3   : > { %v751_v6 = vadd.f32 %v727_v51, %v698_v2  ;;  %v955_v15 = vsel %vm313_vm0, %v932_v61, %v933_v42  ;;  %v956_v32 = vsel %vm313_vm0, %v931_v0, %v932_v61  ;;  %v1044_v33 = vmul.f32 %v4361_v62, %v4692_v53  ;;  %v4737_v51 = vld [vmem:[#allocation2 + $0x100] sm:$0xff] }
  0xb4   : > { %3705 = vmatprep.mubr.bf16.mxu0 %v1196_v1  ;;  %v752_v18 = vadd.f32 %v728_v60, %v699_v40  ;;  %v990_v8 = vmul.f32 %v4368_v3, %v956_v32  ;;  %v991_v39 = vmul.f32 %v4368_v3, %v955_v15  ;;  %v1098_v44 = vrot.slane %v4690_v52, 1 }
  0xb5   : > { %v864_v45 = vadd.f32 %v840_v12, %v751_v6  ;;  %v1099_v7 = vrot.slane %v4692_v53, 1  ;;  %v1100_v46 = vrot.slane %v898_v9, 1  ;;  %v359_v47 = vmul.f32 %v4304_v14, %v958_v35 }
  0xb6   : > { %v865_v4 = vadd.f32 %v841_v37, %v752_v18  ;;  %v360_v0 = vmul.f32 %v4304_v14, %v957_v34  ;;  %v412_v29 = vmul.f32 %v4307_v16, %v4646_v63  ;;  %v413_v30 = vmul.f32 %v4307_v16, %v4648_v25 }
  0xb7   : > { %v1014_v28 = vadd.f32 %v990_v8, %v864_v45  ;;  %v1121_v27 = vsel %vm480_vm1, %v1099_v7, %v1100_v46  ;;  %v1122_v17 = vsel %vm480_vm1, %v1098_v44, %v1099_v7  ;;  %v526_v11 = vmul.f32 %v4314_v23, %v1124_v55 }
  0xb8   : > { %v1015_v19 = vadd.f32 %v991_v39, %v865_v4  ;;  %v1156_v35 = vmul.f32 %v4389_v31, %v1122_v17  ;;  %v1157_v34 = vmul.f32 %v4389_v31, %v1121_v27  ;;  %v436_v57 = vadd.f32 %v412_v29, %v359_v47 }
  0xb9   : > { %v1067_v24 = vadd.f32 %v1043_v41, %v1014_v28  ;;  %v437_v63 = vadd.f32 %v413_v30, %v360_v0  ;;  %v527_v50 = vmul.f32 %v4314_v23, %v1123_v21  ;;  %v676_v25 = vmul.f32 %v4338_v43, %v956_v32 }
  0xba   : > { %v1068_v49 = vadd.f32 %v1044_v33, %v1015_v19  ;;  %v550_v59 = vadd.f32 %v526_v11, %v436_v57  ;;  %v677_v58 = vmul.f32 %v4338_v43, %v955_v15  ;;  %v729_v55 = vmul.f32 %v4334_v38, %v4690_v52 }
  0xbb   : > { %v1180_v60 = vadd.f32 %v1156_v35, %v1067_v24  ;;  %v551_v20 = vadd.f32 %v527_v50, %v437_v63  ;;  %v730_v21 = vmul.f32 %v4334_v38, %v4692_v53  ;;  %v842_v22 = vmul.f32 %v4356_v56, %v1122_v17  ;;  %v4773_v63 = vld [vmem:[#allocation2 + $0x108] sm:$0xff] }
  0xbc   : > { %v1181_v13 = vadd.f32 %v1157_v34, %v1068_v49  ;;  %v700_v12 = vadd.f32 %v676_v25, %v550_v59  ;;  %v843_v2 = vmul.f32 %v4356_v56, %v1121_v27  ;;  %v935_v37 = vrot.slane %v4730_v48, 7  ;;  %v4781_v59 = vld [vmem:[#allocation2 + $0x118] sm:$0xff] }
  0xbd   : > { %v701_v9 = vadd.f32 %v677_v58, %v551_v20  ;;  %v936_v61 = vrot.slane %v4735_v54, 7  ;;  %v937_v42 = vrot.slane %v4737_v51, 7  ;;  %v1045_v1 = vmul.f32 %v4361_v62, %v4730_v48 }
  0xbe   : > { %v1197_v40 = vpack.c.bf16 %v1181_v13, %v1180_v60  ;;  %v753_v41 = vadd.f32 %v729_v55, %v700_v12  ;;  %v954_v6 = vsel %vm313_vm0, %v934_v36, %v935_v37  ;;  %v1046_v33 = vmul.f32 %v4361_v62, %v4735_v54 }
  0xbf   : > { %v754_v18 = vadd.f32 %v730_v21, %v701_v9  ;;  %v953_v8 = vsel %vm313_vm0, %v935_v37, %v936_v61  ;;  %v992_v39 = vmul.f32 %v4368_v3, %v954_v6  ;;  %v1101_v44 = vrot.slane %v4730_v48, 1 }
  0xc0   : > { %3706 = vmatmul.mubr.bf16.gmra.mxu0 %v1197_v40  ;;  %v866_v45 = vadd.f32 %v842_v22, %v753_v41  ;;  %v993_v7 = vmul.f32 %v4368_v3, %v953_v8  ;;  %v1102_v46 = vrot.slane %v4735_v54, 1  ;;  %v1103_v47 = vrot.slane %v4737_v51, 1 }
  0xc1   : > { %v867_v36 = vadd.f32 %v843_v2, %v754_v18  ;;  %v361_v4 = vmul.f32 %v4304_v14, %v956_v32  ;;  %v362_v0 = vmul.f32 %v4304_v14, %v955_v15  ;;  %v414_v29 = vmul.f32 %v4307_v16, %v4690_v52 }
  0xc2   : > { %v1016_v30 = vadd.f32 %v992_v39, %v866_v45  ;;  %v1119_v28 = vsel %vm480_vm1, %v1102_v46, %v1103_v47  ;;  %v1120_v11 = vsel %vm480_vm1, %v1101_v44, %v1102_v46  ;;  %v415_v19 = vmul.f32 %v4307_v16, %v4692_v53  ;;  %v4779_v53 = vld [vmem:[#allocation2 + $0x110] sm:$0xff]  ;;  %v3913_v44 = vld [vmem:[#allocation6] ss:$0 sm:$0xff]  ;;  %v3914_v47 = vld [vmem:[#allocation6 + $0x1] ss:$0 sm:$0xff] }
  0xc3   : > { %v1017_v35 = vadd.f32 %v993_v7, %v867_v36  ;;  %v1158_v34 = vmul.f32 %v4389_v31, %v1120_v11  ;;  %v1159_v32 = vmul.f32 %v4389_v31, %v1119_v28  ;;  %v438_v57 = vadd.f32 %v414_v29, %v361_v4 }
  0xc4   : > { %v1069_v14 = vadd.f32 %v1045_v1, %v1016_v30  ;;  %v439_v15 = vadd.f32 %v415_v19, %v362_v0  ;;  %v528_v52 = vmul.f32 %v4314_v23, %v1122_v17  ;;  %v529_v24 = vmul.f32 %v4314_v23, %v1121_v27 }
  0xc5   : > { %v1070_v50 = vadd.f32 %v1046_v33, %v1017_v35  ;;  %v678_v25 = vmul.f32 %v4338_v43, %v954_v6  ;;  %v679_v49 = vmul.f32 %v4338_v43, %v953_v8  ;;  %v731_v16 = vmul.f32 %v4334_v38, %v4730_v48  ;;  %v3915_v35 = vld [vmem:[#allocation6 + $0x2] ss:$0 sm:$0xff] }
  0xc6   : > { %v1182_v58 = vadd.f32 %v1158_v34, %v1069_v14  ;;  %v552_v55 = vadd.f32 %v528_v52, %v438_v57  ;;  %v553_v51 = vadd.f32 %v529_v24, %v439_v15  ;;  %v732_v23 = vmul.f32 %v4334_v38, %v4735_v54  ;;  %v3916_v15 = vld [vmem:[#allocation6 + $0x3] ss:$0 sm:$0xff]  ;;  %v906_v24 = vld [vmem:[#allocation2 + $0x128] sm:$0xff] }
  0xc7   : > { %v1183_v27 = vadd.f32 %v1159_v32, %v1070_v50  ;;  %v844_v17 = vmul.f32 %v4356_v56, %v1120_v11  ;;  %v845_v60 = vmul.f32 %v4356_v56, %v1119_v28  ;;  %v938_v43 = vrot.slane %v4773_v63, 7 }
  0xc8   : > { %v702_v20 = vadd.f32 %v678_v25, %v552_v55  ;;  %v703_v21 = vadd.f32 %v679_v49, %v553_v51  ;;  %v939_v22 = vrot.slane %v4779_v53, 7  ;;  %v940_v13 = vrot.slane %v4781_v59, 7  ;;  %v3917_v49 = vld [vmem:[#allocation6 + $0x4] ss:$0 sm:$0xff]  ;;  %v4828_v55 = vld [vmem:[#allocation2 + $0x130] sm:$0xff] }
  0xc9   : > { %v1198_v12 = vpack.c.bf16 %v1183_v27, %v1182_v58  ;;  %v4792_v2 = vsel %vm313_vm0, %v937_v42, %v938_v43  ;;  %v1047_v38 = vmul.f32 %v4361_v62, %v4773_v63  ;;  %v1048_v37 = vmul.f32 %v4361_v62, %v4779_v53 }
  0xca   : > { %v755_v9 = vadd.f32 %v731_v16, %v702_v20  ;;  %v756_v61 = vadd.f32 %v732_v23, %v703_v21  ;;  %v4800_v1 = vsel %vm313_vm0, %v938_v43, %v939_v22  ;;  %v994_v40 = vmul.f32 %v4368_v3, %v4792_v2  ;;  %v4832_v23 = vld [vmem:[#allocation6 + $0x5] ss:$0 sm:$0xff] }
  0xcb   : > { %3709 = vmatprep.mubr.bf16.mxu0 %v1198_v12  ;;  %v995_v42 = vmul.f32 %v4368_v3, %v4800_v1  ;;  %v1104_v41 = vrot.slane %v4773_v63, 1  ;;  %v4808_v33 = vrot.slane %v4779_v53, 1  ;;  %v1106_v62 = vrot.slane %v4781_v59, 1  ;;  %v4836_v12 = vld [vmem:[#allocation6 + $0x7] ss:$0 sm:$0xff] }
  0xcc   : > { %v868_v18 = vadd.f32 %v844_v17, %v755_v9  ;;  %v869_v39 = vadd.f32 %v845_v60, %v756_v61  ;;  %v363_v45 = vmul.f32 %v3913_v44, %v954_v6  ;;  %v364_v7 = vmul.f32 %v3913_v44, %v953_v8 }
  0xcd   : > { %v1117_v46 = vsel %vm480_vm1, %v4808_v33, %v1106_v62  ;;  %v4817_v3 = vsel %vm480_vm1, %v1104_v41, %v4808_v33  ;;  %v416_v36 = vmul.f32 %v3914_v47, %v4730_v48  ;;  %v417_v4 = vmul.f32 %v3914_v47, %v4735_v54  ;;  %v905_v54 = vld [vmem:[#allocation2 + $0x120] sm:$0xff] }
  0xce   : > { %v1018_v0 = vadd.f32 %v994_v40, %v868_v18  ;;  %v1019_v29 = vadd.f32 %v995_v42, %v869_v39  ;;  %v1160_v6 = vmul.f32 %v4389_v31, %v4817_v3  ;;  %v1161_v8 = vmul.f32 %v4389_v31, %v1117_v46  ;;  %v3920_v42 = vld [vmem:[#allocation6 + $0x6] ss:$0 sm:$0xff] }
  0xcf   : > { %v440_v30 = vadd.f32 %v416_v36, %v363_v45  ;;  %v441_v19 = vadd.f32 %v417_v4, %v364_v7  ;;  %v530_v34 = vmul.f32 %v3915_v35, %v1120_v11  ;;  %v531_v32 = vmul.f32 %v3915_v35, %v1119_v28 }
  0xd0   : > { %v1071_v57 = vadd.f32 %v1047_v38, %v1018_v0  ;;  %v1072_v14 = vadd.f32 %v1048_v37, %v1019_v29  ;;  %v680_v52 = vmul.f32 %v3916_v15, %v4792_v2  ;;  %v681_v48 = vmul.f32 %v3916_v15, %v4800_v1 }
  0xd1   : > { %v554_v50 = vadd.f32 %v530_v34, %v440_v30  ;;  %v555_v25 = vadd.f32 %v531_v32, %v441_v19  ;;  %v733_v16 = vmul.f32 %v3917_v49, %v4773_v63  ;;  %v734_v58 = vmul.f32 %v3917_v49, %v4779_v53  ;;  %v908_v32 = vld [vmem:[#allocation2 + $0x138] sm:$0xff] }
  0xd2   : > { %v1184_v11 = vadd.f32 %v1160_v6, %v1071_v57  ;;  %v1185_v28 = vadd.f32 %v1161_v8, %v1072_v14  ;;  %v846_v51 = vmul.f32 %v4356_v56, %v4817_v3  ;;  %v847_v27 = vmul.f32 %v4832_v23, %v1117_v46  ;;  %v909_v57 = vld [vmem:[#allocation2 + $0x140] sm:$0xff] }
  0xd3   : > { %v704_v17 = vadd.f32 %v680_v52, %v554_v50  ;;  %v705_v60 = vadd.f32 %v681_v48, %v555_v25  ;;  %v941_v43 = vrot.slane %v905_v54, 7  ;;  %v942_v20 = vrot.slane %v906_v24, 7 }
  0xd4   : > { %v1199_v21 = vpack.c.bf16 %v1185_v28, %v1184_v11  ;;  %v943_v22 = vrot.slane %v4828_v55, 7  ;;  %v1049_v38 = vmul.f32 %v4836_v12, %v905_v54  ;;  %v1050_v37 = vmul.f32 %v4836_v12, %v906_v24 }
  0xd5   : > { %v757_v9 = vadd.f32 %v733_v16, %v704_v17  ;;  %v758_v61 = vadd.f32 %v734_v58, %v705_v60  ;;  %v949_v56 = vsel %vm313_vm0, %v941_v43, %v942_v20  ;;  %v950_v40 = vsel %vm313_vm0, %v940_v13, %v941_v43 }
  0xd6   : > { %3710 = vmatmul.mubr.bf16.gmra.mxu0 %v1199_v21  ;;  %v996_v41 = vmul.f32 %v3920_v42, %v950_v40  ;;  %v997_v62 = vmul.f32 %v3920_v42, %v949_v56  ;;  %v1107_v18 = vrot.slane %v905_v54, 1  ;;  %v1108_v39 = vrot.slane %v906_v24, 1  ;;  %v3922_v21 = vld [vmem:[#allocation2 + $0x148] sm:$0xff] }
  0xd7   : > { %v870_v45 = vadd.f32 %v846_v51, %v757_v9  ;;  %v871_v7 = vadd.f32 %v847_v27, %v758_v61  ;;  %v1109_v46 = vrot.slane %v4828_v55, 1  ;;  %v365_v36 = vmul.f32 %v3913_v44, %v4792_v2 }
  0xd8   : > { %v1116_v4 = vsel %vm480_vm1, %v1107_v18, %v1108_v39  ;;  %v366_v59 = vmul.f32 %v3913_v44, %v4800_v1  ;;  %v418_v0 = vmul.f32 %v3914_v47, %v4773_v63  ;;  %v419_v13 = vmul.f32 %v3914_v47, %v4779_v53 }
  0xd9   : > { %v1020_v29 = vadd.f32 %v996_v41, %v870_v45  ;;  %v1021_v6 = vadd.f32 %v997_v62, %v871_v7  ;;  %v1115_v8 = vsel %vm480_vm1, %v1108_v39, %v1109_v46  ;;  %v1162_v30 = vmul.f32 %v4389_v31, %v1116_v4  ;;  %v3923_v62 = vld [vmem:[#allocation6 + $0x8] ss:$0 sm:$0xff] }
  0xda   : > { %v1163_v19 = vmul.f32 %v4389_v31, %v1115_v8  ;;  %v442_v34 = vadd.f32 %v418_v0, %v365_v36  ;;  %v443_v2 = vadd.f32 %v419_v13, %v366_v59  ;;  %v481_v1 = vsel %vm480_vm1, %v4808_v33, %v479_v26 }
  0xdb   : > { %v1073_v63 = vadd.f32 %v1049_v38, %v1020_v29  ;;  %v1074_v44 = vadd.f32 %v1050_v37, %v1021_v6  ;;  %v532_v53 = vmul.f32 %v3915_v35, %v4817_v3  ;;  %v533_v47 = vmul.f32 %v3915_v35, %v481_v1 }
  0xdc   : > { %v682_v14 = vmul.f32 %v3916_v15, %v950_v40  ;;  %v683_v52 = vmul.f32 %v3916_v15, %v949_v56  ;;  %v735_v48 = vmul.f32 %v3917_v49, %v905_v54  ;;  %v736_v50 = vmul.f32 %v3917_v49, %v906_v24 }
  0xdd   : > { %v1186_v31 = vadd.f32 %v1162_v30, %v1073_v63  ;;  %v1187_v25 = vadd.f32 %v1163_v19, %v1074_v44  ;;  %v556_v16 = vadd.f32 %v532_v53, %v442_v34  ;;  %v557_v58 = vadd.f32 %v533_v47, %v443_v2 }
  0xde   : > { %v796_v55 = vrot.slane %v3921_v10, 1  ;;  %v944_v11 = vrot.slane %v908_v32, 7  ;;  %v945_v28 = vrot.slane %v909_v57, 7  ;;  %v848_v3 = vmul.f32 %v4832_v23, %v1116_v4 }
  0xdf   : > { %v1200_v26 = vpack.c.bf16 %v1187_v25, %v1186_v31  ;;  %v706_v33 = vadd.f32 %v682_v14, %v556_v16  ;;  %v707_v51 = vadd.f32 %v683_v52, %v557_v58  ;;  %v1110_v43 = vrot.slane %v908_v32, 1 }
  0xe0   : > { %v797_v35 = vsel %vm480_vm1, %v1108_v39, %v796_v55  ;;  %v947_v15 = vsel %vm313_vm0, %v944_v11, %v945_v28  ;;  %v948_v54 = vsel %vm313_vm0, %v943_v22, %v944_v11  ;;  %v1111_v20 = vrot.slane %v909_v57, 1 }
  0xe1   : > { %3713 = vmatprep.mubr.bf16.mxu0 %v1200_v26  ;;  %v759_v24 = vadd.f32 %v735_v48, %v706_v33  ;;  %v760_v49 = vadd.f32 %v736_v50, %v707_v51  ;;  %v849_v27 = vmul.f32 %v4832_v23, %v797_v35  ;;  %v998_v17 = vmul.f32 %v3920_v42, %v948_v54 }
  0xe2   : > { %v999_v60 = vmul.f32 %v3920_v42, %v947_v15  ;;  %v1112_v38 = vrot.slane %v3922_v21, 1  ;;  %v1051_v61 = vmul.f32 %v4836_v12, %v908_v32  ;;  %v1052_v56 = vmul.f32 %v4836_v12, %v909_v57  ;;  %v4880_v12 = vld [vmem:[%s6025_s3] ss:$0 sm:$0xff] }
  0xe3   : > { %v872_v37 = vadd.f32 %v848_v3, %v759_v24  ;;  %v873_v9 = vadd.f32 %v849_v27, %v760_v49  ;;  %v1114_v40 = vsel %vm480_vm1, %v1110_v43, %v1111_v20 }
  0xe4   : > { %v1113_v22 = vsel %vm480_vm1, %v1111_v20, %v1112_v38  ;;  %v1164_v42 = vmul.f32 %v3923_v62, %v1114_v40 }
  0xe5   : > { %v1022_v41 = vadd.f32 %v998_v17, %v872_v37  ;;  %v1023_v23 = vadd.f32 %v999_v60, %v873_v9  ;;  %v1165_v18 = vmul.f32 %v3923_v62, %v1113_v22 }
  0xe7   : > { %v1075_v39 = vadd.f32 %v1051_v61, %v1022_v41  ;;  %v1076_v45 = vadd.f32 %v1052_v56, %v1023_v23 }
  0xe9   : > { %v1188_v7 = vadd.f32 %v1164_v42, %v1075_v39  ;;  %v1189_v46 = vadd.f32 %v1165_v18, %v1076_v45 }
  0xeb   : > { %v1201_v36 = vpack.c.bf16 %v1189_v46, %v1188_v7 }
  0xed   : > { %3714 = vmatmul.mubr.bf16.gmra.mxu0 %v1201_v36 }
 0x13f   : > { %v3695_v4 = vpop.f32.mrf.mxu0 }
 0x140   : > { %v1316_v59 = vadd.f32 %v3695_v4, %v4880_v12 }
 0x141   : > { %v1307_v0 = vpop.f32.mrf.mxu0 }
 0x142   : > { %v1404_v13 = vmax.f32 %v1316_v59, 0.0  ;;  %v1308_v29 = vadd.f32 %v4880_v12, %v1307_v0 }
 0x143   : > { %v3696_v6 = vpop.f32.mrf.mxu0 }
 0x144   : > { %v1428_v8 = vmin.f32 %v1404_v13, 6.0  ;;  %v1402_v30 = vmax.f32 %v1308_v29, 0.0  ;;  %v1319_v19 = vadd.f32 %v3696_v6, %v4880_v12 }
 0x145   : > { %v1310_v34 = vpop.f32.mrf.mxu0 }
 0x146   : > { %1452 = vst [vmem:[#allocation3 + $0x28] sm:$0xff] %v1428_v8  ;;  %v1426_v2 = vmin.f32 %v1402_v30, 6.0  ;;  %v1405_v1 = vmax.f32 %v1319_v19, 0.0  ;;  %v1311_v63 = vadd.f32 %v4880_v12, %v1310_v34 }
 0x148   : > { %1450 = vst [vmem:[#allocation3 + $0xe0] sm:$0xff] %v1426_v2  ;;  %v1429_v44 = vmin.f32 %v1405_v1, 6.0  ;;  %v1403_v53 = vmax.f32 %v1311_v63, 0.0 }
 0x14a   : > { %1453 = vst [vmem:[#allocation3 + $0x20] sm:$0xff] %v1429_v44  ;;  %v1427_v47 = vmin.f32 %v1403_v53, 6.0 }
 0x14c   : > { %1451 = vst [vmem:[#allocation3 + $0xb8] sm:$0xff] %v1427_v47 }
 0x153   : > { %v3699_v32 = vpop.f32.mrf.mxu0 }
 0x154   : > { %v1332_v57 = vadd.f32 %v3699_v32, %v4880_v12 }
 0x155   : > { %v1323_v14 = vpop.f32.mrf.mxu0 }
 0x156   : > { %v1408_v52 = vmax.f32 %v1332_v57, 0.0  ;;  %v1324_v48 = vadd.f32 %v4880_v12, %v1323_v14 }
 0x157   : > { %v3700_v50 = vpop.f32.mrf.mxu0 }
 0x158   : > { %v1432_v31 = vmin.f32 %v1408_v52, 6.0  ;;  %v1406_v25 = vmax.f32 %v1324_v48, 0.0  ;;  %v1335_v16 = vadd.f32 %v3700_v50, %v4880_v12 }
 0x159   : > { %v1326_v58 = vpop.f32.mrf.mxu0 }
 0x15a   : > { %1456 = vst [vmem:[#allocation3 + $0x48] sm:$0xff] %v1432_v31  ;;  %v1430_v10 = vmin.f32 %v1406_v25, 6.0  ;;  %v1409_v55 = vmax.f32 %v1335_v16, 0.0  ;;  %v1327_v11 = vadd.f32 %v4880_v12, %v1326_v58 }
 0x15c   : > { %1454 = vst [vmem:[#allocation3 + $0x70] sm:$0xff] %v1430_v10  ;;  %v1433_v28 = vmin.f32 %v1409_v55, 6.0  ;;  %v1407_v26 = vmax.f32 %v1327_v11, 0.0 }
 0x15e   : > { %1457 = vst [vmem:[#allocation3 + $0x60] sm:$0xff] %v1433_v28  ;;  %v1431_v33 = vmin.f32 %v1407_v26, 6.0 }
 0x160   : > { %1455 = vst [vmem:[#allocation3 + $0x98] sm:$0xff] %v1431_v33 }
 0x169   : > { %v3703_v51 = vpop.f32.mrf.mxu0 }
 0x16a   : > { %v1348_v3 = vadd.f32 %v3703_v51, %v4880_v12 }
 0x16b   : > { %v1339_v35 = vpop.f32.mrf.mxu0 }
 0x16c   : > { %v1412_v15 = vmax.f32 %v1348_v3, 0.0  ;;  %v1340_v54 = vadd.f32 %v4880_v12, %v1339_v35 }
 0x16d   : > { %v3704_v24 = vpop.f32.mrf.mxu0 }
 0x16e   : > { %v1436_v49 = vmin.f32 %v1412_v15, 6.0  ;;  %v1410_v27 = vmax.f32 %v1340_v54, 0.0  ;;  %v1351_v17 = vadd.f32 %v3704_v24, %v4880_v12 }
 0x16f   : > { %v1342_v60 = vpop.f32.mrf.mxu0 }
 0x170   : > { %1460 = vst [vmem:[#allocation3 + $0xc0] sm:$0xff] %v1436_v49  ;;  %v1434_v43 = vmin.f32 %v1410_v27, 6.0  ;;  %v1413_v20 = vmax.f32 %v1351_v17, 0.0  ;;  %v1343_v21 = vadd.f32 %v4880_v12, %v1342_v60 }
 0x172   : > { %1458 = vst [vmem:[#allocation3 + $0x18] sm:$0xff] %v1434_v43  ;;  %v1437_v38 = vmin.f32 %v1413_v20, 6.0  ;;  %v1411_v37 = vmax.f32 %v1343_v21, 0.0 }
 0x174   : > { %1461 = vst [vmem:[#allocation3] sm:$0xff] %v1437_v38  ;;  %v1435_v9 = vmin.f32 %v1411_v37, 6.0 }
 0x176   : > { %1459 = vst [vmem:[#allocation3 + $0x118] sm:$0xff] %v1435_v9 }
 0x180   : > { %v3707_v61 = vpop.f32.mrf.mxu0 }
 0x181   : > { %v1364_v56 = vadd.f32 %v3707_v61, %v4880_v12 }
 0x182   : > { %v1355_v22 = vpop.f32.mrf.mxu0 }
 0x183   : > { %v1416_v40 = vmax.f32 %v1364_v56, 0.0  ;;  %v1356_v41 = vadd.f32 %v4880_v12, %v1355_v22 }
 0x184   : > { %v3708_v23 = vpop.f32.mrf.mxu0 }
 0x185   : > { %v1440_v62 = vmin.f32 %v1416_v40, 6.0  ;;  %v1414_v42 = vmax.f32 %v1356_v41, 0.0  ;;  %v1367_v18 = vadd.f32 %v3708_v23, %v4880_v12 }
 0x186   : > { %v1358_v39 = vpop.f32.mrf.mxu0 }
 0x187   : > { %1464 = vst [vmem:[#allocation3 + $0xb0] sm:$0xff] %v1440_v62  ;;  %v1438_v45 = vmin.f32 %v1414_v42, 6.0  ;;  %v1417_v7 = vmax.f32 %v1367_v18, 0.0  ;;  %v1359_v46 = vadd.f32 %v4880_v12, %v1358_v39 }
 0x189   : > { %1462 = vst [vmem:[#allocation3 + $0x68] sm:$0xff] %v1438_v45  ;;  %v1441_v36 = vmin.f32 %v1417_v7, 6.0  ;;  %v1415_v4 = vmax.f32 %v1359_v46, 0.0 }
 0x18b   : > { %1465 = vst [vmem:[#allocation3 + $0x90] sm:$0xff] %v1441_v36  ;;  %v1439_v59 = vmin.f32 %v1415_v4, 6.0 }
 0x18d   : > { %1463 = vst [vmem:[#allocation3 + $0x38] sm:$0xff] %v1439_v59 }
 0x196   : > { %v3711_v0 = vpop.f32.mrf.mxu0 }
 0x197   : > { %v1380_v13 = vadd.f32 %v3711_v0, %v4880_v12 }
 0x198   : > { %v1371_v29 = vpop.f32.mrf.mxu0 }
 0x199   : > { %v1420_v6 = vmax.f32 %v1380_v13, 0.0  ;;  %v1372_v8 = vadd.f32 %v4880_v12, %v1371_v29 }
 0x19a   : > { %v3712_v30 = vpop.f32.mrf.mxu0 }
 0x19b   : > { %v1444_v19 = vmin.f32 %v1420_v6, 6.0  ;;  %v1418_v34 = vmax.f32 %v1372_v8, 0.0  ;;  %v1383_v2 = vadd.f32 %v3712_v30, %v4880_v12 }
 0x19c   : > { %v1374_v1 = vpop.f32.mrf.mxu0 }
 0x19d   : > { %1468 = vst [vmem:[#allocation3 + $0x80] sm:$0xff] %v1444_v19  ;;  %v1442_v63 = vmin.f32 %v1418_v34, 6.0  ;;  %v1421_v44 = vmax.f32 %v1383_v2, 0.0  ;;  %v1375_v53 = vadd.f32 %v4880_v12, %v1374_v1 }
 0x19f   : > { %1466 = vst [vmem:[#allocation3 + $0x100] sm:$0xff] %v1442_v63  ;;  %v1445_v47 = vmin.f32 %v1421_v44, 6.0  ;;  %v1419_v32 = vmax.f32 %v1375_v53, 0.0 }
 0x1a1   : > { %1469 = vst [vmem:[#allocation3 + $0x88] sm:$0xff] %v1445_v47  ;;  %v1443_v57 = vmin.f32 %v1419_v32, 6.0 }
 0x1a3   : > { %1467 = vst [vmem:[#allocation3 + $0xd8] sm:$0xff] %v1443_v57 }
 0x1ad   : > { %v3715_v14 = vpop.f32.mrf.mxu0 }
 0x1ae   : > { %v1396_v52 = vadd.f32 %v3715_v14, %v4880_v12 }
 0x1af   : > { %v1387_v48 = vpop.f32.mrf.mxu0 }
 0x1b0   : > { %v1424_v50 = vmax.f32 %v1396_v52, 0.0  ;;  %v1388_v31 = vadd.f32 %v4880_v12, %v1387_v48 }
 0x1b1   : > { %v3716_v25 = vpop.f32.mrf.mxu0 }
 0x1b2   : > { %v1448_v16 = vmin.f32 %v1424_v50, 6.0  ;;  %v1422_v58 = vmax.f32 %v1388_v31, 0.0  ;;  %v1399_v10 = vadd.f32 %v3716_v25, %v4880_v12 }
 0x1b3   : > { %v1390_v55 = vpop.f32.mrf.mxu0 }
 0x1b4   : > { %1472 = vst [vmem:[#allocation3 + $0xd0] sm:$0xff] %v1448_v16  ;;  %v1446_v11 = vmin.f32 %v1422_v58, 6.0  ;;  %v1425_v28 = vmax.f32 %v1399_v10, 0.0  ;;  %v1391_v26 = vadd.f32 %v4880_v12, %v1390_v55 }
 0x1b6   : > { %1470 = vst [vmem:[#allocation3 + $0xf0] sm:$0xff] %v1446_v11  ;;  %v1449_v33 = vmin.f32 %v1425_v28, 6.0  ;;  %v1423_v51 = vmax.f32 %v1391_v26, 0.0  ;;  %1477 = sbr.rel (%p3572_p7) target bundleno = 446 (0x1be), region = 48 }
 0x1b8   : > { %1473 = vst [vmem:[#allocation3 + $0xc8] sm:$0xff] %v1449_v33  ;;  %v1447_v3 = vmin.f32 %v1423_v51, 6.0 }
 0x1ba   : > { %1471 = vst [vmem:[#allocation3 + $0x10] sm:$0xff] %v1447_v3 }
 0x1bb   : > { %v4129_v35 = vmov 0.0  }
 0x1bc   : > { %1478 = vst [vmem:[#allocation3 + $0xe0] sm:$0xff] %v4129_v35  ;;  %1479 = vst [vmem:[#allocation3 + $0xb8] sm:$0xff] %v4129_v35 }
 0x1bd   : > { %1480 = vst [vmem:[#allocation3 + $0x28] sm:$0xff] %v4129_v35  ;;  %1481 = vst [vmem:[#allocation3 + $0x20] sm:$0xff] %v4129_v35 }
 0x1be PF: > { %p3573_p9 = scmp.ne.s32.totalorder %s4103_s18, 1 }
 0x1c0   : > { %1485 = sbr.rel (%p3573_p9) target bundleno = 456 (0x1c8), region = 52 }
 0x1c5   : > { %v4130_v12 = vmov 0.0  }
 0x1c6   : > { %1487 = vst [vmem:[#allocation3 + $0xf0] sm:$0xff] %v4130_v12  ;;  %1488 = vst [vmem:[#allocation3 + $0x10] sm:$0xff] %v4130_v12 }
 0x1c7   : > { %1489 = vst [vmem:[#allocation3 + $0xd0] sm:$0xff] %v4130_v12  ;;  %1490 = vst [vmem:[#allocation3 + $0xc8] sm:$0xff] %v4130_v12 }
 0x1c8 PF: > { %v3924_v15 = vld [vmem:[#allocation9 + $0x78] sm:$0xff]   ;;  %v3925_v54 = vld [vmem:[#allocation9 + $0x70] sm:$0xff]   ;;  %v3926_v24 = vld [vmem:[#allocation9 + $0x68] sm:$0xff]  }
 0x1c9   : > { %3785 = vmatprep.subr.bf16.mxu1 %v3924_v15  ;;  %3717 = vmatprep.subr.bf16.mxu0 %v3924_v15  ;;  %v3927_v49 = vld [vmem:[#allocation9 + $0x60] sm:$0xff]   ;;  %v4912_v27 = vld [vmem:[#allocation3 + $0xa8] sm:$0xff]  ;;  %v1498_v60 = vld [vmem:[#allocation3 + $0x98] sm:$0xff] }
 0x1ca   : > { %3793 = vmatpush3.bf16.msra.mxu1 %v3924_v15  ;;  %3718 = vmatpush3.bf16.msra.mxu0 %v3924_v15  ;;  %v4914_v17 = vld [vmem:[#allocation3 + $0x70] sm:$0xff]  ;;  %v4916_v43 = vld [vmem:[#allocation3 + $0x40] sm:$0xff]  ;;  %v1526_v20 = vrot.slane %v4912_v27, 7  ;;  %v1528_v38 = vrot.slane %v1498_v60, 7  ;;  %v4922_v37 = vld [vmem:[#allocation6 + $0x9] ss:$0 sm:$0xff] }
 0x1cb   : > { %3786 = vmatprep.subr.bf16.mxu1 %v3925_v54  ;;  %3719 = vmatprep.subr.bf16.mxu0 %v3925_v54  ;;  %v4920_v21 = vrot.slane %v4914_v17, 7  ;;  %v1529_v9 = vrot.slane %v4916_v43, 7  ;;  %v4925_v61 = vld [vmem:[#allocation6 + $0xa] ss:$0 sm:$0xff]  ;;  %v6033_v56 = vrot.slane %v4914_v17, 1  ;;  %v1668_v22 = vrot.slane %v1498_v60, 1 }
 0x1cc   : > { %v6034_v40 = vrot.slane %v4916_v43, 1  ;;  %v1625_v62 = vmul.f32 %v4925_v61, %v4914_v17  ;;  %v4939_v42 = vld [vmem:[#allocation6 + $0xb] ss:$0 sm:$0xff]  ;;  %v4941_v18 = vld [vmem:[#allocation3 + $0x48] sm:$0xff]  ;;  %v4943_v39 = vld [vmem:[#allocation3 + $0x60] sm:$0xff]  ;;  %v1929_v45 = vrot.slane %v4912_v27, 1  ;;  %v1626_v4 = vmul.f32 %v4925_v61, %v1498_v60 }
 0x1cd   : > { %v1565_v41 = vsel %vm313_vm0, %v4920_v21, %v1528_v38  ;;  %v4935_v23 = vsel %vm313_vm0, %v1526_v20, %v4920_v21  ;;  %v3928_v7 = vld [vmem:[#allocation9 + $0x58] sm:$0xff]   ;;  %v4952_v0 = vld [vmem:[#allocation3 + $0x18] sm:$0xff]  ;;  %v4955_v13 = vrot.slane %v4941_v18, 7  ;;  %v1706_v6 = vsel %vm480_vm1, %v6033_v56, %v1668_v22  ;;  %v3929_v53 = vld [vmem:[#allocation9 + $0x50] sm:$0xff]  }
 0x1ce   : > { %3794 = vmatpush3.bf16.msra.mxu1 %v3925_v54  ;;  %3720 = vmatpush3.bf16.msra.mxu0 %v3925_v54  ;;  %v1580_v46 = vmul.f32 %v4922_v37, %v4935_v23  ;;  %v1581_v36 = vmul.f32 %v4922_v37, %v1565_v41  ;;  %v4950_v59 = vld [vmem:[#allocation3 + $0xe8] sm:$0xff]  ;;  %v1705_v29 = vsel %vm480_vm1, %v1668_v22, %v6034_v40  ;;  %v1794_v8 = vrot.slane %v4943_v39, 7  ;;  %v4967_v19 = vld [vmem:[#allocation6 + $0xc] ss:$0 sm:$0xff]  ;;  %v4969_v34 = vld [vmem:[#allocation6 + $0xd] ss:$0 sm:$0xff] }
 0x1cf   : > { %3787 = vmatprep.subr.bf16.mxu1 %v3926_v24  ;;  %3721 = vmatprep.subr.bf16.mxu0 %v3926_v24  ;;  %v1795_v30 = vrot.slane %v4950_v59, 7  ;;  %v1720_v63 = vmul.f32 %v4939_v42, %v1706_v6  ;;  %v1721_v44 = vmul.f32 %v4939_v42, %v1705_v29  ;;  %v1796_v47 = vrot.slane %v4952_v0, 7  ;;  %v4982_v52 = vld [vmem:[#allocation3 + $0x118] sm:$0xff]  ;;  %v4986_v58 = vld [vmem:[#allocation3 + $0xc0] sm:$0xff] }
 0x1d0   : > { %v1645_v2 = vadd.f32 %v1625_v62, %v1580_v46  ;;  %v1646_v1 = vadd.f32 %v1626_v4, %v1581_v36  ;;  %v1831_v32 = vsel %vm313_vm0, %v4955_v13, %v1794_v8  ;;  %v1832_v57 = vsel %vm313_vm0, %v1529_v9, %v4955_v13  ;;  %v2031_v16 = vld [vmem:[#allocation3 + $0xf8] sm:$0xff]  ;;  %v5002_v15 = vld [vmem:[#allocation6 + $0x10] ss:$0 sm:$0xff] }
 0x1d1   : > { %v1891_v14 = vmul.f32 %v4969_v34, %v4941_v18  ;;  %v1846_v31 = vmul.f32 %v4967_v19, %v1832_v57  ;;  %v1847_v25 = vmul.f32 %v4967_v19, %v1831_v32  ;;  %v4988_v10 = vld [vmem:[#allocation6 + $0xf] ss:$0 sm:$0xff]  ;;  %v4992_v55 = vsel %vm313_vm0, %v1795_v30, %v1796_v47  ;;  %v4998_v33 = vld [vmem:[#allocation6 + $0xe] ss:$0 sm:$0xff] }
 0x1d2   : > { %3795 = vmatpush3.bf16.msra.mxu1 %v3926_v24  ;;  %3722 = vmatpush3.bf16.msra.mxu0 %v3926_v24  ;;  %v1740_v48 = vadd.f32 %v1720_v63, %v1645_v2  ;;  %v1741_v50 = vadd.f32 %v1721_v44, %v1646_v1  ;;  %v1892_v11 = vmul.f32 %v4969_v34, %v4943_v39  ;;  %v6029_v28 = vrot.slane %v4941_v18, 1  ;;  %v3930_v20 = vld [vmem:[#allocation9 + $0x48] sm:$0xff]   ;;  %v5035_v63 = vld [vmem:[#allocation6 + $0x11] ss:$0 sm:$0xff] }
 0x1d3   : > { %3788 = vmatprep.subr.bf16.mxu1 %v3927_v49  ;;  %3723 = vmatprep.subr.bf16.mxu0 %v3927_v49  ;;  %v1934_v26 = vrot.slane %v4943_v39, 1  ;;  %v6031_v35 = vrot.slane %v4950_v59, 1  ;;  %v2060_v12 = vrot.slane %v4982_v52, 7  ;;  %v2061_v24 = vrot.slane %v2031_v16, 7 }
 0x1d4   : > { %v1866_v51 = vadd.f32 %v1846_v31, %v1740_v48  ;;  %v1867_v3 = vadd.f32 %v1847_v25, %v1741_v50  ;;  %v2112_v60 = vmul.f32 %v4988_v10, %v4992_v55  ;;  %v2157_v36 = vmul.f32 %v5002_v15, %v4952_v0 }
 0x1d5   : > { %v1972_v54 = vsel %vm480_vm1, %v6029_v28, %v1934_v26  ;;  %v1971_v22 = vsel %vm480_vm1, %v1934_v26, %v6031_v35  ;;  %v2158_v6 = vmul.f32 %v5002_v15, %v4982_v52  ;;  %v2199_v8 = vrot.slane %v4952_v0, 1 }
 0x1d6   : > { %3796 = vmatpush3.bf16.msra.mxu1 %v3927_v49  ;;  %3724 = vmatpush3.bf16.msra.mxu0 %v3927_v49  ;;  %v2062_v49 = vrot.slane %v4986_v58, 7  ;;  %v1911_v38 = vadd.f32 %v1891_v14, %v1866_v51  ;;  %v1912_v9 = vadd.f32 %v1892_v11, %v1867_v3  ;;  %v1986_v41 = vmul.f32 %v4998_v33, %v1972_v54 }
 0x1d7   : > { %3789 = vmatprep.subr.bf16.mxu1 %v3928_v7  ;;  %3725 = vmatprep.subr.bf16.mxu0 %v3928_v7  ;;  %v1987_v62 = vmul.f32 %v4998_v33, %v1971_v22  ;;  %v2200_v2 = vrot.slane %v4982_v52, 1  ;;  %v2201_v1 = vrot.slane %v2031_v16, 1  ;;  %v1582_v44 = vmul.f32 %v4922_v37, %v1832_v57 }
 0x1d8   : > { %v5021_v46 = vsel %vm313_vm0, %v2061_v24, %v2062_v49  ;;  %v2006_v4 = vadd.f32 %v1986_v41, %v1911_v38  ;;  %v1583_v48 = vmul.f32 %v4922_v37, %v1831_v32  ;;  %v1627_v50 = vmul.f32 %v4925_v61, %v4941_v18 }
 0x1d9   : > { %v2007_v30 = vadd.f32 %v1987_v62, %v1912_v9  ;;  %v1628_v31 = vmul.f32 %v4925_v61, %v4943_v39  ;;  %v2237_v16 = vsel %vm480_vm1, %v2200_v2, %v2201_v1  ;;  %v2238_v11 = vsel %vm480_vm1, %v2199_v8, %v2200_v2 }
 0x1da   : > { %3797 = vmatpush3.bf16.msra.mxu1 %v3928_v7  ;;  %3726 = vmatpush3.bf16.msra.mxu0 %v3928_v7  ;;  %v5025_v7 = vsel %vm313_vm0, %v1796_v47, %v2060_v12  ;;  %v3931_v47 = vld [vmem:[#allocation9 + $0x40] sm:$0xff]   ;;  %v2132_v14 = vadd.f32 %v2112_v60, %v2006_v4  ;;  %v2252_v26 = vmul.f32 %v5035_v63, %v2238_v11  ;;  %v5053_v60 = vld [vmem:[#allocation3] sm:$0xff] }
 0x1db   : > { %3790 = vmatprep.subr.bf16.mxu1 %v3929_v53  ;;  %3727 = vmatprep.subr.bf16.mxu0 %v3929_v53  ;;  %v2113_v29 = vmul.f32 %v4988_v10, %v5025_v7  ;;  %v2253_v32 = vmul.f32 %v5035_v63, %v2237_v16  ;;  %v1647_v51 = vadd.f32 %v1627_v50, %v1582_v44 }
 0x1dc   : > { %v2177_v57 = vadd.f32 %v2157_v36, %v2132_v14  ;;  %v1648_v12 = vadd.f32 %v1628_v31, %v1583_v48  ;;  %v1723_v39 = vmul.f32 %v4939_v42, %v1971_v22  ;;  %v1848_v24 = vmul.f32 %v4967_v19, %v4992_v55 }
 0x1dd   : > { %v2133_v25 = vadd.f32 %v2113_v29, %v2007_v30  ;;  %v1849_v9 = vmul.f32 %v4967_v19, %v5025_v7  ;;  %v1893_v41 = vmul.f32 %v4969_v34, %v4952_v0  ;;  %v1894_v4 = vmul.f32 %v4969_v34, %v4982_v52  ;;  %v2034_v29 = vld [vmem:[#allocation3 + $0x8] sm:$0xff] }
 0x1de   : > { %3798 = vmatpush3.bf16.msra.mxu1 %v3929_v53  ;;  %3728 = vmatpush3.bf16.msra.mxu0 %v3929_v53  ;;  %v1722_v53 = vmul.f32 %v4939_v42, %v1972_v54  ;;  %v2272_v38 = vadd.f32 %v2252_v26, %v2177_v57  ;;  %v1743_v36 = vadd.f32 %v1723_v39, %v1648_v12  ;;  %v2063_v30 = vrot.slane %v5053_v60, 7 }
 0x1df   : > { %3791 = vmatprep.subr.bf16.mxu1 %v3930_v20  ;;  %3729 = vmatprep.subr.bf16.mxu0 %v3930_v20  ;;  %v2178_v3 = vadd.f32 %v2158_v6, %v2133_v25  ;;  %v1988_v22 = vmul.f32 %v4998_v33, %v2238_v11  ;;  %v1989_v8 = vmul.f32 %v4998_v33, %v2237_v16  ;;  %v2064_v2 = vrot.slane %v2034_v29, 7 }
 0x1e0   : > { %v1742_v54 = vadd.f32 %v1722_v53, %v1647_v51  ;;  %v1869_v44 = vadd.f32 %v1849_v9, %v1743_v36  ;;  %v2114_v14 = vmul.f32 %v4988_v10, %v5021_v46  ;;  %v2159_v48 = vmul.f32 %v5002_v15, %v4986_v58 }
 0x1e1   : > { %v2273_v62 = vadd.f32 %v2253_v32, %v2178_v3  ;;  %v2160_v31 = vmul.f32 %v5002_v15, %v5053_v60  ;;  %v2202_v25 = vrot.slane %v4986_v58, 1  ;;  %v2203_v26 = vrot.slane %v5053_v60, 1 }
 0x1e2   : > { %3799 = vmatpush3.bf16.msra.mxu1 %v3930_v20  ;;  %3730 = vmatpush3.bf16.msra.mxu0 %v3930_v20  ;;  %v1868_v6 = vadd.f32 %v1848_v24, %v1742_v54  ;;  %v5072_v20 = vsel %vm313_vm0, %v2062_v49, %v2063_v30  ;;  %v1914_v53 = vadd.f32 %v1894_v4, %v1869_v44  ;;  %v2204_v32 = vrot.slane %v2034_v29, 1  ;;  %v5096_v4 = vld [vmem:[#allocation3 + $0x68] sm:$0xff] }
 0x1e3   : > { %3792 = vmatprep.subr.bf16.mxu1 %v3931_v47  ;;  %3731 = vmatprep.subr.bf16.mxu0 %v3931_v47  ;;  %v2290_v1 = vpack.c.bf16 %v2273_v62, %v2272_v38  ;;  %v2115_v57 = vmul.f32 %v4988_v10, %v5072_v20  ;;  %v1584_v3 = vmul.f32 %v4922_v37, %v4992_v55 }
 0x1e4   : > { %v1913_v50 = vadd.f32 %v1893_v41, %v1868_v6  ;;  %v1585_v49 = vmul.f32 %v4922_v37, %v5025_v7  ;;  %v1629_v12 = vmul.f32 %v4925_v61, %v4952_v0  ;;  %v2009_v39 = vadd.f32 %v1989_v8, %v1914_v53  ;;  %v5104_v8 = vld [vmem:[#allocation3 + $0x38] sm:$0xff] }
 0x1e5   : > { %3737 = vmatprep.mubr.bf16.mxu1 %v2290_v1  ;;  %v2235_v24 = vsel %vm480_vm1, %v2203_v26, %v2204_v32  ;;  %v2236_v38 = vsel %vm480_vm1, %v2202_v25, %v2203_v26  ;;  %v1724_v0 = vmul.f32 %v4939_v42, %v2238_v11  ;;  %v1725_v36 = vmul.f32 %v4939_v42, %v2237_v16  ;;  %v5108_v11 = vld [vmem:[#allocation3 + $0xa0] sm:$0xff] }
 0x1e6   : > { %3800 = vmatpush3.bf16.msra.mxu1 %v3931_v47  ;;  %3732 = vmatpush3.bf16.msra.mxu0 %v3931_v47  ;;  %v2008_v51 = vadd.f32 %v1988_v22, %v1913_v50  ;;  %v1630_v47 = vmul.f32 %v4925_v61, %v4982_v52  ;;  %v2254_v9 = vmul.f32 %v5035_v63, %v2236_v38  ;;  %v2065_v25 = vrot.slane %v5096_v4, 7 }
 0x1e7   : > { %v2255_v55 = vmul.f32 %v5035_v63, %v2235_v24  ;;  %v1649_v41 = vadd.f32 %v1629_v12, %v1584_v3  ;;  %v2135_v7 = vadd.f32 %v2115_v57, %v2009_v39  ;;  %v1850_v29 = vmul.f32 %v4967_v19, %v5021_v46 }
 0x1e8   : > { %v2134_v54 = vadd.f32 %v2114_v14, %v2008_v51  ;;  %v1650_v62 = vadd.f32 %v1630_v47, %v1585_v49  ;;  %v1851_v52 = vmul.f32 %v4967_v19, %v5072_v20  ;;  %v1895_v6 = vmul.f32 %v4969_v34, %v4986_v58 }
 0x1e9   : > { %v2180_v30 = vadd.f32 %v2160_v31, %v2135_v7  ;;  %v1744_v1 = vadd.f32 %v1724_v0, %v1649_v41  ;;  %v1896_v16 = vmul.f32 %v4969_v34, %v5053_v60  ;;  %v1991_v50 = vmul.f32 %v4998_v33, %v2235_v24 }
 0x1ea   : > { %v2179_v22 = vadd.f32 %v2159_v48, %v2134_v54  ;;  %v1745_v44 = vadd.f32 %v1725_v36, %v1650_v62  ;;  %v1990_v48 = vmul.f32 %v4998_v33, %v2236_v38  ;;  %v2066_v32 = vrot.slane %v5104_v8, 7 }
 0x1eb   : > { %v2275_v53 = vadd.f32 %v2255_v55, %v2180_v30  ;;  %v1870_v57 = vadd.f32 %v1850_v29, %v1744_v1  ;;  %v2067_v31 = vrot.slane %v5108_v11, 7  ;;  %v5117_v51 = vsel %vm313_vm0, %v2064_v2, %v2065_v25 }
 0x1ec   : > { %v2274_v14 = vadd.f32 %v2254_v9, %v2179_v22  ;;  %v1871_v26 = vadd.f32 %v1851_v52, %v1745_v44  ;;  %v2161_v3 = vmul.f32 %v5002_v15, %v5096_v4  ;;  %v2162_v49 = vmul.f32 %v5002_v15, %v5104_v8 }
 0x1ed   : > { %v1915_v39 = vadd.f32 %v1895_v6, %v1870_v57  ;;  %v2093_v54 = vsel %vm313_vm0, %v2065_v25, %v2066_v32  ;;  %v2116_v9 = vmul.f32 %v4988_v10, %v5117_v51  ;;  %v2205_v2 = vrot.slane %v5096_v4, 1  ;;  %v5149_v25 = vld [vmem:[#allocation3 + $0xb0] sm:$0xff] }
 0x1ee   : > { %v2291_v12 = vpack.c.bf16 %v2275_v53, %v2274_v14  ;;  %v1916_v47 = vadd.f32 %v1896_v16, %v1871_v26  ;;  %v2117_v55 = vmul.f32 %v4988_v10, %v2093_v54  ;;  %v2206_v41 = vrot.slane %v5104_v8, 1  ;;  %v5151_v53 = vld [vmem:[#allocation3 + $0x90] sm:$0xff] }
 0x1ef   : > { %v2010_v7 = vadd.f32 %v1990_v48, %v1915_v39  ;;  %v2207_v0 = vrot.slane %v5108_v11, 1  ;;  %v1586_v36 = vmul.f32 %v4922_v37, %v5021_v46  ;;  %v1587_v29 = vmul.f32 %v4922_v37, %v5072_v20 }
 0x1f0   : > { %3738 = vmatmul.mubr.bf16.vlgmr.msra.gmra.mxu1 %v2291_v12  ;;  %v2011_v62 = vadd.f32 %v1991_v50, %v1916_v47  ;;  %v2234_v22 = vsel %vm480_vm1, %v2205_v2, %v2206_v41  ;;  %v1631_v52 = vmul.f32 %v4925_v61, %v4986_v58  ;;  %v1632_v6 = vmul.f32 %v4925_v61, %v5053_v60 }
 0x1f1   : > { %v2136_v30 = vadd.f32 %v2116_v9, %v2010_v7  ;;  %v2233_v44 = vsel %vm480_vm1, %v2206_v41, %v2207_v0  ;;  %v2256_v16 = vmul.f32 %v5035_v63, %v2234_v22  ;;  %v1726_v48 = vmul.f32 %v4939_v42, %v2236_v38  ;;  %v2040_v9 = vld [vmem:[#allocation3 + $0x58] sm:$0xff] }
 0x1f2   : > { %v2137_v1 = vadd.f32 %v2117_v55, %v2011_v62  ;;  %v2257_v46 = vmul.f32 %v5035_v63, %v2233_v44  ;;  %v1651_v11 = vadd.f32 %v1631_v52, %v1586_v36  ;;  %v1652_v14 = vadd.f32 %v1632_v6, %v1587_v29 }
 0x1f3   : > { %v2181_v20 = vadd.f32 %v2161_v3, %v2136_v30  ;;  %v1727_v58 = vmul.f32 %v4939_v42, %v2235_v24  ;;  %v1852_v60 = vmul.f32 %v4967_v19, %v5117_v51  ;;  %v1853_v26 = vmul.f32 %v4967_v19, %v2093_v54 }
 0x1f4   : > { %v2182_v50 = vadd.f32 %v2162_v49, %v2137_v1  ;;  %v1746_v57 = vadd.f32 %v1726_v48, %v1651_v11  ;;  %v1897_v32 = vmul.f32 %v4969_v34, %v5096_v4  ;;  %v1898_v38 = vmul.f32 %v4969_v34, %v5104_v8 }
 0x1f5   : > { %v2276_v3 = vadd.f32 %v2256_v16, %v2181_v20  ;;  %v1747_v12 = vadd.f32 %v1727_v58, %v1652_v14  ;;  %v1992_v24 = vmul.f32 %v4998_v33, %v2234_v22  ;;  %v1993_v47 = vmul.f32 %v4998_v33, %v2233_v44 }
 0x1f6   : > { %v2277_v49 = vadd.f32 %v2257_v46, %v2182_v50  ;;  %v1872_v39 = vadd.f32 %v1852_v60, %v1746_v57  ;;  %v2068_v55 = vrot.slane %v5149_v25, 7  ;;  %v2069_v2 = vrot.slane %v5151_v53, 7 }
 0x1f7   : > { %v1873_v7 = vadd.f32 %v1853_v26, %v1747_v12  ;;  %v2070_v62 = vrot.slane %v2040_v9, 7  ;;  %v2163_v0 = vmul.f32 %v5002_v15, %v5149_v25  ;;  %v2164_v6 = vmul.f32 %v5002_v15, %v5151_v53 }
 0x1f8   : > { %v2292_v41 = vpack.c.bf16 %v2277_v49, %v2276_v3  ;;  %v1917_v36 = vadd.f32 %v1897_v32, %v1872_v39  ;;  %v2091_v29 = vsel %vm313_vm0, %v2068_v55, %v2069_v2  ;;  %v2092_v52 = vsel %vm313_vm0, %v2067_v31, %v2068_v55  ;;  %v5190_v39 = vld [vmem:[#allocation3 + $0x100] sm:$0xff]  ;;  %v5195_v2 = vld [vmem:[#allocation3 + $0xd8] sm:$0xff] }
 0x1f9   : > { %v1918_v30 = vadd.f32 %v1898_v38, %v1873_v7  ;;  %v2118_v1 = vmul.f32 %v4988_v10, %v2092_v52  ;;  %v2119_v16 = vmul.f32 %v4988_v10, %v2091_v29  ;;  %v2208_v46 = vrot.slane %v5149_v25, 1 }
 0x1fa   : > { %3741 = vmatprep.mubr.bf16.mxu1 %v2292_v41  ;;  %v2012_v11 = vadd.f32 %v1992_v24, %v1917_v36  ;;  %v2209_v14 = vrot.slane %v5151_v53, 1  ;;  %v2210_v48 = vrot.slane %v2040_v9, 1  ;;  %v1588_v20 = vmul.f32 %v4922_v37, %v5117_v51  ;;  %v5197_v41 = vld [vmem:[#allocation3 + $0x30] sm:$0xff] }
 0x1fb   : > { %v2013_v50 = vadd.f32 %v1993_v47, %v1918_v30  ;;  %v1589_v31 = vmul.f32 %v4922_v37, %v2093_v54  ;;  %v1633_v58 = vmul.f32 %v4925_v61, %v5096_v4  ;;  %v1634_v60 = vmul.f32 %v4925_v61, %v5104_v8 }
 0x1fc   : > { %v2138_v57 = vadd.f32 %v2118_v1, %v2012_v11  ;;  %v2231_v26 = vsel %vm480_vm1, %v2209_v14, %v2210_v48  ;;  %v2232_v32 = vsel %vm480_vm1, %v2208_v46, %v2209_v14  ;;  %v1728_v38 = vmul.f32 %v4939_v42, %v2234_v22 }
 0x1fd   : > { %v2139_v3 = vadd.f32 %v2119_v16, %v2013_v50  ;;  %v2258_v51 = vmul.f32 %v5035_v63, %v2232_v32  ;;  %v2259_v54 = vmul.f32 %v5035_v63, %v2231_v26  ;;  %v1653_v49 = vadd.f32 %v1633_v58, %v1588_v20 }
 0x1fe   : > { %v2183_v12 = vadd.f32 %v2163_v0, %v2138_v57  ;;  %v1654_v4 = vadd.f32 %v1634_v60, %v1589_v31  ;;  %v1729_v24 = vmul.f32 %v4939_v42, %v2233_v44  ;;  %v1854_v8 = vmul.f32 %v4967_v19, %v2092_v52 }
 0x1ff   : > { %v2184_v47 = vadd.f32 %v2164_v6, %v2139_v3  ;;  %v1748_v9 = vadd.f32 %v1728_v38, %v1653_v49  ;;  %v1855_v55 = vmul.f32 %v4967_v19, %v2091_v29  ;;  %v1899_v22 = vmul.f32 %v4969_v34, %v5149_v25 }
 0x200   : > { %v2278_v7 = vadd.f32 %v2258_v51, %v2183_v12  ;;  %v1749_v0 = vadd.f32 %v1729_v24, %v1654_v4  ;;  %v1900_v44 = vmul.f32 %v4969_v34, %v5151_v53  ;;  %v1994_v36 = vmul.f32 %v4998_v33, %v2232_v32 }
 0x201   : > { %v2279_v30 = vadd.f32 %v2259_v54, %v2184_v47  ;;  %v1874_v1 = vadd.f32 %v1854_v8, %v1748_v9  ;;  %v1995_v6 = vmul.f32 %v4998_v33, %v2231_v26  ;;  %v2071_v16 = vrot.slane %v5190_v39, 7 }
 0x202   : > { %v1875_v46 = vadd.f32 %v1855_v55, %v1749_v0  ;;  %v2072_v11 = vrot.slane %v5195_v2, 7  ;;  %v2073_v14 = vrot.slane %v5197_v41, 7  ;;  %v2165_v48 = vmul.f32 %v5002_v15, %v5190_v39 }
 0x203   : > { %v2293_v20 = vpack.c.bf16 %v2279_v30, %v2278_v7  ;;  %v1919_v50 = vadd.f32 %v1899_v22, %v1874_v1  ;;  %v5210_v31 = vsel %vm313_vm0, %v2070_v62, %v2071_v16  ;;  %v2166_v58 = vmul.f32 %v5002_v15, %v5195_v2  ;;  %v5245_v30 = vld [vmem:[#allocation3 + $0x80] sm:$0xff] }
 0x204   : > { %v1920_v60 = vadd.f32 %v1900_v44, %v1875_v46  ;;  %v5216_v57 = vsel %vm313_vm0, %v2071_v16, %v2072_v11  ;;  %v2120_v38 = vmul.f32 %v4988_v10, %v5210_v31  ;;  %v2211_v3 = vrot.slane %v5190_v39, 1  ;;  %v5253_v46 = vld [vmem:[#allocation3 + $0x88] sm:$0xff] }
 0x205   : > { %3742 = vmatmul.mubr.bf16.gmra.mxu1 %v2293_v20  ;;  %v2014_v51 = vadd.f32 %v1994_v36, %v1919_v50  ;;  %v2121_v54 = vmul.f32 %v4988_v10, %v5216_v57  ;;  %v2212_v62 = vrot.slane %v5195_v2, 1  ;;  %v2213_v49 = vrot.slane %v5197_v41, 1  ;;  %v5255_v11 = vld [vmem:[#allocation3 + $0x108] sm:$0xff] }
 0x206   : > { %v2015_v12 = vadd.f32 %v1995_v6, %v1920_v60  ;;  %v1590_v4 = vmul.f32 %v4922_v37, %v2092_v52  ;;  %v1591_v24 = vmul.f32 %v4922_v37, %v2091_v29  ;;  %v1635_v8 = vmul.f32 %v4925_v61, %v5149_v25 }
 0x207   : > { %v2140_v47 = vadd.f32 %v2120_v38, %v2014_v51  ;;  %v5231_v9 = vsel %vm480_vm1, %v2212_v62, %v2213_v49  ;;  %v5235_v55 = vsel %vm480_vm1, %v2211_v3, %v2212_v62  ;;  %v1636_v22 = vmul.f32 %v4925_v61, %v5151_v53 }
 0x208   : > { %v2141_v41 = vadd.f32 %v2121_v54, %v2015_v12  ;;  %v2260_v52 = vmul.f32 %v5035_v63, %v5235_v55  ;;  %v2261_v29 = vmul.f32 %v5035_v63, %v5231_v9  ;;  %v1655_v25 = vadd.f32 %v1635_v8, %v1590_v4  ;;  %v1491_v8 = vld [vmem:[#allocation3 + $0xe0] sm:$0xff] }
 0x209   : > { %v2185_v7 = vadd.f32 %v2165_v48, %v2140_v47  ;;  %v1656_v0 = vadd.f32 %v1636_v22, %v1591_v24  ;;  %v1730_v44 = vmul.f32 %v4939_v42, %v2232_v32  ;;  %v1731_v36 = vmul.f32 %v4939_v42, %v2231_v26  ;;  %v1492_v47 = vld [vmem:[#allocation3 + $0xb8] sm:$0xff] }
 0x20a   : > { %v2186_v1 = vadd.f32 %v2166_v58, %v2141_v41  ;;  %v1856_v53 = vmul.f32 %v4967_v19, %v5210_v31  ;;  %v1857_v6 = vmul.f32 %v4967_v19, %v5216_v57  ;;  %v1901_v16 = vmul.f32 %v4969_v34, %v5190_v39 }
 0x20b   : > { %v2280_v48 = vadd.f32 %v2260_v52, %v2185_v7  ;;  %v1750_v32 = vadd.f32 %v1730_v44, %v1655_v25  ;;  %v1751_v20 = vadd.f32 %v1731_v36, %v1656_v0  ;;  %v1902_v26 = vmul.f32 %v4969_v34, %v5195_v2  ;;  %v5280_v25 = vld [vmem:[#allocation3 + $0x78] sm:$0xff] }
 0x20c   : > { %v2281_v50 = vadd.f32 %v2261_v29, %v2186_v1  ;;  %v1996_v58 = vmul.f32 %v4998_v33, %v5235_v55  ;;  %v1997_v60 = vmul.f32 %v4998_v33, %v5231_v9  ;;  %v2074_v38 = vrot.slane %v5245_v30, 7 }
 0x20d   : > { %v1876_v3 = vadd.f32 %v1856_v53, %v1750_v32  ;;  %v1877_v51 = vadd.f32 %v1857_v6, %v1751_v20  ;;  %v2075_v54 = vrot.slane %v5253_v46, 7  ;;  %v6030_v62 = vrot.slane %v5255_v11, 7 }
 0x20e   : > { %v2294_v49 = vpack.c.bf16 %v2281_v50, %v2280_v48  ;;  %v5268_v12 = vsel %vm313_vm0, %v2073_v14, %v2074_v38  ;;  %v2167_v4 = vmul.f32 %v5002_v15, %v5245_v30  ;;  %v2168_v24 = vmul.f32 %v5002_v15, %v5253_v46 }
 0x20f   : > { %v1921_v22 = vadd.f32 %v1901_v16, %v1876_v3  ;;  %v1922_v41 = vadd.f32 %v1902_v26, %v1877_v51  ;;  %v5276_v52 = vsel %vm313_vm0, %v2074_v38, %v2075_v54  ;;  %v2122_v29 = vmul.f32 %v4988_v10, %v5268_v12  ;;  %v5301_v38 = vld [vmem:[#allocation3 + $0x28] sm:$0xff]  ;;  %v5303_v3 = vld [vmem:[#allocation3 + $0x20] sm:$0xff] }
 0x210   : > { %3745 = vmatprep.mubr.bf16.mxu1 %v2294_v49  ;;  %v2123_v14 = vmul.f32 %v4988_v10, %v5276_v52  ;;  %v2214_v7 = vrot.slane %v5245_v30, 1  ;;  %v2215_v0 = vrot.slane %v5253_v46, 1  ;;  %v2216_v44 = vrot.slane %v5255_v11, 1 }
 0x211   : > { %v2016_v36 = vadd.f32 %v1996_v58, %v1921_v22  ;;  %v2017_v1 = vadd.f32 %v1997_v60, %v1922_v41  ;;  %v1521_v53 = vrot.slane %v1491_v8, 7  ;;  %v1522_v6 = vrot.slane %v1492_v47, 7 }
 0x212   : > { %v5289_v16 = vsel %vm480_vm1, %v2215_v0, %v2216_v44  ;;  %v5293_v48 = vsel %vm480_vm1, %v2214_v7, %v2215_v0  ;;  %v1621_v20 = vmul.f32 %v4925_v61, %v1491_v8  ;;  %v1622_v49 = vmul.f32 %v4925_v61, %v1492_v47  ;;  %v5314_v0 = vld [vmem:[#allocation3 + $0x110] sm:$0xff] }
 0x213   : > { %v2142_v26 = vadd.f32 %v2122_v29, %v2016_v36  ;;  %v2143_v50 = vadd.f32 %v2123_v14, %v2017_v1  ;;  %v2262_v58 = vmul.f32 %v5035_v63, %v5293_v48  ;;  %v2263_v60 = vmul.f32 %v5035_v63, %v5289_v16  ;;  %6048 = vst [vmem:[#allocation21_spill] sm:$0xff] %v5314_v0 }
 0x214   : > { %v1569_v51 = vsel %vm313_vm0, %v1521_v53, %v1522_v6  ;;  %v1570_v54 = vsel %vm313_vm0, %v6030_v62, %v1521_v53  ;;  %v1661_v22 = vrot.slane %v1491_v8, 1  ;;  %v1662_v44 = vrot.slane %v1492_v47, 1 }
 0x215   : > { %v2187_v41 = vadd.f32 %v2167_v4, %v2142_v26  ;;  %v2188_v29 = vadd.f32 %v2168_v24, %v2143_v50  ;;  %v1576_v14 = vmul.f32 %v4922_v37, %v1570_v54  ;;  %v1577_v7 = vmul.f32 %v4922_v37, %v1569_v51  ;;  %v2023_v26 = vld [vmem:[#allocation3 + $0x70] sm:$0xff]  ;;  %v2025_v54 = vld [vmem:[#allocation3 + $0x40] sm:$0xff] }
 0x216   : > { %v1663_v36 = vrot.slane %v5280_v25, 1  ;;  %v1787_v1 = vrot.slane %v5301_v38, 7  ;;  %v1788_v6 = vrot.slane %v5303_v3, 7  ;;  %v1710_v24 = vsel %vm480_vm1, %v1661_v22, %v1662_v44 }
 0x217   : > { %v2282_v28 = vadd.f32 %v2262_v58, %v2187_v41  ;;  %v2283_v53 = vadd.f32 %v2263_v60, %v2188_v29  ;;  %v1641_v62 = vadd.f32 %v1621_v20, %v1576_v14  ;;  %v1642_v35 = vadd.f32 %v1622_v49, %v1577_v7  ;;  %v2024_v60 = vld [vmem:[#allocation3 + $0x98] sm:$0xff]  ;;  %v5329_v49 = vld [vmem:[#allocation3 + $0x50] sm:$0xff] }
 0x218   : > { %v1709_v4 = vsel %vm480_vm1, %v1662_v44, %v1663_v36  ;;  %v6032_v8 = vrot.slane %v5314_v0, 7  ;;  %v1835_v47 = vsel %vm313_vm0, %v1787_v1, %v1788_v6  ;;  %v1716_v51 = vmul.f32 %v4939_v42, %v1710_v24  ;;  %6049 = vst [vmem:[#allocation22_spill] sm:$0xff] %v5329_v49 }
 0x219   : > { %v2295_v50 = vpack.c.bf16 %v2283_v53, %v2282_v28  ;;  %v1717_v58 = vmul.f32 %v4939_v42, %v1709_v4  ;;  %v1843_v20 = vmul.f32 %v4967_v19, %v1835_v47  ;;  %v1887_v41 = vmul.f32 %v4969_v34, %v5301_v38 }
 0x21a   : > { %v1836_v22 = vsel %vm313_vm0, %v6032_v8, %v1787_v1  ;;  %v1888_v28 = vmul.f32 %v4969_v34, %v5303_v3  ;;  %v1927_v29 = vrot.slane %v5301_v38, 1  ;;  %v1736_v14 = vadd.f32 %v1716_v51, %v1641_v62 }
 0x21b   : > { %3746 = vmatmul.mubr.bf16.gmra.mxu1 %v2295_v50  ;;  %v1737_v7 = vadd.f32 %v1717_v58, %v1642_v35  ;;  %v1842_v44 = vmul.f32 %v4967_v19, %v1836_v22  ;;  %v1928_v36 = vrot.slane %v5303_v3, 1  ;;  %v2053_v6 = vrot.slane %v2023_v26, 7 }
 0x21c   : > { %v2054_v53 = vrot.slane %v2024_v60, 7  ;;  %v2055_v4 = vrot.slane %v2025_v54, 7  ;;  %v2082_v24 = vrot.slane %v5329_v49, 7  ;;  %v2195_v49 = vrot.slane %v2025_v54, 1 }
 0x21d   : > { %v1862_v8 = vadd.f32 %v1842_v44, %v1736_v14  ;;  %v1863_v56 = vadd.f32 %v1843_v20, %v1737_v7  ;;  %v1975_v40 = vsel %vm480_vm1, %v1928_v36, %v1929_v45  ;;  %v1976_v62 = vsel %vm480_vm1, %v1927_v29, %v1928_v36 }
 0x21e   : > { %v1982_v35 = vmul.f32 %v4998_v33, %v1976_v62  ;;  %v1983_v50 = vmul.f32 %v4998_v33, %v1975_v40  ;;  %v2100_v51 = vsel %vm313_vm0, %v2055_v4, %v4955_v13  ;;  %v2101_v58 = vsel %vm313_vm0, %v2053_v6, %v2054_v53 }
 0x21f   : > { %v1907_v20 = vadd.f32 %v1887_v41, %v1862_v8  ;;  %v1908_v22 = vadd.f32 %v1888_v28, %v1863_v56  ;;  %v2102_v27 = vsel %vm313_vm0, %v2082_v24, %v2053_v6  ;;  %v2109_v45 = vmul.f32 %v4988_v10, %v2101_v58 }
 0x220   : > { %v2108_v29 = vmul.f32 %v4988_v10, %v2102_v27  ;;  %v2153_v14 = vmul.f32 %v5002_v15, %v2023_v26  ;;  %v2154_v7 = vmul.f32 %v5002_v15, %v2024_v60  ;;  %v2193_v44 = vrot.slane %v2023_v26, 1 }
 0x221   : > { %v2002_v36 = vadd.f32 %v1982_v35, %v1907_v20  ;;  %v2003_v32 = vadd.f32 %v1983_v50, %v1908_v22  ;;  %v2194_v4 = vrot.slane %v2024_v60, 1  ;;  %v6050_v0 = vrot.slane %v5280_v25, 7  ;;  %v2027_v22 = vld [vmem:[#allocation3 + $0x60] sm:$0xff] }
 0x222   : > { %v1579_v8 = vmul.f32 %v4922_v37, %v1835_v47  ;;  %v1623_v41 = vmul.f32 %v4925_v61, %v5301_v38  ;;  %v1624_v28 = vmul.f32 %v4925_v61, %v5303_v3  ;;  %v1718_v50 = vmul.f32 %v4939_v42, %v1976_v62 }
 0x223   : > { %v1568_v56 = vsel %vm313_vm0, %v6050_v0, %v1787_v1  ;;  %v2128_v6 = vadd.f32 %v2108_v29, %v2002_v36  ;;  %v2129_v24 = vadd.f32 %v2109_v45, %v2003_v32  ;;  %v2241_v26 = vsel %vm480_vm1, %v2194_v4, %v2195_v49 }
 0x224   : > { %v2242_v54 = vsel %vm480_vm1, %v2193_v44, %v2194_v4  ;;  %v2249_v0 = vmul.f32 %v5035_v63, %v2241_v26  ;;  %v1578_v1 = vmul.f32 %v4922_v37, %v1568_v56  ;;  %v1644_v47 = vadd.f32 %v1624_v28, %v1579_v8 }
 0x225   : > { %v2248_v25 = vmul.f32 %v5035_v63, %v2242_v54  ;;  %v2173_v35 = vadd.f32 %v2153_v14, %v2128_v6  ;;  %v2174_v38 = vadd.f32 %v2154_v7, %v2129_v24  ;;  %v1719_v3 = vmul.f32 %v4939_v42, %v1975_v40 }
 0x226   : > { %v1643_v32 = vadd.f32 %v1623_v41, %v1578_v1  ;;  %v1833_v49 = vsel %vm313_vm0, %v4920_v21, %v2054_v53  ;;  %v1844_v58 = vmul.f32 %v4967_v19, %v4935_v23  ;;  %v1889_v20 = vmul.f32 %v4969_v34, %v4914_v17 }
 0x227   : > { %v2268_v27 = vadd.f32 %v2248_v25, %v2173_v35  ;;  %v2269_v45 = vadd.f32 %v2249_v0, %v2174_v38  ;;  %v1739_v29 = vadd.f32 %v1719_v3, %v1644_v47  ;;  %v1845_v14 = vmul.f32 %v4967_v19, %v1833_v49 }
 0x228   : > { %v1738_v62 = vadd.f32 %v1718_v50, %v1643_v32  ;;  %v1890_v40 = vmul.f32 %v4969_v34, %v2024_v60  ;;  %v2057_v36 = vrot.slane %v2027_v22, 7  ;;  %v2110_v21 = vmul.f32 %v4988_v10, %v2100_v51 }
 0x229   : > { %v2288_v7 = vpack.c.bf16 %v2269_v45, %v2268_v27  ;;  %v1865_v44 = vadd.f32 %v1845_v14, %v1739_v29  ;;  %v6051_v23 = vrot.slane %v4916_v43, 1  ;;  %v6052_v8 = vrot.slane %v4914_v17, 1  ;;  %v2048_v45 = vld [vmem:[#allocation3 + $0x10] sm:$0xff] }
 0x22a   : > { %v1864_v53 = vadd.f32 %v1844_v58, %v1738_v62  ;;  %v2155_v28 = vmul.f32 %v5002_v15, %v4941_v18  ;;  %v2099_v43 = vsel %vm313_vm0, %v4955_v13, %v2057_v36  ;;  %v2156_v17 = vmul.f32 %v5002_v15, %v2027_v22  ;;  %v2047_v58 = vld [vmem:[#allocation3 + $0xf0] sm:$0xff] }
 0x22b   : > { %v1973_v56 = vsel %vm480_vm1, %v2194_v4, %v6051_v23  ;;  %v1974_v41 = vsel %vm480_vm1, %v6052_v8, %v2194_v4  ;;  %3733 = vmatprep.mubr.bf16.mxu0 %v2288_v7  ;;  %v1910_v60 = vadd.f32 %v1890_v40, %v1865_v44  ;;  %v2111_v26 = vmul.f32 %v4988_v10, %v2099_v43 }
 0x22c   : > { %v1984_v6 = vmul.f32 %v4998_v33, %v1974_v41  ;;  %v1985_v51 = vmul.f32 %v4998_v33, %v1973_v56  ;;  %v1909_v24 = vadd.f32 %v1889_v20, %v1864_v53  ;;  %v2197_v4 = vrot.slane %v2027_v22, 1 }
 0x22d   : > { %v1592_v25 = vmul.f32 %v4922_v37, %v5210_v31  ;;  %v1593_v1 = vmul.f32 %v4922_v37, %v5216_v57  ;;  %v1637_v47 = vmul.f32 %v4925_v61, %v5190_v39  ;;  %v1638_v13 = vmul.f32 %v4925_v61, %v5195_v2 }
 0x22e   : > { %v2005_v54 = vadd.f32 %v1985_v51, %v1910_v60  ;;  %v2004_v0 = vadd.f32 %v1984_v6, %v1909_v24  ;;  %v6053_v38 = vrot.slane %v4950_v59, 1  ;;  %v6054_v3 = vrot.slane %v4941_v18, 1 }
 0x22f   : > { %v1732_v37 = vmul.f32 %v4939_v42, %v5235_v55  ;;  %v1657_v61 = vadd.f32 %v1637_v47, %v1592_v25  ;;  %v1658_v49 = vadd.f32 %v1638_v13, %v1593_v1  ;;  %v1733_v59 = vmul.f32 %v4939_v42, %v5231_v9  ;;  %v3932_v25 = vld [vmem:[#allocation6 + $0x9] ss:$0 sm:$0xff]  ;;  %v3933_v13 = vld [vmem:[#allocation6 + $0xa] ss:$0 sm:$0xff] }
 0x230   : > { %v2131_v35 = vadd.f32 %v2111_v26, %v2005_v54  ;;  %v2239_v50 = vsel %vm480_vm1, %v2197_v4, %v6053_v38  ;;  %v2240_v31 = vsel %vm480_vm1, %v6054_v3, %v2197_v4  ;;  %v2130_v57 = vadd.f32 %v2110_v21, %v2004_v0  ;;  %v6056_v54 = vld [vmem:[#allocation21_spill] sm:$0xff] }
 0x231   : > { %v2250_v39 = vmul.f32 %v5035_v63, %v2240_v31  ;;  %v2251_v32 = vmul.f32 %v5035_v63, %v2239_v50  ;;  %v1858_v18 = vmul.f32 %v4967_v19, %v5268_v12  ;;  %v1752_v22 = vadd.f32 %v1732_v37, %v1657_v61 }
 0x232   : > { %v2176_v2 = vadd.f32 %v2156_v17, %v2131_v35  ;;  %v2175_v20 = vadd.f32 %v2155_v28, %v2130_v57  ;;  %v1859_v55 = vmul.f32 %v4967_v19, %v5276_v52  ;;  %v1903_v27 = vmul.f32 %v4969_v34, %v5245_v30 }
 0x233   : > { %v1753_v14 = vadd.f32 %v1733_v59, %v1658_v49  ;;  %v1904_v62 = vmul.f32 %v4969_v34, %v5253_v46  ;;  %v1998_v42 = vmul.f32 %v4998_v33, %v5293_v48  ;;  %v1878_v40 = vadd.f32 %v1858_v18, %v1752_v22  ;;  %v2050_v49 = vld [vmem:[#allocation3 + $0xd0] sm:$0xff]  ;;  %v2051_v22 = vld [vmem:[#allocation3 + $0xc8] sm:$0xff] }
 0x234   : > { %v2271_v29 = vadd.f32 %v2251_v32, %v2176_v2  ;;  %v2270_v9 = vadd.f32 %v2250_v39, %v2175_v20  ;;  %v1999_v7 = vmul.f32 %v4998_v33, %v5289_v16  ;;  %v2077_v44 = vrot.slane %v2047_v58, 7  ;;  %v3934_v39 = vld [vmem:[#allocation6 + $0xb] ss:$0 sm:$0xff] }
 0x235   : > { %v1879_v36 = vadd.f32 %v1859_v55, %v1753_v14  ;;  %v2078_v21 = vrot.slane %v2048_v45, 7  ;;  %v2169_v53 = vmul.f32 %v5002_v15, %v2047_v58  ;;  %v2170_v23 = vmul.f32 %v5002_v15, %v2048_v45 }
 0x236   : > { %v2289_v56 = vpack.c.bf16 %v2271_v29, %v2270_v9  ;;  %v1923_v8 = vadd.f32 %v1903_v27, %v1878_v40  ;;  %v6055_v41 = vrot.slane %v5255_v11, 7  ;;  %v2217_v60 = vrot.slane %v2047_v58, 1 }
 0x237   : > { %v1924_v6 = vadd.f32 %v1904_v62, %v1879_v36  ;;  %v2085_v51 = vsel %vm313_vm0, %v2077_v44, %v2078_v21  ;;  %v2218_v24 = vrot.slane %v2048_v45, 1  ;;  %v2219_v4 = vrot.slane %v6056_v54, 1 }
 0x238   : > { %v2086_v28 = vsel %vm313_vm0, %v6055_v41, %v2077_v44  ;;  %3734 = vmatmul.mubr.bf16.vlgmr.msra.gmra.mxu0 %v2289_v56  ;;  %v2018_v26 = vadd.f32 %v1998_v42, %v1923_v8  ;;  %v2125_v17 = vmul.f32 %v4988_v10, %v2085_v51  ;;  %v1594_v11 = vmul.f32 %v3932_v25, %v5268_v12  ;;  %v6058_v8 = vld [vmem:[#allocation22_spill] sm:$0xff] }
 0x239   : > { %v2124_v43 = vmul.f32 %v4988_v10, %v2086_v28  ;;  %v2019_v0 = vadd.f32 %v1999_v7, %v1924_v6  ;;  %v2226_v1 = vsel %vm480_vm1, %v2217_v60, %v2218_v24  ;;  %v1595_v47 = vmul.f32 %v3932_v25, %v5276_v52 }
 0x23a   : > { %v1639_v35 = vmul.f32 %v3933_v13, %v5245_v30  ;;  %v2225_v50 = vsel %vm480_vm1, %v2218_v24, %v2219_v4  ;;  %v2264_v3 = vmul.f32 %v5035_v63, %v2226_v1  ;;  %v1640_v31 = vmul.f32 %v3933_v13, %v5253_v46 }
 0x23b   : > { %v2144_v38 = vadd.f32 %v2124_v43, %v2018_v26  ;;  %v2145_v37 = vadd.f32 %v2125_v17, %v2019_v0  ;;  %v2265_v12 = vmul.f32 %v5035_v63, %v2225_v50  ;;  %v1734_v32 = vmul.f32 %v3934_v39, %v5293_v48 }
 0x23c   : > { %v1659_v57 = vadd.f32 %v1639_v35, %v1594_v11  ;;  %v1660_v52 = vadd.f32 %v1640_v31, %v1595_v47  ;;  %v1735_v2 = vmul.f32 %v3934_v39, %v5289_v16  ;;  %v1860_v30 = vmul.f32 %v4967_v19, %v2086_v28 }
 0x23d   : > { %v2189_v61 = vadd.f32 %v2169_v53, %v2144_v38  ;;  %v2190_v59 = vadd.f32 %v2170_v23, %v2145_v37  ;;  %v1861_v20 = vmul.f32 %v4967_v19, %v2085_v51  ;;  %v1905_v46 = vmul.f32 %v4969_v34, %v2047_v58 }
 0x23e   : > { %v1754_v18 = vadd.f32 %v1734_v32, %v1659_v57  ;;  %v1755_v27 = vadd.f32 %v1735_v2, %v1660_v52  ;;  %v1906_v29 = vmul.f32 %v4969_v34, %v2048_v45  ;;  %v2000_v62 = vmul.f32 %v4998_v33, %v2226_v1 }
 0x23f   : > { %v2284_v55 = vadd.f32 %v2264_v3, %v2189_v61  ;;  %v2285_v14 = vadd.f32 %v2265_v12, %v2190_v59  ;;  %v2080_v42 = vrot.slane %v2050_v49, 7  ;;  %v2001_v9 = vmul.f32 %v4998_v33, %v2225_v50 }
 0x240   : > { %v1880_v48 = vadd.f32 %v1860_v30, %v1754_v18  ;;  %v1881_v16 = vadd.f32 %v1861_v20, %v1755_v27  ;;  %v2081_v40 = vrot.slane %v2051_v22, 7  ;;  %v6057_v19 = vrot.slane %v6056_v54, 7 }
 0x241   : > { %v2296_v7 = vpack.c.bf16 %v2285_v14, %v2284_v55  ;;  %v2220_v36 = vrot.slane %v2050_v49, 1  ;;  %v2221_v53 = vrot.slane %v2051_v22, 1  ;;  %v2171_v56 = vmul.f32 %v5002_v15, %v2050_v49 }
 0x242   : > { %v1925_v44 = vadd.f32 %v1905_v46, %v1880_v48  ;;  %v2084_v58 = vsel %vm313_vm0, %v6057_v19, %v2080_v42  ;;  %v1926_v21 = vadd.f32 %v1906_v29, %v1881_v16  ;;  %v2083_v34 = vsel %vm313_vm0, %v2080_v42, %v2081_v40 }
 0x243   : > { %v2126_v45 = vmul.f32 %v4988_v10, %v2084_v58  ;;  %3749 = vmatprep.mubr.bf16.mxu1 %v2296_v7  ;;  %v2127_v33 = vmul.f32 %v4988_v10, %v2083_v34  ;;  %v2222_v41 = vrot.slane %v6058_v8, 1  ;;  %v2172_v60 = vmul.f32 %v5002_v15, %v2051_v22  ;;  %v5490_v15 = vld [vmem:[%s6025_s3 + $0x1] ss:$0 sm:$0xff] }
 0x244   : > { %v2020_v23 = vadd.f32 %v2000_v62, %v1925_v44  ;;  %v2021_v28 = vadd.f32 %v2001_v9, %v1926_v21  ;;  %v2224_v6 = vsel %vm480_vm1, %v2220_v36, %v2221_v53 }
 0x245   : > { %v2223_v43 = vsel %vm480_vm1, %v2221_v53, %v2222_v41  ;;  %v2266_v24 = vmul.f32 %v5035_v63, %v2224_v6 }
 0x246   : > { %v2146_v51 = vadd.f32 %v2126_v45, %v2020_v23  ;;  %v2147_v26 = vadd.f32 %v2127_v33, %v2021_v28  ;;  %v2267_v17 = vmul.f32 %v5035_v63, %v2223_v43 }
 0x248   : > { %v2191_v10 = vadd.f32 %v2171_v56, %v2146_v51  ;;  %v2192_v54 = vadd.f32 %v2172_v60, %v2147_v26 }
 0x24a   : > { %v2286_v4 = vadd.f32 %v2266_v24, %v2191_v10  ;;  %v2287_v25 = vadd.f32 %v2267_v17, %v2192_v54 }
 0x24c   : > { %v2297_v11 = vpack.c.bf16 %v2287_v25, %v2286_v4 }
 0x24e   : > { %3750 = vmatmul.mubr.bf16.gmra.mxu1 %v2297_v11 }
 0x2b0   : > { %v3739_v0 = vpop.f32.mrf.mxu1 }
 0x2b1   : > { %v2430_v1 = vadd.f32 %v3739_v0, %v5490_v15 }
 0x2b2   : > { %v2421_v47 = vpop.f32.mrf.mxu1 }
 0x2b3   : > { %v2490_v13 = vmax.f32 %v2430_v1, 0.0  ;;  %v2422_v35 = vadd.f32 %v5490_v15, %v2421_v47 }
 0x2b4   : > { %v3740_v38 = vpop.f32.mrf.mxu1 }
 0x2b5   : > { %v2510_v63 = vmin.f32 %v2490_v13, 6.0  ;;  %v2488_v50 = vmax.f32 %v2422_v35, 0.0  ;;  %v2433_v3 = vadd.f32 %v3740_v38, %v5490_v15 }
 0x2b6   : > { %v2424_v31 = vpop.f32.mrf.mxu1 }
 0x2b7   : > { %2530 = vst [vmem:[#allocation4 + $0x50] sm:$0xff] %v2510_v63  ;;  %v2508_v37 = vmin.f32 %v2488_v50, 6.0  ;;  %v2491_v12 = vmax.f32 %v2433_v3, 0.0  ;;  %v2425_v57 = vadd.f32 %v5490_v15, %v2424_v31 }
 0x2b9   : > { %2528 = vst [vmem:[#allocation4 + $0x20] sm:$0xff] %v2508_v37  ;;  %v2511_v39 = vmin.f32 %v2491_v12, 6.0  ;;  %v2489_v32 = vmax.f32 %v2425_v57, 0.0 }
 0x2bb   : > { %2531 = vst [vmem:[#allocation4 + $0x58] sm:$0xff] %v2511_v39  ;;  %v2509_v61 = vmin.f32 %v2489_v32, 6.0 }
 0x2bd   : > { %2529 = vst [vmem:[#allocation4 + $0x30] sm:$0xff] %v2509_v61 }
 0x2c5   : > { %v3743_v52 = vpop.f32.mrf.mxu1 }
 0x2c6   : > { %v2446_v2 = vadd.f32 %v3743_v52, %v5490_v15 }
 0x2c7   : > { %v2437_v30 = vpop.f32.mrf.mxu1 }
 0x2c8   : > { %v2494_v49 = vmax.f32 %v2446_v2, 0.0  ;;  %v2438_v59 = vadd.f32 %v5490_v15, %v2437_v30 }
 0x2c9   : > { %v3744_v18 = vpop.f32.mrf.mxu1 }
 0x2ca   : > { %v2514_v20 = vmin.f32 %v2494_v49, 6.0  ;;  %v2492_v46 = vmax.f32 %v2438_v59, 0.0  ;;  %v2449_v22 = vadd.f32 %v3744_v18, %v5490_v15 }
 0x2cb   : > { %v2440_v55 = vpop.f32.mrf.mxu1 }
 0x2cc   : > { %2534 = vst [vmem:[#allocation4 + $0xc8] sm:$0xff] %v2514_v20  ;;  %v2512_v27 = vmin.f32 %v2492_v46, 6.0  ;;  %v2495_v29 = vmax.f32 %v2449_v22, 0.0  ;;  %v2441_v14 = vadd.f32 %v5490_v15, %v2440_v55 }
 0x2ce   : > { %2532 = vst [vmem:[#allocation4] sm:$0xff] %v2512_v27  ;;  %v2515_v48 = vmin.f32 %v2495_v29, 6.0  ;;  %v2493_v62 = vmax.f32 %v2441_v14, 0.0 }
 0x2d0   : > { %2535 = vst [vmem:[#allocation4 + $0xa0] sm:$0xff] %v2515_v48  ;;  %v2513_v42 = vmin.f32 %v2493_v62, 6.0 }
 0x2d2   : > { %2533 = vst [vmem:[#allocation4 + $0x78] sm:$0xff] %v2513_v42 }
 0x2db   : > { %v3747_v16 = vpop.f32.mrf.mxu1 }
 0x2dc   : > { %v2462_v9 = vadd.f32 %v3747_v16, %v5490_v15 }
 0x2dd   : > { %v2453_v40 = vpop.f32.mrf.mxu1 }
 0x2de   : > { %v2498_v7 = vmax.f32 %v2462_v9, 0.0  ;;  %v2454_v44 = vadd.f32 %v5490_v15, %v2453_v40 }
 0x2df   : > { %v3748_v19 = vpop.f32.mrf.mxu1 }
 0x2e0   : > { %v2518_v58 = vmin.f32 %v2498_v7, 6.0  ;;  %v2496_v36 = vmax.f32 %v2454_v44, 0.0  ;;  %v2465_v21 = vadd.f32 %v3748_v19, %v5490_v15 }
 0x2e1   : > { %v2456_v34 = vpop.f32.mrf.mxu1 }
 0x2e2   : > { %2538 = vst [vmem:[#allocation4 + $0xa8] sm:$0xff] %v2518_v58  ;;  %v2516_v45 = vmin.f32 %v2496_v36, 6.0  ;;  %v2499_v53 = vmax.f32 %v2465_v21, 0.0  ;;  %v2457_v23 = vadd.f32 %v5490_v15, %v2456_v34 }
 0x2e4   : > { %2536 = vst [vmem:[#allocation4 + $0x70] sm:$0xff] %v2516_v45  ;;  %v2519_v33 = vmin.f32 %v2499_v53, 6.0  ;;  %v2497_v56 = vmax.f32 %v2457_v23, 0.0 }
 0x2e6   : > { %2539 = vst [vmem:[#allocation4 + $0x88] sm:$0xff] %v2519_v33  ;;  %v2517_v8 = vmin.f32 %v2497_v56, 6.0 }
 0x2e8   : > { %2537 = vst [vmem:[#allocation4 + $0x68] sm:$0xff] %v2517_v8 }
 0x2f8   : > { %v3735_v41 = vpop.f32.mrf.mxu0 }
 0x2f9   : > { %v2414_v28 = vadd.f32 %v3735_v41, %v5490_v15 }
 0x2fa   : > { %v2405_v60 = vpop.f32.mrf.mxu0 }
 0x2fb   : > { %v2486_v6 = vmax.f32 %v2414_v28, 0.0  ;;  %v2406_v51 = vadd.f32 %v5490_v15, %v2405_v60 }
 0x2fc   : > { %v3736_v43 = vpop.f32.mrf.mxu0 }
 0x2fd   : > { %v2506_v24 = vmin.f32 %v2486_v6, 6.0  ;;  %v2484_v26 = vmax.f32 %v2406_v51, 0.0  ;;  %v2417_v17 = vadd.f32 %v3736_v43, %v5490_v15 }
 0x2fe   : > { %v2408_v10 = vpop.f32.mrf.mxu0 }
 0x2ff   : > { %2526 = vst [vmem:[#allocation4 + $0xd8] sm:$0xff] %v2506_v24  ;;  %v2504_v54 = vmin.f32 %v2484_v26, 6.0  ;;  %v2487_v4 = vmax.f32 %v2417_v17, 0.0  ;;  %v2409_v25 = vadd.f32 %v5490_v15, %v2408_v10 }
 0x301   : > { %2524 = vst [vmem:[#allocation4 + $0xb8] sm:$0xff] %v2504_v54  ;;  %v2507_v11 = vmin.f32 %v2487_v4, 6.0  ;;  %v2485_v0 = vmax.f32 %v2409_v25, 0.0 }
 0x303   : > { %2527 = vst [vmem:[#allocation4 + $0x18] sm:$0xff] %v2507_v11  ;;  %v2505_v1 = vmin.f32 %v2485_v0, 6.0 }
 0x305   : > { %2525 = vst [vmem:[#allocation4 + $0xd0] sm:$0xff] %v2505_v1 }
 0x30e   : > { %v3751_v47 = vpop.f32.mrf.mxu1 }
 0x30f   : > { %v2478_v13 = vadd.f32 %v3751_v47, %v5490_v15 }
 0x310   : > { %v2469_v35 = vpop.f32.mrf.mxu1 }
 0x311   : > { %v2502_v38 = vmax.f32 %v2478_v13, 0.0  ;;  %v2470_v63 = vadd.f32 %v5490_v15, %v2469_v35 }
 0x312   : > { %v3752_v50 = vpop.f32.mrf.mxu1 }
 0x313   : > { %v2522_v3 = vmin.f32 %v2502_v38, 6.0  ;;  %v2500_v31 = vmax.f32 %v2470_v63, 0.0  ;;  %v2481_v37 = vadd.f32 %v3752_v50, %v5490_v15 }
 0x314   : > { %v2472_v12 = vpop.f32.mrf.mxu1 }
 0x315   : > { %2542 = vst [vmem:[#allocation4 + $0x40] sm:$0xff] %v2522_v3  ;;  %v2520_v57 = vmin.f32 %v2500_v31, 6.0  ;;  %v2503_v39 = vmax.f32 %v2481_v37, 0.0  ;;  %v2473_v32 = vadd.f32 %v5490_v15, %v2472_v12 }
 0x317   : > { %2540 = vst [vmem:[#allocation4 + $0x10] sm:$0xff] %v2520_v57  ;;  %v2523_v61 = vmin.f32 %v2503_v39, 6.0  ;;  %v2501_v52 = vmax.f32 %v2473_v32, 0.0  ;;  %2546 = sbr.rel (%p3572_p7) target bundleno = 798 (0x31e), region = 56 }
 0x319   : > { %2543 = vst [vmem:[#allocation4 + $0xe8] sm:$0xff] %v2523_v61  ;;  %v2521_v2 = vmin.f32 %v2501_v52, 6.0 }
 0x31b   : > { %2541 = vst [vmem:[#allocation4 + $0x98] sm:$0xff] %v2521_v2 }
 0x31c   : > { %v4131_v30 = vmov 0.0  }
 0x31d   : > { %2547 = vst [vmem:[#allocation4 + $0xb8] sm:$0xff] %v4131_v30  ;;  %2548 = vst [vmem:[#allocation4 + $0xd0] sm:$0xff] %v4131_v30 }
 0x31e PF: > { %2551 = sbr.rel (%p3573_p9) target bundleno = 805 (0x325), region = 60 }
 0x323   : > { %v4132_v49 = vmov 0.0  }
 0x324   : > { %2553 = vst [vmem:[#allocation4 + $0x40] sm:$0xff] %v4132_v49  ;;  %2554 = vst [vmem:[#allocation4 + $0xe8] sm:$0xff] %v4132_v49 }
 0x325 PF: > { %v3935_v15 = vld [vmem:[#allocation9 + $0xb8] sm:$0xff]   ;;  %v3936_v59 = vld [vmem:[#allocation9 + $0xb0] sm:$0xff]   ;;  %v3937_v18 = vld [vmem:[#allocation9 + $0xa8] sm:$0xff]   ;;  %s3622_s27 = sshll.u32 %s4103_s18, 4  ;;  %s3617_s28 = sshll.u32 %s4107_s19, 5 }
 0x326   : > { %3753 = vmatprep.subr.bf16.mxu1 %v3935_v15  ;;  %v3938_v20 = vld [vmem:[#allocation9 + $0xa0] sm:$0xff]   ;;  %v2555_v46 = vld [vmem:[#allocation4 + $0xb8] sm:$0xff]  ;;  %v5516_v55 = vld [vmem:[#allocation4 + $0x48] sm:$0xff]  ;;  %s3442_s5 = sadd.s32 %s3622_s27, %s3617_s28  ;;  %s3445_s19 = sshll.u32 %s4293_s23, 4  ;;  %s5965_s19 = int_to_ptr.vmem [resolvable:$true] %s3445_s19 }
 0x327   : > { %3754 = vmatpush3.bf16.msra.mxu1 %v3935_v15  ;;  %v2556_v22 = vld [vmem:[#allocation4 + $0xd0] sm:$0xff]  ;;  %v5518_v27 = vld [vmem:[#allocation4 + $0x80] sm:$0xff]  ;;  %v2579_v29 = vrot.slane %v2555_v46, 7  ;;  %v2581_v48 = vrot.slane %v5516_v55, 7  ;;  %v2693_v9 = vrot.slane %v2555_v46, 1  ;;  %v2695_v7 = vrot.slane %v5516_v55, 1 }
 0x328   : > { %3755 = vmatprep.subr.bf16.mxu1 %v3936_v59  ;;  %v2580_v14 = vrot.slane %v2556_v22, 7  ;;  %v5521_v62 = vld [vmem:[#allocation6 + $0x12] ss:$0 sm:$0xff]  ;;  %v2602_v42 = vrot.slane %v5518_v27, 7  ;;  %v5524_v16 = vld [vmem:[#allocation6 + $0x13] ss:$0 sm:$0xff] }
 0x329   : > { %v2694_v40 = vrot.slane %v2556_v22, 1  ;;  %v2661_v19 = vmul.f32 %v5524_v16, %v2555_v46  ;;  %v2662_v58 = vmul.f32 %v5524_v16, %v2556_v22  ;;  %v5531_v36 = vld [vmem:[#allocation6 + $0x14] ss:$0 sm:$0xff]  ;;  %v5533_v21 = vld [vmem:[#allocation4 + $0xd8] sm:$0xff]  ;;  %v3142_v45 = vrot.slane %v5518_v27, 1  ;;  %v3939_v53 = vld [vmem:[#allocation9 + $0x98] sm:$0xff]  }
 0x32a   : > { %v2617_v44 = vsel %vm313_vm0, %v2579_v29, %v2580_v14  ;;  %v5535_v34 = vld [vmem:[#allocation4 + $0x18] sm:$0xff]  ;;  %v2618_v23 = vsel %vm313_vm0, %v2602_v42, %v2579_v29  ;;  %v5547_v41 = vld [vmem:[#allocation4 + $0x20] sm:$0xff]  ;;  %v2773_v43 = vld [vmem:[#allocation4 + $0xb0] sm:$0xff]  ;;  %v5555_v24 = vrot.slane %v5533_v21, 7  ;;  %v2909_v31 = vrot.slane %v5533_v21, 1  ;;  %s3618_s18 = sshll.u32 %s3442_s5, 7 }
 0x32b   : > { %3756 = vmatpush3.bf16.msra.mxu1 %v3936_v59  ;;  %v2625_v33 = vmul.f32 %v5521_v62, %v2617_v44  ;;  %v2731_v56 = vsel %vm480_vm1, %v2694_v40, %v2695_v7  ;;  %v2732_v8 = vsel %vm480_vm1, %v2693_v9, %v2694_v40  ;;  %v5549_v28 = vld [vmem:[#allocation4 + $0xc0] sm:$0xff]  ;;  %v2624_v60 = vmul.f32 %v5521_v62, %v2618_v23  ;;  %v5568_v13 = vld [vmem:[#allocation4 + $0x30] sm:$0xff]  ;;  %v5597_v22 = vld [vmem:[#allocation6 + $0x18] ss:$0 sm:$0xff]  ;;  %s5963_s13 = scalar_lea.hbm %s6026_s4, %s3618_s18  ;;  %s6059_s24 = sand.u32 1, %s4095_s16  }
 0x32c   : > { %3757 = vmatprep.subr.bf16.mxu1 %v3937_v18  ;;  %v2738_v6 = vmul.f32 %v5531_v36, %v2732_v8  ;;  %v2739_v51 = vmul.f32 %v5531_v36, %v2731_v56  ;;  %v5557_v26 = vld [vmem:[#allocation6 + $0x16] ss:$0 sm:$0xff]  ;;  %v2796_v10 = vrot.slane %v5535_v34, 7  ;;  %v2797_v54 = vrot.slane %v2773_v43, 7  ;;  %v5561_v25 = vld [vmem:[#allocation6 + $0x15] ss:$0 sm:$0xff] }
 0x32d   : > { %v2678_v17 = vadd.f32 %v2662_v58, %v2625_v33  ;;  %v2798_v4 = vrot.slane %v5547_v41, 7  ;;  %v2677_v11 = vadd.f32 %v2661_v19, %v2624_v60  ;;  %v2818_v0 = vrot.slane %v5549_v28, 7  ;;  %v2989_v35 = vld [vmem:[#allocation4 + $0xe0] sm:$0xff]  ;;  %v5578_v37 = vld [vmem:[#allocation4 + $0x50] sm:$0xff]  ;;  %v5599_v29 = vld [vmem:[#allocation6 + $0x19] ss:$0 sm:$0xff] }
 0x32e   : > { %v2877_v1 = vmul.f32 %v5557_v26, %v5533_v21  ;;  %v2878_v47 = vmul.f32 %v5557_v26, %v5535_v34  ;;  %v3940_v38 = vld [vmem:[#allocation9 + $0x90] sm:$0xff]   ;;  %v2833_v3 = vsel %vm313_vm0, %v5555_v24, %v2796_v10  ;;  %v5580_v12 = vld [vmem:[#allocation4 + $0x90] sm:$0xff]  ;;  %v2910_v61 = vrot.slane %v5535_v34, 1  ;;  %v3941_v14 = vld [vmem:[#allocation9 + $0x88] sm:$0xff]   ;;  %s5971_s11 = scalar_lea.sflag [#allocation8], %s6059_s24  ;;  %s4017_s14 = scalar_lea.vmem %s5965_s19, 2048 }
 0x32f   : > { %3758 = vmatpush3.bf16.msra.mxu1 %v3937_v18  ;;  %v2755_v63 = vadd.f32 %v2739_v51, %v2678_v17  ;;  %v5572_v50 = vsel %vm313_vm0, %v2797_v54, %v2798_v4  ;;  %v2754_v57 = vadd.f32 %v2738_v6, %v2677_v11  ;;  %v2834_v39 = vsel %vm313_vm0, %v2818_v0, %v5555_v24  ;;  %v5589_v52 = vld [vmem:[#allocation6 + $0x17] ss:$0 sm:$0xff]  ;;  %v5626_v10 = vld [vmem:[#allocation6 + $0x1a] ss:$0 sm:$0xff]  ;;  %v3942_v54 = vld [vmem:[#allocation9 + $0x80] sm:$0xff]   ;;  %p4018_p10 = scmp.ne.s32.totalorder %s5965_s19, %s4017_s14  ;;  %s4133_s1 = smov [#allocation11]  }
 0x330   : > { %3759 = vmatprep.subr.bf16.mxu1 %v3938_v20  ;;  %v2841_v32 = vmul.f32 %v5561_v25, %v2833_v3  ;;  %v2840_v2 = vmul.f32 %v5561_v25, %v2834_v39  ;;  %v2911_v30 = vrot.slane %v2773_v43, 1  ;;  %v3012_v49 = vrot.slane %v5568_v13, 7  ;;  %s4021_s2 = sshll.u32 %s4133_s1, 4  ;;  %s4022_s2 = int_to_ptr.vmem [resolvable:$false] %s4021_s2 }
 0x331   : > { %v3013_v15 = vrot.slane %v2989_v35, 7  ;;  %v2948_v18 = vsel %vm480_vm1, %v2909_v31, %v2910_v61  ;;  %v3034_v46 = vrot.slane %v5580_v12, 7  ;;  %v3093_v60 = vmul.f32 %v5599_v29, %v5547_v41  ;;  %p4019_p12 = pnand %p4018_p10, %p4213_p3  ;;  %s4023_s26 = scalar_lea.vmem %s4022_s2, 4096 }
 0x332   : > { %v2857_v59 = vadd.f32 %v2841_v32, %v2755_v63  ;;  %v2856_v9 = vadd.f32 %v2840_v2, %v2754_v57  ;;  %v2947_v40 = vsel %vm480_vm1, %v2910_v61, %v2911_v30  ;;  %v2954_v7 = vmul.f32 %v5589_v52, %v2948_v18  ;;  %p4024_p1 = scmp.lt.s32.totalorder %s5965_s19, %s4022_s2  ;;  %p4025_p11 = scmp.lt.s32.totalorder %s4023_s26, %s4017_s14 }
 0x333   : > { %3760 = vmatpush3.bf16.msra.mxu1 %v3938_v20  ;;  %v3014_v20 = vrot.slane %v5578_v37, 7  ;;  %v5606_v44 = vsel %vm313_vm0, %v2798_v4, %v3012_v49  ;;  %v2955_v58 = vmul.f32 %v5589_v52, %v2947_v40  ;;  %v3050_v23 = vsel %vm313_vm0, %v3034_v46, %v2798_v4  ;;  %p4020_p0 = pneg %p4019_p12 }
 0x334   : > { %3761 = vmatprep.subr.bf16.mxu1 %v3939_v53  ;;  %v2894_v19 = vadd.f32 %v2878_v47, %v2857_v59  ;;  %v2893_v33 = vadd.f32 %v2877_v1, %v2856_v9  ;;  %v3056_v56 = vmul.f32 %v5597_v22, %v3050_v23  ;;  %v3057_v8 = vmul.f32 %v5597_v22, %v5606_v44  ;;  %p4026_p13 = por %p4025_p11, %p4024_p1 }
 0x335   : > { %v3094_v51 = vmul.f32 %v5599_v29, %v5568_v13  ;;  %v3125_v43 = vrot.slane %v5547_v41, 1  ;;  %v3126_v17 = vrot.slane %v5568_v13, 1  ;;  %v3127_v11 = vrot.slane %v2989_v35, 1 }
 0x336   : > { %v2971_v6 = vadd.f32 %v2955_v58, %v2894_v19  ;;  %v2970_v4 = vadd.f32 %v2954_v7, %v2893_v33  ;;  %v2616_v1 = vsel %vm313_vm0, %v2581_v48, %v5555_v24  ;;  %v2627_v47 = vmul.f32 %v5521_v62, %v2833_v3  ;;  %v2992_v19 = vld [vmem:[#allocation4 + $0x38] sm:$0xff]  ;;  %p4027_p2 = pnand %p4026_p13, %p4020_p0 }
 0x337   : > { %3762 = vmatpush3.bf16.msra.mxu1 %v3939_v53  ;;  %v5613_v53 = vsel %vm313_vm0, %v3013_v15, %v3014_v20  ;;  %v3164_v63 = vsel %vm480_vm1, %v3125_v43, %v3126_v17  ;;  %v2626_v31 = vmul.f32 %v5521_v62, %v2616_v1  ;;  %v2663_v57 = vmul.f32 %v5524_v16, %v5533_v21  ;;  %v5649_v15 = vld [vmem:[#allocation4 + $0x58] sm:$0xff] }
 0x338   : > { %3763 = vmatprep.subr.bf16.mxu1 %v3940_v38  ;;  %v3072_v39 = vadd.f32 %v3056_v56, %v2970_v4  ;;  %v3163_v35 = vsel %vm480_vm1, %v3126_v17, %v3127_v11  ;;  %v3170_v55 = vmul.f32 %v5626_v10, %v3164_v63  ;;  %v2664_v48 = vmul.f32 %v5524_v16, %v5535_v34 }
 0x339   : > { %v3171_v3 = vmul.f32 %v5626_v10, %v3163_v35  ;;  %v2679_v32 = vadd.f32 %v2663_v57, %v2626_v31  ;;  %v2740_v61 = vmul.f32 %v5531_v36, %v2948_v18  ;;  %v2741_v21 = vmul.f32 %v5531_v36, %v2947_v40 }
 0x33a   : > { %v3109_v2 = vadd.f32 %v3093_v60, %v3072_v39  ;;  %v2680_v30 = vadd.f32 %v2664_v48, %v2627_v47  ;;  %v2842_v49 = vmul.f32 %v5561_v25, %v5572_v50  ;;  %v2843_v34 = vmul.f32 %v5561_v25, %v5606_v44 }
 0x33b   : > { %3764 = vmatpush3.bf16.msra.mxu1 %v3940_v38  ;;  %v3073_v38 = vadd.f32 %v3057_v8, %v2971_v6  ;;  %v2756_v46 = vadd.f32 %v2740_v61, %v2679_v32  ;;  %v2880_v7 = vmul.f32 %v5557_v26, %v5568_v13  ;;  %v2956_v40 = vmul.f32 %v5589_v52, %v3164_v63 }
 0x33c   : > { %3765 = vmatprep.subr.bf16.mxu1 %v3941_v14  ;;  %v3186_v9 = vadd.f32 %v3170_v55, %v3109_v2  ;;  %v2757_v18 = vadd.f32 %v2741_v21, %v2680_v30  ;;  %v2957_v23 = vmul.f32 %v5589_v52, %v3163_v35  ;;  %v3015_v33 = vrot.slane %v5649_v15, 7 }
 0x33d   : > { %v3110_v24 = vadd.f32 %v3094_v51, %v3073_v38  ;;  %v2858_v58 = vadd.f32 %v2842_v49, %v2756_v46  ;;  %v3016_v56 = vrot.slane %v2992_v19, 7  ;;  %v3058_v6 = vmul.f32 %v5597_v22, %v5613_v53  ;;  %v5689_v49 = vld [vmem:[#allocation4] sm:$0xff] }
 0x33e   : > { %v2859_v60 = vadd.f32 %v2843_v34, %v2757_v18  ;;  %v3095_v51 = vmul.f32 %v5599_v29, %v5578_v37  ;;  %v3047_v17 = vsel %vm313_vm0, %v3014_v20, %v3015_v33  ;;  %v3128_v4 = vrot.slane %v5578_v37, 1 }
 0x33f   : > { %3766 = vmatpush3.bf16.msra.mxu1 %v3941_v14  ;;  %v3187_v59 = vadd.f32 %v3171_v3, %v3110_v24  ;;  %v2879_v14 = vmul.f32 %v5557_v26, %v5547_v41  ;;  %v3059_v1 = vmul.f32 %v5597_v22, %v3047_v17  ;;  %v3129_v47 = vrot.slane %v5649_v15, 1 }
 0x340   : > { %3767 = vmatprep.subr.bf16.mxu1 %v3942_v54  ;;  %v2896_v11 = vadd.f32 %v2880_v7, %v2859_v60  ;;  %v3130_v38 = vrot.slane %v2992_v19, 1  ;;  %v2628_v57 = vmul.f32 %v5521_v62, %v5572_v50  ;;  %v2629_v39 = vmul.f32 %v5521_v62, %v5606_v44 }
 0x341   : > { %v3202_v8 = vpack.c.bf16 %v3187_v59, %v3186_v9  ;;  %v2895_v43 = vadd.f32 %v2879_v14, %v2858_v58  ;;  %v2665_v20 = vmul.f32 %v5524_v16, %v5547_v41  ;;  %v3162_v24 = vsel %vm480_vm1, %v3128_v4, %v3129_v47  ;;  %v5696_v14 = vld [vmem:[#allocation4 + $0x78] sm:$0xff] }
 0x342   : > { %v2973_v55 = vadd.f32 %v2957_v23, %v2896_v11  ;;  %v3161_v48 = vsel %vm480_vm1, %v3129_v47, %v3130_v38  ;;  %v2666_v3 = vmul.f32 %v5524_v16, %v5568_v13  ;;  %v3172_v61 = vmul.f32 %v5626_v10, %v3162_v24 }
 0x343   : > { %3768 = vmatpush3.bf16.msra.mxu1 %v3942_v54  ;;  %v3096_v54 = vmul.f32 %v5599_v29, %v5649_v15  ;;  %3769 = vmatprep.mubr.bf16.mxu1 %v3202_v8  ;;  %v2972_v31 = vadd.f32 %v2956_v40, %v2895_v43  ;;  %v3173_v50 = vmul.f32 %v5626_v10, %v3161_v48  ;;  %v3017_v23 = vrot.slane %v5689_v49, 7 }
 0x344   : > { %v2681_v2 = vadd.f32 %v2665_v20, %v2628_v57  ;;  %v3075_v44 = vadd.f32 %v3059_v1, %v2973_v55  ;;  %v2682_v30 = vadd.f32 %v2666_v3, %v2629_v39  ;;  %v2742_v41 = vmul.f32 %v5531_v36, %v3164_v63 }
 0x345   : > { %v3074_v32 = vadd.f32 %v3058_v6, %v2972_v31  ;;  %v2743_v21 = vmul.f32 %v5531_v36, %v3163_v35  ;;  %v2844_v46 = vmul.f32 %v5561_v25, %v5613_v53  ;;  %v2845_v13 = vmul.f32 %v5561_v25, %v3047_v17  ;;  %v5700_v35 = vld [vmem:[#allocation4 + $0x28] sm:$0xff] }
 0x346   : > { %v2881_v34 = vmul.f32 %v5557_v26, %v5578_v37  ;;  %v3112_v9 = vadd.f32 %v3096_v54, %v3075_v44  ;;  %v2758_v18 = vadd.f32 %v2742_v41, %v2681_v2  ;;  %v2882_v63 = vmul.f32 %v5557_v26, %v5649_v15 }
 0x347   : > { %v3111_v59 = vadd.f32 %v3095_v51, %v3074_v32  ;;  %v2759_v7 = vadd.f32 %v2743_v21, %v2682_v30  ;;  %v2958_v19 = vmul.f32 %v5589_v52, %v3162_v24  ;;  %v2959_v58 = vmul.f32 %v5589_v52, %v3161_v48 }
 0x348   : > { %v3189_v33 = vadd.f32 %v3173_v50, %v3112_v9  ;;  %v2860_v8 = vadd.f32 %v2844_v46, %v2758_v18  ;;  %v3018_v6 = vrot.slane %v5696_v14, 7  ;;  %v3019_v51 = vrot.slane %v5700_v35, 7  ;;  %v5740_v18 = vld [vmem:[#allocation4 + $0xc8] sm:$0xff] }
 0x349   : > { %v3188_v40 = vadd.f32 %v3172_v61, %v3111_v59  ;;  %v2861_v60 = vadd.f32 %v2845_v13, %v2759_v7  ;;  %v5709_v43 = vsel %vm313_vm0, %v3016_v56, %v3017_v23  ;;  %v3097_v54 = vmul.f32 %v5599_v29, %v5689_v49  ;;  %v5742_v7 = vld [vmem:[#allocation4 + $0xa0] sm:$0xff] }
 0x34a   : > { %v3098_v4 = vmul.f32 %v5599_v29, %v5696_v14  ;;  %v2897_v1 = vadd.f32 %v2881_v34, %v2860_v8  ;;  %v3045_v38 = vsel %vm313_vm0, %v3017_v23, %v3018_v6  ;;  %v3060_v31 = vmul.f32 %v5597_v22, %v5709_v43 }
 0x34b   : > { %v3203_v11 = vpack.c.bf16 %v3189_v33, %v3188_v40  ;;  %v2898_v47 = vadd.f32 %v2882_v63, %v2861_v60  ;;  %v3061_v57 = vmul.f32 %v5597_v22, %v3045_v38  ;;  %v3131_v56 = vrot.slane %v5689_v49, 1  ;;  %v2998_v60 = vld [vmem:[#allocation4 + $0x60] sm:$0xff] }
 0x34c   : > { %v3132_v39 = vrot.slane %v5696_v14, 1  ;;  %v2974_v20 = vadd.f32 %v2958_v19, %v2897_v1  ;;  %v3133_v3 = vrot.slane %v5700_v35, 1  ;;  %v2630_v32 = vmul.f32 %v5521_v62, %v5613_v53 }
 0x34d   : > { %3770 = vmatmul.mubr.bf16.vlgmr.msra.gmra.mxu1 %v3203_v11  ;;  %v2975_v55 = vadd.f32 %v2959_v58, %v2898_v47  ;;  %v2631_v50 = vmul.f32 %v5521_v62, %v3047_v17  ;;  %v2667_v2 = vmul.f32 %v5524_v16, %v5578_v37  ;;  %v2668_v44 = vmul.f32 %v5524_v16, %v5649_v15 }
 0x34e   : > { %v3160_v61 = vsel %vm480_vm1, %v3131_v56, %v3132_v39  ;;  %v3076_v30 = vadd.f32 %v3060_v31, %v2974_v20  ;;  %v3159_v21 = vsel %vm480_vm1, %v3132_v39, %v3133_v3  ;;  %v2744_v34 = vmul.f32 %v5531_v36, %v3162_v24 }
 0x34f   : > { %v3077_v41 = vadd.f32 %v3061_v57, %v2975_v55  ;;  %v3174_v59 = vmul.f32 %v5626_v10, %v3160_v61  ;;  %v3175_v53 = vmul.f32 %v5626_v10, %v3159_v21  ;;  %v2683_v46 = vadd.f32 %v2667_v2, %v2630_v32 }
 0x350   : > { %v2684_v13 = vadd.f32 %v2668_v44, %v2631_v50  ;;  %v3113_v17 = vadd.f32 %v3097_v54, %v3076_v30  ;;  %v2745_v37 = vmul.f32 %v5531_v36, %v3161_v48  ;;  %v2846_v15 = vmul.f32 %v5561_v25, %v5709_v43 }
 0x351   : > { %v3114_v9 = vadd.f32 %v3098_v4, %v3077_v41  ;;  %v2760_v63 = vadd.f32 %v2744_v34, %v2683_v46  ;;  %v2847_v35 = vmul.f32 %v5561_v25, %v3045_v38  ;;  %v2883_v40 = vmul.f32 %v5557_v26, %v5689_v49 }
 0x352   : > { %v2884_v24 = vmul.f32 %v5557_v26, %v5696_v14  ;;  %v3190_v19 = vadd.f32 %v3174_v59, %v3113_v17  ;;  %v2761_v23 = vadd.f32 %v2745_v37, %v2684_v13  ;;  %v2960_v48 = vmul.f32 %v5589_v52, %v3160_v61 }
 0x353   : > { %v3191_v58 = vadd.f32 %v3175_v53, %v3114_v9  ;;  %v2862_v33 = vadd.f32 %v2846_v15, %v2760_v63  ;;  %v2961_v8 = vmul.f32 %v5589_v52, %v3159_v21  ;;  %v3020_v6 = vrot.slane %v5740_v18, 7 }
 0x354   : > { %v3021_v54 = vrot.slane %v5742_v7, 7  ;;  %v2863_v11 = vadd.f32 %v2847_v35, %v2761_v23  ;;  %v3022_v1 = vrot.slane %v2998_v60, 7  ;;  %v3099_v47 = vmul.f32 %v5599_v29, %v5740_v18  ;;  %v5781_v35 = vld [vmem:[#allocation4 + $0x70] sm:$0xff]  ;;  %v5788_v23 = vld [vmem:[#allocation4 + $0x8] sm:$0xff] }
 0x355   : > { %v3204_v4 = vpack.c.bf16 %v3191_v58, %v3190_v19  ;;  %v2899_v31 = vadd.f32 %v2883_v40, %v2862_v33  ;;  %v3044_v56 = vsel %vm313_vm0, %v3019_v51, %v3020_v6  ;;  %v3100_v39 = vmul.f32 %v5599_v29, %v5742_v7  ;;  %v5786_v58 = vld [vmem:[#allocation4 + $0x68] sm:$0xff] }
 0x356   : > { %v3043_v57 = vsel %vm313_vm0, %v3020_v6, %v3021_v54  ;;  %v2900_v20 = vadd.f32 %v2884_v24, %v2863_v11  ;;  %v3062_v55 = vmul.f32 %v5597_v22, %v3044_v56  ;;  %v3134_v32 = vrot.slane %v5740_v18, 1 }
 0x357   : > { %3773 = vmatprep.mubr.bf16.mxu1 %v3204_v4  ;;  %v3063_v3 = vmul.f32 %v5597_v22, %v3043_v57  ;;  %v2976_v50 = vadd.f32 %v2960_v48, %v2899_v31  ;;  %v3135_v2 = vrot.slane %v5742_v7, 1  ;;  %v3136_v44 = vrot.slane %v2998_v60, 1 }
 0x358   : > { %v2632_v30 = vmul.f32 %v5521_v62, %v5709_v43  ;;  %v2977_v41 = vadd.f32 %v2961_v8, %v2900_v20  ;;  %v2633_v51 = vmul.f32 %v5521_v62, %v3045_v38  ;;  %v2669_v59 = vmul.f32 %v5524_v16, %v5689_v49 }
 0x359   : > { %v2670_v53 = vmul.f32 %v5524_v16, %v5696_v14  ;;  %v3078_v46 = vadd.f32 %v3062_v55, %v2976_v50  ;;  %v3157_v13 = vsel %vm480_vm1, %v3135_v2, %v3136_v44  ;;  %v3158_v34 = vsel %vm480_vm1, %v3134_v32, %v3135_v2 }
 0x35a   : > { %v2746_v17 = vmul.f32 %v5531_v36, %v3160_v61  ;;  %v3079_v9 = vadd.f32 %v3063_v3, %v2977_v41  ;;  %v3176_v43 = vmul.f32 %v5626_v10, %v3158_v34  ;;  %v3177_v38 = vmul.f32 %v5626_v10, %v3157_v13 }
 0x35b   : > { %v2685_v37 = vadd.f32 %v2669_v59, %v2632_v30  ;;  %v3115_v15 = vadd.f32 %v3099_v47, %v3078_v46  ;;  %v2686_v49 = vadd.f32 %v2670_v53, %v2633_v51  ;;  %v2747_v63 = vmul.f32 %v5531_v36, %v3159_v21 }
 0x35c   : > { %v2848_v14 = vmul.f32 %v5561_v25, %v3044_v56  ;;  %v3116_v40 = vadd.f32 %v3100_v39, %v3079_v9  ;;  %v2849_v19 = vmul.f32 %v5561_v25, %v3043_v57  ;;  %v2885_v61 = vmul.f32 %v5557_v26, %v5740_v18 }
 0x35d   : > { %v2762_v24 = vadd.f32 %v2746_v17, %v2685_v37  ;;  %v3192_v48 = vadd.f32 %v3176_v43, %v3115_v15  ;;  %v2763_v33 = vadd.f32 %v2747_v63, %v2686_v49  ;;  %v2886_v21 = vmul.f32 %v5557_v26, %v5742_v7 }
 0x35e   : > { %v2962_v8 = vmul.f32 %v5589_v52, %v3158_v34  ;;  %v3193_v60 = vadd.f32 %v3177_v38, %v3116_v40  ;;  %v2963_v54 = vmul.f32 %v5589_v52, %v3157_v13  ;;  %v3023_v4 = vrot.slane %v5781_v35, 7 }
 0x35f   : > { %v2864_v6 = vadd.f32 %v2848_v14, %v2762_v24  ;;  %v2865_v11 = vadd.f32 %v2849_v19, %v2763_v33  ;;  %v3024_v47 = vrot.slane %v5786_v58, 7  ;;  %v3025_v31 = vrot.slane %v5788_v23, 7  ;;  %v5824_v19 = vld [vmem:[#allocation4 + $0xa8] sm:$0xff] }
 0x360   : > { %v3101_v39 = vmul.f32 %v5599_v29, %v5781_v35  ;;  %v3205_v20 = vpack.c.bf16 %v3193_v60, %v3192_v48  ;;  %v3042_v3 = vsel %vm313_vm0, %v3022_v1, %v3023_v4  ;;  %v3102_v32 = vmul.f32 %v5599_v29, %v5786_v58  ;;  %v5830_v33 = vld [vmem:[#allocation4 + $0x88] sm:$0xff] }
 0x361   : > { %v2901_v55 = vadd.f32 %v2885_v61, %v2864_v6  ;;  %v2902_v50 = vadd.f32 %v2886_v21, %v2865_v11  ;;  %v3041_v2 = vsel %vm313_vm0, %v3023_v4, %v3024_v47  ;;  %v3064_v44 = vmul.f32 %v5597_v22, %v3042_v3 }
 0x362   : > { %v3137_v30 = vrot.slane %v5781_v35, 1  ;;  %3774 = vmatmul.mubr.bf16.gmra.mxu1 %v3205_v20  ;;  %v3065_v51 = vmul.f32 %v5597_v22, %v3041_v2  ;;  %v3138_v59 = vrot.slane %v5786_v58, 1  ;;  %v3139_v53 = vrot.slane %v5788_v23, 1 }
 0x363   : > { %v2978_v41 = vadd.f32 %v2962_v8, %v2901_v55  ;;  %v2979_v1 = vadd.f32 %v2963_v54, %v2902_v50  ;;  %v2634_v46 = vmul.f32 %v5521_v62, %v3044_v56  ;;  %v2635_v17 = vmul.f32 %v5521_v62, %v3043_v57 }
 0x364   : > { %v2671_v9 = vmul.f32 %v5524_v16, %v5740_v18  ;;  %v3155_v38 = vsel %vm480_vm1, %v3138_v59, %v3139_v53  ;;  %v3156_v37 = vsel %vm480_vm1, %v3137_v30, %v3138_v59  ;;  %v2672_v15 = vmul.f32 %v5524_v16, %v5742_v7 }
 0x365   : > { %v3080_v43 = vadd.f32 %v3064_v44, %v2978_v41  ;;  %v3081_v49 = vadd.f32 %v3065_v51, %v2979_v1  ;;  %v3178_v63 = vmul.f32 %v5626_v10, %v3156_v37  ;;  %v3179_v56 = vmul.f32 %v5626_v10, %v3155_v38 }
 0x366   : > { %v2687_v14 = vadd.f32 %v2671_v9, %v2634_v46  ;;  %v2688_v40 = vadd.f32 %v2672_v15, %v2635_v17  ;;  %v2748_v18 = vmul.f32 %v5531_v36, %v3158_v34  ;;  %v2749_v24 = vmul.f32 %v5531_v36, %v3157_v13 }
 0x367   : > { %v3117_v57 = vadd.f32 %v3101_v39, %v3080_v43  ;;  %v3118_v61 = vadd.f32 %v3102_v32, %v3081_v49  ;;  %v2850_v23 = vmul.f32 %v5561_v25, %v3042_v3  ;;  %v2851_v48 = vmul.f32 %v5561_v25, %v3041_v2 }
 0x368   : > { %v2887_v7 = vmul.f32 %v5557_v26, %v5781_v35  ;;  %v2764_v8 = vadd.f32 %v2748_v18, %v2687_v14  ;;  %v2765_v60 = vadd.f32 %v2749_v24, %v2688_v40  ;;  %v2888_v34 = vmul.f32 %v5557_v26, %v5786_v58 }
 0x369   : > { %v3194_v21 = vadd.f32 %v3178_v63, %v3117_v57  ;;  %v3195_v6 = vadd.f32 %v3179_v56, %v3118_v61  ;;  %v2964_v13 = vmul.f32 %v5589_v52, %v3156_v37  ;;  %v2965_v54 = vmul.f32 %v5589_v52, %v3155_v38  ;;  %v3006_v61 = vld [vmem:[#allocation4 + $0x98] sm:$0xff] }
 0x36a   : > { %v3026_v4 = vrot.slane %v5824_v19, 7  ;;  %v2866_v11 = vadd.f32 %v2850_v23, %v2764_v8  ;;  %v2867_v47 = vadd.f32 %v2851_v48, %v2765_v60  ;;  %v3027_v39 = vrot.slane %v5830_v33, 7 }
 0x36b   : > { %v3103_v20 = vmul.f32 %v5599_v29, %v5824_v19  ;;  %v3206_v55 = vpack.c.bf16 %v3195_v6, %v3194_v21  ;;  %v3104_v50 = vmul.f32 %v5599_v29, %v5830_v33  ;;  %v3140_v44 = vrot.slane %v5824_v19, 1 }
 0x36c   : > { %v3040_v32 = vsel %vm313_vm0, %v3025_v31, %v3026_v4  ;;  %v2903_v30 = vadd.f32 %v2887_v7, %v2866_v11  ;;  %v2904_v41 = vadd.f32 %v2888_v34, %v2867_v47  ;;  %v3039_v51 = vsel %vm313_vm0, %v3026_v4, %v3027_v39 }
 0x36d   : > { %v3066_v59 = vmul.f32 %v5597_v22, %v3040_v32  ;;  %3777 = vmatprep.mubr.bf16.mxu1 %v3206_v55  ;;  %v3067_v53 = vmul.f32 %v5597_v22, %v3039_v51  ;;  %v3141_v1 = vrot.slane %v5830_v33, 1  ;;  %v2636_v46 = vmul.f32 %v5521_v62, %v3042_v3 }
 0x36e   : > { %v2637_v31 = vmul.f32 %v5521_v62, %v3041_v2  ;;  %v2980_v17 = vadd.f32 %v2964_v13, %v2903_v30  ;;  %v2981_v9 = vadd.f32 %v2965_v54, %v2904_v41  ;;  %v2673_v43 = vmul.f32 %v5524_v16, %v5781_v35 }
 0x36f   : > { %v2674_v15 = vmul.f32 %v5524_v16, %v5786_v58  ;;  %v3153_v49 = vsel %vm480_vm1, %v3141_v1, %v3142_v45  ;;  %v3154_v63 = vsel %vm480_vm1, %v3140_v44, %v3141_v1  ;;  %v2750_v3 = vmul.f32 %v5531_v36, %v3156_v37  ;;  %v3005_v45 = vld [vmem:[#allocation4 + $0x10] sm:$0xff] }
 0x370   : > { %v2751_v2 = vmul.f32 %v5531_v36, %v3155_v38  ;;  %v3082_v56 = vadd.f32 %v3066_v59, %v2980_v17  ;;  %v3083_v14 = vadd.f32 %v3067_v53, %v2981_v9  ;;  %v3180_v57 = vmul.f32 %v5626_v10, %v3154_v63 }
 0x371   : > { %v3181_v35 = vmul.f32 %v5626_v10, %v3153_v49  ;;  %v2689_v40 = vadd.f32 %v2673_v43, %v2636_v46  ;;  %v2690_v58 = vadd.f32 %v2674_v15, %v2637_v31  ;;  %v2852_v18 = vmul.f32 %v5561_v25, %v3040_v32 }
 0x372   : > { %v2853_v24 = vmul.f32 %v5561_v25, %v3039_v51  ;;  %v3119_v23 = vadd.f32 %v3103_v20, %v3082_v56  ;;  %v3120_v48 = vadd.f32 %v3104_v50, %v3083_v14  ;;  %v2889_v37 = vmul.f32 %v5557_v26, %v5824_v19 }
 0x373   : > { %v2890_v38 = vmul.f32 %v5557_v26, %v5830_v33  ;;  %v2766_v7 = vadd.f32 %v2750_v3, %v2689_v40  ;;  %v2767_v21 = vadd.f32 %v2751_v2, %v2690_v58  ;;  %v2966_v8 = vmul.f32 %v5589_v52, %v3154_v63  ;;  %v3009_v40 = vld [vmem:[#allocation4 + $0xe8] sm:$0xff] }
 0x374   : > { %v2967_v60 = vmul.f32 %v5589_v52, %v3153_v49  ;;  %v3196_v34 = vadd.f32 %v3180_v57, %v3119_v23  ;;  %v3197_v6 = vadd.f32 %v3181_v35, %v3120_v48  ;;  %v3029_v13 = vrot.slane %v3005_v45, 7  ;;  %v3008_v35 = vld [vmem:[#allocation4 + $0x40] sm:$0xff] }
 0x375   : > { %v3030_v54 = vrot.slane %v3006_v61, 7  ;;  %v2868_v4 = vadd.f32 %v2852_v18, %v2766_v7  ;;  %v2869_v11 = vadd.f32 %v2853_v24, %v2767_v21  ;;  %v3105_v47 = vmul.f32 %v5599_v29, %v3005_v45 }
 0x376   : > { %v3106_v39 = vmul.f32 %v5599_v29, %v3006_v61  ;;  %v3207_v20 = vpack.c.bf16 %v3197_v6, %v3196_v34  ;;  %v3038_v50 = vsel %vm313_vm0, %v2602_v42, %v3029_v13  ;;  %v3143_v44 = vrot.slane %v3005_v45, 1 }
 0x377   : > { %v3037_v55 = vsel %vm313_vm0, %v3029_v13, %v3030_v54  ;;  %v2905_v30 = vadd.f32 %v2889_v37, %v2868_v4  ;;  %v2906_v41 = vadd.f32 %v2890_v38, %v2869_v11  ;;  %v3068_v59 = vmul.f32 %v5597_v22, %v3038_v50 }
 0x378   : > { %v3069_v53 = vmul.f32 %v5597_v22, %v3037_v55  ;;  %3778 = vmatmul.mubr.bf16.gmra.mxu1 %v3207_v20  ;;  %v3144_v1 = vrot.slane %v3006_v61, 1  ;;  %v3145_v46 = vrot.slane %v5549_v28, 1  ;;  %v2638_v31 = vmul.f32 %v5521_v62, %v3040_v32 }
 0x379   : > { %v2639_v17 = vmul.f32 %v5521_v62, %v3039_v51  ;;  %v2982_v9 = vadd.f32 %v2966_v8, %v2905_v30  ;;  %v2983_v27 = vadd.f32 %v2967_v60, %v2906_v41  ;;  %v2675_v42 = vmul.f32 %v5524_v16, %v5824_v19 }
 0x37a   : > { %v2676_v43 = vmul.f32 %v5524_v16, %v5830_v33  ;;  %v3151_v15 = vsel %vm480_vm1, %v3144_v1, %v3145_v46  ;;  %v3152_v3 = vsel %vm480_vm1, %v3143_v44, %v3144_v1  ;;  %v2752_v2 = vmul.f32 %v5531_v36, %v3154_v63 }
 0x37b   : > { %v2753_v32 = vmul.f32 %v5531_v36, %v3153_v49  ;;  %v3084_v56 = vadd.f32 %v3068_v59, %v2982_v9  ;;  %v3085_v62 = vadd.f32 %v3069_v53, %v2983_v27  ;;  %v3182_v51 = vmul.f32 %v5626_v10, %v3152_v3 }
 0x37c   : > { %v3183_v14 = vmul.f32 %v5626_v10, %v3151_v15  ;;  %v2691_v19 = vadd.f32 %v2675_v42, %v2638_v31  ;;  %v2692_v57 = vadd.f32 %v2676_v43, %v2639_v17  ;;  %v2854_v16 = vmul.f32 %v5561_v25, %v3038_v50 }
 0x37d   : > { %v2855_v33 = vmul.f32 %v5561_v25, %v3037_v55  ;;  %v3121_v58 = vadd.f32 %v3105_v47, %v3084_v56  ;;  %v3122_v18 = vadd.f32 %v3106_v39, %v3085_v62  ;;  %v2891_v36 = vmul.f32 %v5557_v26, %v3005_v45 }
 0x37e   : > { %v2768_v24 = vadd.f32 %v2752_v2, %v2691_v19  ;;  %v2769_v63 = vadd.f32 %v2753_v32, %v2692_v57  ;;  %v2892_v49 = vmul.f32 %v5557_v26, %v3006_v61  ;;  %v3032_v37 = vrot.slane %v3008_v35, 7 }
 0x37f   : > { %v3198_v23 = vadd.f32 %v3182_v51, %v3121_v58  ;;  %v3199_v48 = vadd.f32 %v3183_v14, %v3122_v18  ;;  %v3033_v38 = vrot.slane %v3009_v40, 7  ;;  %v2968_v8 = vmul.f32 %v5589_v52, %v3152_v3 }
 0x380   : > { %v2870_v7 = vadd.f32 %v2854_v16, %v2768_v24  ;;  %v2871_v21 = vadd.f32 %v2855_v33, %v2769_v63  ;;  %v2969_v25 = vmul.f32 %v5589_v52, %v3151_v15  ;;  %v3036_v45 = vsel %vm313_vm0, %v2818_v0, %v3032_v37 }
 0x381   : > { %v3208_v60 = vpack.c.bf16 %v3199_v48, %v3198_v23  ;;  %v3035_v34 = vsel %vm313_vm0, %v3032_v37, %v3033_v38  ;;  %v3146_v26 = vrot.slane %v3008_v35, 1  ;;  %v3070_v13 = vmul.f32 %v5597_v22, %v3036_v45 }
 0x382   : > { %v2907_v61 = vadd.f32 %v2891_v36, %v2870_v7  ;;  %v2908_v6 = vadd.f32 %v2892_v49, %v2871_v21  ;;  %v3071_v54 = vmul.f32 %v5597_v22, %v3035_v34  ;;  %v3147_v4 = vrot.slane %v3009_v40, 1 }
 0x383   : > { %3781 = vmatprep.mubr.bf16.mxu1 %v3208_v60  ;;  %v3148_v52 = vrot.slane %v5580_v12, 1  ;;  %v3107_v39 = vmul.f32 %v5599_v29, %v3008_v35  ;;  %v3108_v28 = vmul.f32 %v5599_v29, %v3009_v40  ;;  %v5925_v29 = vld [vmem:[%s6025_s3 + $0x2] ss:$0 sm:$0xff] }
 0x384   : > { %v2984_v11 = vadd.f32 %v2968_v8, %v2907_v61  ;;  %v2985_v47 = vadd.f32 %v2969_v25, %v2908_v6  ;;  %v3150_v20 = vsel %vm480_vm1, %v3146_v26, %v3147_v4 }
 0x385   : > { %v3149_v0 = vsel %vm480_vm1, %v3147_v4, %v3148_v52  ;;  %v3184_v22 = vmul.f32 %v5626_v10, %v3150_v20 }
 0x386   : > { %v3086_v55 = vadd.f32 %v3070_v13, %v2984_v11  ;;  %v3087_v50 = vadd.f32 %v3071_v54, %v2985_v47  ;;  %v3185_v44 = vmul.f32 %v5626_v10, %v3149_v0 }
 0x388   : > { %v3123_v30 = vadd.f32 %v3107_v39, %v3086_v55  ;;  %v3124_v12 = vadd.f32 %v3108_v28, %v3087_v50 }
 0x38a   : > { %v3200_v41 = vadd.f32 %v3184_v22, %v3123_v30  ;;  %v3201_v59 = vadd.f32 %v3185_v44, %v3124_v12 }
 0x38c   : > { %v3209_v53 = vpack.c.bf16 %v3201_v59, %v3200_v41 }
 0x38e   : > { %3782 = vmatmul.mubr.bf16.gmra.mxu1 %v3209_v53 }
 0x40d   : > { %v3771_v5 = vpop.f32.mrf.mxu1 }
 0x40e   : > { %v3326_v1 = vadd.f32 %v3771_v5, %v5925_v29 }
 0x40f   : > { %v3317_v46 = vpop.f32.mrf.mxu1 }
 0x410   : > { %v3382_v31 = vmax.f32 %v3326_v1, 0.0  ;;  %v3318_v10 = vadd.f32 %v5925_v29, %v3317_v46 }
 0x411   : > { %v3772_v17 = vpop.f32.mrf.mxu1 }
 0x412   : > { %v3398_v9 = vmin.f32 %v3382_v31, 6.0  ;;  %v3380_v27 = vmax.f32 %v3318_v10, 0.0  ;;  %v3329_v42 = vadd.f32 %v3772_v17, %v5925_v29 }
 0x413   : > { %v3320_v43 = vpop.f32.mrf.mxu1 }
 0x414   : > { %3414 = vst [vmem:[%s4293_s23 + $0x10] sm:$0xff] %v3398_v9  ;;  %v3396_v15 = vmin.f32 %v3380_v27, 6.0  ;;  %v3383_v3 = vmax.f32 %v3329_v42, 0.0  ;;  %v3321_v2 = vadd.f32 %v5925_v29, %v3320_v43 }
 0x416   : > { %3412 = vst [vmem:[%s4293_s23] sm:$0xff] %v3396_v15  ;;  %v3399_v32 = vmin.f32 %v3383_v3, 6.0  ;;  %v3381_v56 = vmax.f32 %v3321_v2, 0.0 }
 0x418   : > { %3415 = vst [vmem:[%s4293_s23 + $0x18] sm:$0xff] %v3399_v32  ;;  %v3397_v62 = vmin.f32 %v3381_v56, 6.0 }
 0x41a   : > { %3413 = vst [vmem:[%s4293_s23 + $0x8] sm:$0xff] %v3397_v62 }
 0x422   : > { %v3775_v51 = vpop.f32.mrf.mxu1 }
 0x423   : > { %v3342_v14 = vadd.f32 %v3775_v51, %v5925_v29 }
 0x424   : > { %v3333_v19 = vpop.f32.mrf.mxu1 }
 0x425   : > { %v3386_v57 = vmax.f32 %v3342_v14, 0.0  ;;  %v3334_v16 = vadd.f32 %v5925_v29, %v3333_v19 }
 0x426   : > { %v3776_v33 = vpop.f32.mrf.mxu1 }
 0x427   : > { %v3402_v35 = vmin.f32 %v3386_v57, 6.0  ;;  %v3384_v40 = vmax.f32 %v3334_v16, 0.0  ;;  %v3345_v58 = vadd.f32 %v3776_v33, %v5925_v29 }
 0x428   : > { %v3336_v18 = vpop.f32.mrf.mxu1 }
 0x429   : > { %3418 = vst [vmem:[%s4293_s23 + $0x30] sm:$0xff] %v3402_v35  ;;  %v3400_v24 = vmin.f32 %v3384_v40, 6.0  ;;  %v3387_v63 = vmax.f32 %v3345_v58, 0.0  ;;  %v3337_v36 = vadd.f32 %v5925_v29, %v3336_v18 }
 0x42b   : > { %3416 = vst [vmem:[%s4293_s23 + $0x20] sm:$0xff] %v3400_v24  ;;  %v3403_v49 = vmin.f32 %v3387_v63, 6.0  ;;  %v3385_v23 = vmax.f32 %v3337_v36, 0.0 }
 0x42d   : > { %3419 = vst [vmem:[%s4293_s23 + $0x38] sm:$0xff] %v3403_v49  ;;  %v3401_v48 = vmin.f32 %v3385_v23, 6.0 }
 0x42f   : > { %3417 = vst [vmem:[%s4293_s23 + $0x28] sm:$0xff] %v3401_v48 }
 0x438   : > { %v3779_v37 = vpop.f32.mrf.mxu1 }
 0x439   : > { %v3358_v38 = vadd.f32 %v3779_v37, %v5925_v29 }
 0x43a   : > { %v3349_v7 = vpop.f32.mrf.mxu1 }
 0x43b   : > { %v3390_v21 = vmax.f32 %v3358_v38, 0.0  ;;  %v3350_v8 = vadd.f32 %v5925_v29, %v3349_v7 }
 0x43c   : > { %v3780_v25 = vpop.f32.mrf.mxu1 }
 0x43d   : > { %v3406_v60 = vmin.f32 %v3390_v21, 6.0  ;;  %v3388_v34 = vmax.f32 %v3350_v8, 0.0  ;;  %v3361_v45 = vadd.f32 %v3780_v25, %v5925_v29 }
 0x43e   : > { %v3352_v26 = vpop.f32.mrf.mxu1 }
 0x43f   : > { %3422 = vst [vmem:[%s4293_s23 + $0x50] sm:$0xff] %v3406_v60  ;;  %v3404_v61 = vmin.f32 %v3388_v34, 6.0  ;;  %v3391_v6 = vmax.f32 %v3361_v45, 0.0  ;;  %v3353_v13 = vadd.f32 %v5925_v29, %v3352_v26 }
 0x441   : > { %3420 = vst [vmem:[%s4293_s23 + $0x40] sm:$0xff] %v3404_v61  ;;  %v3407_v54 = vmin.f32 %v3391_v6, 6.0  ;;  %v3389_v4 = vmax.f32 %v3353_v13, 0.0 }
 0x443   : > { %3423 = vst [vmem:[%s4293_s23 + $0x58] sm:$0xff] %v3407_v54  ;;  %v3405_v52 = vmin.f32 %v3389_v4, 6.0 }
 0x445   : > { %3421 = vst [vmem:[%s4293_s23 + $0x48] sm:$0xff] %v3405_v52 }
 0x44e   : > { %v3783_v11 = vpop.f32.mrf.mxu1 }
 0x44f   : > { %v3374_v47 = vadd.f32 %v3783_v11, %v5925_v29 }
 0x450   : > { %v3365_v39 = vpop.f32.mrf.mxu1 }
 0x451   : > { %v3394_v28 = vmax.f32 %v3374_v47, 0.0  ;;  %v3366_v0 = vadd.f32 %v5925_v29, %v3365_v39 }
 0x452   : > { %v3784_v20 = vpop.f32.mrf.mxu1 }
 0x453   : > { %v3410_v55 = vmin.f32 %v3394_v28, 6.0  ;;  %v3392_v50 = vmax.f32 %v3366_v0, 0.0  ;;  %v3377_v22 = vadd.f32 %v3784_v20, %v5925_v29 }
 0x454   : > { %v3368_v44 = vpop.f32.mrf.mxu1 }
 0x455   : > { %3426 = vst [vmem:[%s4293_s23 + $0x70] sm:$0xff] %v3410_v55  ;;  %v3408_v30 = vmin.f32 %v3392_v50, 6.0  ;;  %v3395_v12 = vmax.f32 %v3377_v22, 0.0  ;;  %v3369_v41 = vadd.f32 %v5925_v29, %v3368_v44 }
 0x457   : > { %3424 = vst [vmem:[%s4293_s23 + $0x60] sm:$0xff] %v3408_v30  ;;  %v3411_v59 = vmin.f32 %v3395_v12, 6.0  ;;  %v3393_v53 = vmax.f32 %v3369_v41, 0.0 }
 0x459   : > { %3427 = vst [vmem:[%s4293_s23 + $0x78] sm:$0xff] %v3411_v59  ;;  %v3409_v5 = vmin.f32 %v3393_v53, 6.0 }
 0x45b   : > { %3425 = vst [vmem:[%s4293_s23 + $0x68] sm:$0xff] %v3409_v5 }
 0x45c   : > { %4030 = shalt.err (!%p4027_p2)
}
 0x45d   : > { %s4031_s23 = scalar_lea.hbm %s5963_s13, 2048  ;;  %s4035_s8 = scalar_lea.hbm %s6026_s4, 8192 }
 0x45e   : > { %p4032_p4 = scmp.ne.s32.totalorder %s5963_s13, %s4031_s23  ;;  %p4036_p7 = scmp.lt.s32.totalorder %s5963_s13, %s6026_s4 }
 0x45f   : > { %p4037_p9 = scmp.lt.s32.totalorder %s4035_s8, %s4031_s23 }
 0x460   : > { %p4033_p5 = pnand %p4032_p4, %p4213_p3 }
 0x461   : > { %p4038_p10 = por %p4037_p9, %p4036_p7 }
 0x462   : > { %p4034_p6 = pneg %p4033_p5 }
 0x464   : > { %p4039_p12 = pnand %p4038_p10, %p4034_p6 }
 0x466   : > { %4042 = shalt.err (!%p4039_p12)
}
 0x467   : > { %s4134_s5 = smov 128   ;;  %s4135_s18 = smov 8  }
 0x468   : > { %3809 = dma.vmem_to_hbm [thread:$0]  (%p4213_p3), %s5965_s19, 2048, %s5963_s13, %s5971_s11, %s4134_s5, %s4134_s5, %s4135_s18  }
 0x469 PF: > { %p3826_p0 = scmp.ge.s32.totalorder %s4119_s22, 2  ;;  %s3460_s6 = sand.u32 1, %s4091_s15  }
 0x46a   : > { %s3461_s10 = scalar_lea.sflag [#allocation8], %s3460_s6 }
 0x46b   : > { %p3819_p1 = pnand %p3826_p0, %p4222_p8 }
 0x46d   : > { %p3820_p11 = pneg %p3819_p1 }
 0x46f   : > { %4086 = dma.done.wait (%p3820_p11), %s3461_s10, 2048  }
 0x470   : > { %4088 = vsyncadd (%p3820_p11), %s3461_s10, 4294965248  ;;  %s19_s22 = sadd.s32 1, %s4119_s22   ;;  %s6060_s29 = sld [smem:[#allocation20_spill]] }
 0x471   : > { %p16_p13 = scmp.ge.s32.totalorder %s19_s22, 6   ;;  %s6061_s15 = smov %s4095_s16 }
 0x472   : > { %s6062_s16 = smov %s4099_s17  ;;  %s6063_s17 = smov %s4240_s9 }
 0x473   : > { %s6064_s18 = smov %s4111_s20  ;;  %s6065_s19 = smov %s4115_s21 }
 0x474   : > { %s6066_s20 = smov %s6069_s25  ;;  %18 = sbr.rel (!%p16_p13) target bundleno = 10 (0xa), region = 106 }
 0x476   : > { %s6067_s21 = smov %s6060_s29 }
 0x479   :  { %3466 = vsyncpa [#allocation7], 1 }
 0x47a   :  { %3468 = vsyncpa [#allocation7 + $0x1], 1 }
 0x47b   :  { %3469 = vsyncpa [#allocation10], 1 }
 0x47c   :  { %3470 = vsyncpa [#allocation8], 1 }
 0x47d   :  { %3472 = vsyncpa [#allocation8 + $0x1], 1 }
 0x47e   :  { %3473 = vsyncmov [#allocation5] }
 0x481   :  { %s3474_s30 = vpop.sfrf %3473 }
 0x482   :  { %p3621_p3 = scmp.ne.s32.totalorder %s3474_s30, 0 }
 0x484   :  { %3478 = shalt.err (%p3621_p3)  }

</bundles_post_ra>
